<compile_context>
chip_gen: v7x
topology: tpu7x:2x2x1
jax: 0.10.0
libtpu: 0.0.40
codegen_flags: <defaults>
</compile_context>

<pallas_src>
import functools

import jax
import jax.numpy as jnp
import numpy as np
from jax.experimental import pallas as pl
from jax.experimental.pallas import tpu as pltpu


# Unused-in-forward module parameters (documentation parity with the torch module).
LOG_SIGMA_DET = -4.66
LOG_SIGMA_REID = -2.0

_NEG_BIG = -1e30  # finite "-inf" sentinel keeps all max/exp bookkeeping finite


def _round_up(x, m):
    return (x + m - 1) // m * m


def _max_all(x):
    # staged lane-then-sublane reduction, stays 2D -> (1, 1)
    return jnp.max(jnp.max(x, axis=1, keepdims=True), axis=0, keepdims=True)


def _sum_all(x):
    return jnp.sum(jnp.sum(x, axis=1, keepdims=True), axis=0, keepdims=True)


# -----------------------------------------------------------------------------------
# Fused kernel: CircleLoss (loss_reid) + MultiTaskLoss.forward (add loss_det) on-chip.
# -----------------------------------------------------------------------------------
def _fused_kernel(det_ref, f_ref, lcol_ref, lrow_ref, o_ref,
                  m_p_ref, s_p_ref, m_n_ref, s_n_ref,
                  *, m, gamma, lam, n_real, c, tile, nb):
    i = pl.program_id(0)   # row block
    j = pl.program_id(1)   # column block

    @pl.when(jnp.logical_and(i == 0, j == 0))
    def _init():
        m_p_ref[...] = jnp.full((1, 1), _NEG_BIG, jnp.float32)
        m_n_ref[...] = jnp.full((1, 1), _NEG_BIG, jnp.float32)
        s_p_ref[...] = jnp.zeros((1, 1), jnp.float32)
        s_n_ref[...] = jnp.zeros((1, 1), jnp.float32)

    @pl.when(j >= i)   # strictly-lower-triangular blocks contribute nothing -> skip
    def _compute():
        if nb == 1:
            f_rows = f_ref[...]
            f_cols = f_rows
            row0 = 0
            col0 = 0
        else:
            row0 = pl.multiple_of(i * tile, tile)
            col0 = pl.multiple_of(j * tile, tile)
            # Single resident feats buffer, sliced along the sublane axis for both
            # the row slab and the column slab (no second streamed copy of feats).
            f_rows = f_ref[pl.ds(row0, tile), :]
            f_cols = f_ref[pl.ds(col0, tile), :]

        # A @ B^T with contraction on the LAST dim of both operands (no transpose,
        # no extra (C, tile) VMEM copy). f32 accumulate on the MXU.
        sim = jax.lax.dot_general(
            f_rows, f_cols,
            dimension_numbers=(((1,), (1,)), ((), ())),
            preferred_element_type=jnp.float32)            # (tile, tile)

        # Pairwise label equality for this block: (tile,1) == (1,tile).
        label_eq = lcol_ref[...] == lrow_ref[...]

        # Strict-upper-triangle + padding validity, from block-global indices.
        ri = jax.lax.broadcasted_iota(jnp.int32, (tile, tile), 0) + row0
        ci = jax.lax.broadcasted_iota(jnp.int32, (tile, tile), 1) + col0
        sel = jnp.logical_and(ci > ri,
                              jnp.logical_and(ri < n_real, ci < n_real))

        # CircleLoss logits (detach() is a no-op in this forward-only kernel).
        ap = jnp.maximum(-sim + 1.0 + m, 0.0)
        an = jnp.maximum(sim + m, 0.0)
        logit_p = -ap * (sim - (1.0 - m)) * gamma
        logit_n = an * (sim - m) * gamma

        # Trimmed select chain: one fused pos/neg logit, one sel-masked copy for the
        # running maxima, ONE exp per block, and sum_neg = sum_all - sum_pos.
        logit = jnp.where(label_eq, logit_p, logit_n)
        masked = jnp.where(sel, logit, _NEG_BIG)
        mb_p = _max_all(jnp.where(label_eq, masked, _NEG_BIG))
        mb_n = _max_all(jnp.where(label_eq, _NEG_BIG, masked))
        new_mp = jnp.maximum(m_p_ref[...], mb_p)
        new_mn = jnp.maximum(m_n_ref[...], mb_n)

        shift = jnp.where(label_eq, new_mp, new_mn)
        e = jnp.exp(jnp.where(sel, logit - shift, _NEG_BIG))   # masked BEFORE exp
        sum_all = _sum_all(e)
        sum_p = _sum_all(jnp.where(label_eq, e, 0.0))
        sum_n = sum_all - sum_p

        # Online (flash-style) logsumexp carry update.
        s_p_ref[...] = s_p_ref[...] * jnp.exp(m_p_ref[...] - new_mp) + sum_p
        s_n_ref[...] = s_n_ref[...] * jnp.exp(m_n_ref[...] - new_mn) + sum_n
        m_p_ref[...] = new_mp
        m_n_ref[...] = new_mn

    @pl.when(jnp.logical_and(i == nb - 1, j == nb - 1))
    def _finalize():
        # Empty selection -> log(0) = -inf, matching torch.logsumexp semantics.
        lse_p = m_p_ref[...] + jnp.log(s_p_ref[...])
        lse_n = m_n_ref[...] + jnp.log(s_n_ref[...])
        z = lse_p + lse_n
        softplus_z = jnp.maximum(z, 0.0) + jnp.log1p(jnp.exp(-jnp.abs(z)))
        loss_reid = lam * jnp.maximum(softplus_z / jnp.float32(c), 0.0)
        # num_ids = clamp(N / world_size, min=1); single-device => N.
        loss_reid = loss_reid / jnp.float32(max(n_real, 1))
        # MultiTaskLoss.forward fused here: total = loss_det + loss_reid.
        o_ref[...] = loss_reid + det_ref[0, 0]


def _choose_tile(n):
    """Single block for small/moderate N (no per-step overhead); otherwise 512-wide
    square blocks, which keep ~20 live (tile,tile) f32 temporaries under v7x VMEM."""
    n8 = _round_up(max(n, 1), 8)
    if n8 <= 512:
        return n8, n8, 1
    tile = 512
    n_pad = _round_up(n, tile)
    return tile, n_pad, n_pad // tile


def multi_task_circle_loss_forward(loss_det, outputs, targets, *,
                                   m=0.8, gamma=80.0, _lambda=1.0):
    """Returns loss_det + IDCriterion(CircleLoss)(outputs, targets) — i.e.
    MultiTaskLoss.forward with its reid branch, computed in one Pallas kernel.

    outputs: (1, N, C) float features; targets: (1, N) int identity labels.
    """
    b, n, c = outputs.shape
    assert b == 1, f"ID Criterion is only supported bs=1, but get bs={b}"

    feats = outputs.reshape(n, c).astype(jnp.float32)      # 'b n c -> (b n) c'
    labels = targets.reshape(n).astype(jnp.int32)
    tile, n_pad, nb = _choose_tile(n)
    if n_pad != n:
        feats = jnp.pad(feats, ((0, n_pad - n), (0, 0)))
        labels = jnp.pad(labels, (0, n_pad - n))
    labels_col = labels.reshape(n_pad, 1)
    labels_row = labels.reshape(1, n_pad)
    det = jnp.asarray(loss_det, jnp.float32).reshape(1, 1)

    # VMEM budget with (8,128) sublane/lane padding: resident feats (x2 pipeline
    # buffers), the small per-block label slabs, and ~20 live (tile,tile) f32 temps.
    c_pad = _round_up(c, 128)
    vmem = 4 * (2 * n_pad * c_pad
                + 2 * _round_up(tile, 8) * 128
                + 2 * 8 * _round_up(tile, 128)
                + 20 * tile * tile)
    vmem = int(min(max(vmem + (2 << 20), 16 << 20), 40 << 20))   # <= 40 MiB (v7x safe)

    kernel = functools.partial(
        _fused_kernel, m=float(m), gamma=float(gamma), lam=float(_lambda),
        n_real=n, c=c, tile=tile, nb=nb)

    out = pl.pallas_call(
        kernel,
        out_shape=jax.ShapeDtypeStruct((1, 1), jnp.float32),
        grid=(nb, nb),
        in_specs=[
            pl.BlockSpec(memory_space=pltpu.MemorySpace.SMEM),    # loss_det scalar
            pl.BlockSpec((n_pad, c), lambda i, j: (0, 0)),        # feats, resident
            pl.BlockSpec((tile, 1), lambda i, j: (i, 0)),         # row-block labels
            pl.BlockSpec((1, tile), lambda i, j: (0, j)),         # col-block labels
        ],
        out_specs=pl.BlockSpec((1, 1), lambda i, j: (0, 0)),
        scratch_shapes=[pltpu.VMEM((1, 1), jnp.float32)] * 4,     # m_p, s_p, m_n, s_n
        compiler_params=pltpu.CompilerParams(
            dimension_semantics=("arbitrary", "arbitrary"),       # shared accumulators
            vmem_limit_bytes=vmem),
    )(det, feats, labels_col, labels_row)
    return out[0, 0]


def multi_task_loss_forward(loss_det, loss_reid):
    """MultiTaskLoss.forward for two already-materialized scalar losses.

    Per the performance review the standalone (1,1) SMEM pallas_call was deleted —
    a dedicated kernel launch for one scalar add is pure dispatch overhead.  When the
    reid loss comes from the Pallas kernel above, the add is fused in-kernel instead.
    """
    return jnp.asarray(loss_det, jnp.float32) + jnp.asarray(loss_reid, jnp.float32)


# -----------------------------------------------------------------------------------
# Pure-JAX reference (sanity check).
# -----------------------------------------------------------------------------------
def _id_criterion_reference(outputs, targets, m=0.8, gamma=80.0, _lambda=1.0):
    n, c = outputs.shape[1], outputs.shape[2]
    f = outputs.reshape(n, c).astype(jnp.float32)
    lab = targets.reshape(n)
    sim = jnp.dot(f, f.T, precision=jax.lax.Precision.HIGHEST)
    eq = lab[:, None] == lab[None, :]
    upper = jnp.triu(jnp.ones((n, n), bool), k=1)
    pos = jnp.logical_and(eq, upper)
    neg = jnp.logical_and(~eq, upper)
    ap = jnp.maximum(-sim + 1.0 + m, 0.0)
    an = jnp.maximum(sim + m, 0.0)
    logit_p = jnp.where(pos, -ap * (sim - (1.0 - m)) * gamma, -jnp.inf)
    logit_n = jnp.where(neg, an * (sim - m) * gamma, -jnp.inf)
    z = jax.nn.logsumexp(logit_n) + jax.nn.logsumexp(logit_p)
    loss = _lambda * jnp.maximum(jax.nn.softplus(z) / c, 0.0)
    return loss / float(n)


if __name__ == "__main__":
    key = jax.random.PRNGKey(0)
    k1, k2, k3, k4, k5 = jax.random.split(key, 5)

    # Detection branch: stand-in scalar loss produced upstream of MultiTaskLoss.
    loss_det = jnp.abs(jax.random.normal(k3, (), dtype=jnp.float32))

    # --- Case 1: small N -> single-block fast path (grid (1, 1)) ------------------
    B, N, C = 1, 256, 32
    feats = jax.random.normal(k1, (B, N, C), dtype=jnp.float32)
    feats = feats / jnp.linalg.norm(feats, axis=-1, keepdims=True)   # normed_feature
    ids = jax.random.randint(k2, (B, N), minval=0, maxval=8, dtype=jnp.int32)

    total = jax.block_until_ready(multi_task_circle_loss_forward(loss_det, feats, ids))
    ref_total = jax.block_until_ready(loss_det + _id_criterion_reference(feats, ids))
    np.testing.assert_allclose(np.asarray(total), np.asarray(ref_total),
                               rtol=1e-3, atol=1e-3)

    # --- Case 2: larger N -> tiled upper-triangular path (grid (3, 3), 3 skipped) --
    N2 = 1300
    feats2 = jax.random.normal(k4, (1, N2, C), dtype=jnp.float32)
    feats2 = feats2 / jnp.linalg.norm(feats2, axis=-1, keepdims=True)
    ids2 = jax.random.randint(k5, (1, N2), minval=0, maxval=32, dtype=jnp.int32)

    total2 = jax.block_until_ready(multi_task_circle_loss_forward(loss_det, feats2, ids2))
    ref_total2 = jax.block_until_ready(loss_det + _id_criterion_reference(feats2, ids2))
    np.testing.assert_allclose(np.asarray(total2), np.asarray(ref_total2),
                               rtol=1e-3, atol=1e-3)

    # --- Bare MultiTaskLoss.forward API parity (plain scalar add, per review) ------
    t = multi_task_loss_forward(jnp.float32(1.5), jnp.float32(2.25))
    np.testing.assert_allclose(np.asarray(t), 3.75, rtol=0, atol=0)

    print("KERNEL_OK")
</pallas_src>

<mosaic_0001>
module attributes {stable_mosaic.version = 11 : i64} {
  func.func @_fused_kernel(%arg0: i32, %arg1: i32, %arg2: memref<1x1xf32, #tpu.memory_space<smem>>, %arg3: memref<256x32xf32, #tpu.memory_space<vmem>>, %arg4: memref<256x1xi32, #tpu.memory_space<vmem>>, %arg5: memref<1x256xi32, #tpu.memory_space<vmem>>, %arg6: memref<1x1xf32, #tpu.memory_space<vmem>>, %arg7: memref<1x1xf32, #tpu.memory_space<vmem>>, %arg8: memref<1x1xf32, #tpu.memory_space<vmem>>, %arg9: memref<1x1xf32, #tpu.memory_space<vmem>>, %arg10: memref<1x1xf32, #tpu.memory_space<vmem>>) attributes {dimension_semantics = [#tpu.dimension_semantics<arbitrary>, #tpu.dimension_semantics<arbitrary>], iteration_bounds = array<i64: 1, 1>, scalar_prefetch = 0 : i64, scratch_operands = 4 : i64, tpu.core_type = #tpu.core_type<tc>, window_params = [{transform_indices = @transform_0, window_bounds = array<i64: 1, 1>}, {pipeline_mode = #tpu.pipeline_mode<synchronous>, transform_indices = @transform_1, window_bounds = array<i64: 256, 32>}, {transform_indices = @transform_2, window_bounds = array<i64: 256, 1>}, {transform_indices = @transform_3, window_bounds = array<i64: 1, 256>}, {pipeline_mode = #tpu.pipeline_mode<synchronous>, transform_indices = @transform_4, window_bounds = array<i64: 1, 1>}]} {
    %c0_i32 = arith.constant 0 : i32
    %0 = arith.cmpi eq, %arg0, %c0_i32 : i32
    %c0_i32_0 = arith.constant 0 : i32
    %1 = arith.cmpi eq, %arg1, %c0_i32_0 : i32
    %2 = arith.andi %0, %1 : i1
    %3 = arith.extui %2 : i1 to i32
    %c0_i32_1 = arith.constant 0 : i32
    %4 = arith.cmpi ne, %3, %c0_i32_1 : i32
    scf.if %4 {
      %cst = arith.constant -1.000000e+30 : f32
      %13 = vector.broadcast %cst : f32 to vector<1x1xf32>
      %c0 = arith.constant 0 : index
      %c0_6 = arith.constant 0 : index
      %14 = vector.load %arg7[%c0, %c0_6] : memref<1x1xf32, #tpu.memory_space<vmem>>, vector<1x1xf32>
      tpu.vector_store %arg7[%c0, %c0_6], %13 {strides = array<i32>} : memref<1x1xf32, #tpu.memory_space<vmem>>, vector<1x1xf32>,
      %cst_7 = arith.constant -1.000000e+30 : f32
      %15 = vector.broadcast %cst_7 : f32 to vector<1x1xf32>
      %c0_8 = arith.constant 0 : index
      %c0_9 = arith.constant 0 : index
      %16 = vector.load %arg9[%c0_8, %c0_9] : memref<1x1xf32, #tpu.memory_space<vmem>>, vector<1x1xf32>
      tpu.vector_store %arg9[%c0_8, %c0_9], %15 {strides = array<i32>} : memref<1x1xf32, #tpu.memory_space<vmem>>, vector<1x1xf32>,
      %cst_10 = arith.constant 0.000000e+00 : f32
      %17 = vector.broadcast %cst_10 : f32 to vector<1x1xf32>
      %c0_11 = arith.constant 0 : index
      %c0_12 = arith.constant 0 : index
      %18 = vector.load %arg8[%c0_11, %c0_12] : memref<1x1xf32, #tpu.memory_space<vmem>>, vector<1x1xf32>
      tpu.vector_store %arg8[%c0_11, %c0_12], %17 {strides = array<i32>} : memref<1x1xf32, #tpu.memory_space<vmem>>, vector<1x1xf32>,
      %cst_13 = arith.constant 0.000000e+00 : f32
      %19 = vector.broadcast %cst_13 : f32 to vector<1x1xf32>
      %c0_14 = arith.constant 0 : index
      %c0_15 = arith.constant 0 : index
      %20 = vector.load %arg10[%c0_14, %c0_15] : memref<1x1xf32, #tpu.memory_space<vmem>>, vector<1x1xf32>
      tpu.vector_store %arg10[%c0_14, %c0_15], %19 {strides = array<i32>} : memref<1x1xf32, #tpu.memory_space<vmem>>, vector<1x1xf32>,
    } else {
    }
    %5 = arith.cmpi sge, %arg1, %arg0 : i32
    %6 = arith.extui %5 : i1 to i32
    %c0_i32_2 = arith.constant 0 : i32
    %7 = arith.cmpi ne, %6, %c0_i32_2 : i32
    scf.if %7 {
      %c0 = arith.constant 0 : index
      %c0_6 = arith.constant 0 : index
      %13 = vector.load %arg3[%c0, %c0_6] : memref<256x32xf32, #tpu.memory_space<vmem>>, vector<256x32xf32>
      %cst = arith.constant dense<0.000000e+00> : vector<256x256xf32>
      %14 = tpu.matmul %13, %13, %cst {dimension_numbers = #tpu.dot_dimension_numbers<[1], [1], [0], [0], [0, 0, 1, 0], [], []>} : vector<256x32xf32>, vector<256x32xf32>, vector<256x256xf32> -> vector<256x256xf32>
      %c0_7 = arith.constant 0 : index
      %c0_8 = arith.constant 0 : index
      %15 = vector.load %arg4[%c0_7, %c0_8] : memref<256x1xi32, #tpu.memory_space<vmem>>, vector<256x1xi32>
      %c0_9 = arith.constant 0 : index
      %c0_10 = arith.constant 0 : index
      %16 = vector.load %arg5[%c0_9, %c0_10] : memref<1x256xi32, #tpu.memory_space<vmem>>, vector<1x256xi32>
      %17 = vector.broadcast %15 : vector<256x1xi32> to vector<256x256xi32>
      %18 = vector.broadcast %16 : vector<1x256xi32> to vector<256x256xi32>
      %19 = arith.cmpi eq, %17, %18 : vector<256x256xi32>
      %20 = tpu.iota {dimensions = array<i32: 0>} : vector<256x256xi32>
      %c0_i32_11 = arith.constant 0 : i32
      %21 = vector.broadcast %c0_i32_11 : i32 to vector<256x256xi32>
      %22 = arith.addi %20, %21 : vector<256x256xi32>
      %23 = tpu.iota {dimensions = array<i32: 1>} : vector<256x256xi32>
      %c0_i32_12 = arith.constant 0 : i32
      %24 = vector.broadcast %c0_i32_12 : i32 to vector<256x256xi32>
      %25 = arith.addi %23, %24 : vector<256x256xi32>
      %26 = arith.cmpi sgt, %25, %22 : vector<256x256xi32>
      %c256_i32 = arith.constant 256 : i32
      %27 = vector.broadcast %c256_i32 : i32 to vector<256x256xi32>
      %28 = arith.cmpi slt, %22, %27 : vector<256x256xi32>
      %c256_i32_13 = arith.constant 256 : i32
      %29 = vector.broadcast %c256_i32_13 : i32 to vector<256x256xi32>
      %30 = arith.cmpi slt, %25, %29 : vector<256x256xi32>
      %31 = arith.andi %28, %30 : vector<256x256xi1>
      %32 = arith.andi %26, %31 : vector<256x256xi1>
      %cst_14 = arith.constant 0.000000e+00 : f32
      %33 = vector.broadcast %cst_14 : f32 to vector<256x256xf32>
      %34 = arith.subf %33, %14 : vector<256x256xf32>
      %cst_15 = arith.constant 1.000000e+00 : f32
      %35 = vector.broadcast %cst_15 : f32 to vector<256x256xf32>
      %36 = arith.addf %34, %35 : vector<256x256xf32>
      %cst_16 = arith.constant 8.000000e-01 : f32
      %37 = vector.broadcast %cst_16 : f32 to vector<256x256xf32>
      %38 = arith.addf %36, %37 : vector<256x256xf32>
      %cst_17 = arith.constant 0.000000e+00 : f32
      %39 = vector.broadcast %cst_17 : f32 to vector<256x256xf32>
      %40 = arith.maximumf %38, %39 : vector<256x256xf32>
      %cst_18 = arith.constant 8.000000e-01 : f32
      %41 = vector.broadcast %cst_18 : f32 to vector<256x256xf32>
      %42 = arith.addf %14, %41 : vector<256x256xf32>
      %cst_19 = arith.constant 0.000000e+00 : f32
      %43 = vector.broadcast %cst_19 : f32 to vector<256x256xf32>
      %44 = arith.maximumf %42, %43 : vector<256x256xf32>
      %cst_20 = arith.constant 0.000000e+00 : f32
      %45 = vector.broadcast %cst_20 : f32 to vector<256x256xf32>
      %46 = arith.subf %45, %40 : vector<256x256xf32>
      %cst_21 = arith.constant 2.000000e-01 : f32
      %47 = vector.broadcast %cst_21 : f32 to vector<256x256xf32>
      %48 = arith.subf %14, %47 : vector<256x256xf32>
      %49 = arith.mulf %46, %48 : vector<256x256xf32>
      %cst_22 = arith.constant 8.000000e+01 : f32
      %50 = vector.broadcast %cst_22 : f32 to vector<256x256xf32>
      %51 = arith.mulf %49, %50 : vector<256x256xf32>
      %cst_23 = arith.constant 8.000000e-01 : f32
      %52 = vector.broadcast %cst_23 : f32 to vector<256x256xf32>
      %53 = arith.subf %14, %52 : vector<256x256xf32>
      %54 = arith.mulf %44, %53 : vector<256x256xf32>
      %cst_24 = arith.constant 8.000000e+01 : f32
      %55 = vector.broadcast %cst_24 : f32 to vector<256x256xf32>
      %56 = arith.mulf %54, %55 : vector<256x256xf32>
      %57 = arith.select %19, %51, %56 : vector<256x256xi1>, vector<256x256xf32>
      %cst_25 = arith.constant -1.000000e+30 : f32
      %58 = vector.broadcast %cst_25 : f32 to vector<256x256xf32>
      %59 = arith.select %32, %57, %58 : vector<256x256xi1>, vector<256x256xf32>
      %cst_26 = arith.constant -1.000000e+30 : f32
      %60 = vector.broadcast %cst_26 : f32 to vector<256x256xf32>
      %61 = arith.select %19, %59, %60 : vector<256x256xi1>, vector<256x256xf32>
      %cst_27 = arith.constant dense<0xFF800000> : vector<256xf32>
      %62 = vector.multi_reduction <maximumf>, %61, %cst_27 [1] : vector<256x256xf32> to vector<256xf32>
      %63 = vector.shape_cast %62 : vector<256xf32> to vector<256x1xf32>
      %cst_28 = arith.constant dense<0xFF800000> : vector<1xf32>
      %64 = vector.multi_reduction <maximumf>, %63, %cst_28 [0] : vector<256x1xf32> to vector<1xf32>
      %65 = vector.shape_cast %64 : vector<1xf32> to vector<1x1xf32>
      %cst_29 = arith.constant -1.000000e+30 : f32
      %66 = vector.broadcast %cst_29 : f32 to vector<256x256xf32>
      %67 = arith.select %19, %66, %59 : vector<256x256xi1>, vector<256x256xf32>
      %cst_30 = arith.constant dense<0xFF800000> : vector<256xf32>
      %68 = vector.multi_reduction <maximumf>, %67, %cst_30 [1] : vector<256x256xf32> to vector<256xf32>
      %69 = vector.shape_cast %68 : vector<256xf32> to vector<256x1xf32>
      %cst_31 = arith.constant dense<0xFF800000> : vector<1xf32>
      %70 = vector.multi_reduction <maximumf>, %69, %cst_31 [0] : vector<256x1xf32> to vector<1xf32>
      %71 = vector.shape_cast %70 : vector<1xf32> to vector<1x1xf32>
      %c0_32 = arith.constant 0 : index
      %c0_33 = arith.constant 0 : index
      %72 = vector.load %arg7[%c0_32, %c0_33] : memref<1x1xf32, #tpu.memory_space<vmem>>, vector<1x1xf32>
      %73 = arith.maximumf %72, %65 : vector<1x1xf32>
      %c0_34 = arith.constant 0 : index
      %c0_35 = arith.constant 0 : index
      %74 = vector.load %arg9[%c0_34, %c0_35] : memref<1x1xf32, #tpu.memory_space<vmem>>, vector<1x1xf32>
      %75 = arith.maximumf %74, %71 : vector<1x1xf32>
      %76 = vector.shape_cast %73 : vector<1x1xf32> to vector<1x1xf32>
      %77 = vector.broadcast %76 : vector<1x1xf32> to vector<256x256xf32>
      %78 = vector.shape_cast %75 : vector<1x1xf32> to vector<1x1xf32>
      %79 = vector.broadcast %78 : vector<1x1xf32> to vector<256x256xf32>
      %80 = arith.select %19, %77, %79 : vector<256x256xi1>, vector<256x256xf32>
      %81 = arith.subf %57, %80 : vector<256x256xf32>
      %cst_36 = arith.constant -1.000000e+30 : f32
      %82 = vector.broadcast %cst_36 : f32 to vector<256x256xf32>
      %83 = arith.select %32, %81, %82 : vector<256x256xi1>, vector<256x256xf32>
      %84 = math.exp %83 : vector<256x256xf32>
      %cst_37 = arith.constant dense<0.000000e+00> : vector<256xf32>
      %85 = vector.multi_reduction <add>, %84, %cst_37 [1] : vector<256x256xf32> to vector<256xf32>
      %86 = vector.shape_cast %85 : vector<256xf32> to vector<256x1xf32>
      %cst_38 = arith.constant dense<0.000000e+00> : vector<1xf32>
      %87 = vector.multi_reduction <add>, %86, %cst_38 [0] : vector<256x1xf32> to vector<1xf32>
      %88 = vector.shape_cast %87 : vector<1xf32> to vector<1x1xf32>
      %cst_39 = arith.constant 0.000000e+00 : f32
      %89 = vector.broadcast %cst_39 : f32 to vector<256x256xf32>
      %90 = arith.select %19, %84, %89 : vector<256x256xi1>, vector<256x256xf32>
      %cst_40 = arith.constant dense<0.000000e+00> : vector<256xf32>
      %91 = vector.multi_reduction <add>, %90, %cst_40 [1] : vector<256x256xf32> to vector<256xf32>
      %92 = vector.shape_cast %91 : vector<256xf32> to vector<256x1xf32>
      %cst_41 = arith.constant dense<0.000000e+00> : vector<1xf32>
      %93 = vector.multi_reduction <add>, %92, %cst_41 [0] : vector<256x1xf32> to vector<1xf32>
      %94 = vector.shape_cast %93 : vector<1xf32> to vector<1x1xf32>
      %95 = arith.subf %88, %94 : vector<1x1xf32>
      %c0_42 = arith.constant 0 : index
      %c0_43 = arith.constant 0 : index
      %96 = vector.load %arg8[%c0_42, %c0_43] : memref<1x1xf32, #tpu.memory_space<vmem>>, vector<1x1xf32>
      %c0_44 = arith.constant 0 : index
      %c0_45 = arith.constant 0 : index
      %97 = vector.load %arg7[%c0_44, %c0_45] : memref<1x1xf32, #tpu.memory_space<vmem>>, vector<1x1xf32>
      %98 = arith.subf %97, %73 : vector<1x1xf32>
      %99 = math.exp %98 : vector<1x1xf32>
      %100 = arith.mulf %96, %99 : vector<1x1xf32>
      %101 = arith.addf %100, %94 : vector<1x1xf32>
      %c0_46 = arith.constant 0 : index
      %c0_47 = arith.constant 0 : index
      %102 = vector.load %arg8[%c0_46, %c0_47] : memref<1x1xf32, #tpu.memory_space<vmem>>, vector<1x1xf32>
      tpu.vector_store %arg8[%c0_46, %c0_47], %101 {strides = array<i32>} : memref<1x1xf32, #tpu.memory_space<vmem>>, vector<1x1xf32>,
      %c0_48 = arith.constant 0 : index
      %c0_49 = arith.constant 0 : index
      %103 = vector.load %arg10[%c0_48, %c0_49] : memref<1x1xf32, #tpu.memory_space<vmem>>, vector<1x1xf32>
      %c0_50 = arith.constant 0 : index
      %c0_51 = arith.constant 0 : index
      %104 = vector.load %arg9[%c0_50, %c0_51] : memref<1x1xf32, #tpu.memory_space<vmem>>, vector<1x1xf32>
      %105 = arith.subf %104, %75 : vector<1x1xf32>
      %106 = math.exp %105 : vector<1x1xf32>
      %107 = arith.mulf %103, %106 : vector<1x1xf32>
      %108 = arith.addf %107, %95 : vector<1x1xf32>
      %c0_52 = arith.constant 0 : index
      %c0_53 = arith.constant 0 : index
      %109 = vector.load %arg10[%c0_52, %c0_53] : memref<1x1xf32, #tpu.memory_space<vmem>>, vector<1x1xf32>
      tpu.vector_store %arg10[%c0_52, %c0_53], %108 {strides = array<i32>} : memref<1x1xf32, #tpu.memory_space<vmem>>, vector<1x1xf32>,
      %c0_54 = arith.constant 0 : index
      %c0_55 = arith.constant 0 : index
      %110 = vector.load %arg7[%c0_54, %c0_55] : memref<1x1xf32, #tpu.memory_space<vmem>>, vector<1x1xf32>
      tpu.vector_store %arg7[%c0_54, %c0_55], %73 {strides = array<i32>} : memref<1x1xf32, #tpu.memory_space<vmem>>, vector<1x1xf32>,
      %c0_56 = arith.constant 0 : index
      %c0_57 = arith.constant 0 : index
      %111 = vector.load %arg9[%c0_56, %c0_57] : memref<1x1xf32, #tpu.memory_space<vmem>>, vector<1x1xf32>
      tpu.vector_store %arg9[%c0_56, %c0_57], %75 {strides = array<i32>} : memref<1x1xf32, #tpu.memory_space<vmem>>, vector<1x1xf32>,
    } else {
    }
    %c0_i32_3 = arith.constant 0 : i32
    %8 = arith.cmpi eq, %arg0, %c0_i32_3 : i32
    %c0_i32_4 = arith.constant 0 : i32
    %9 = arith.cmpi eq, %arg1, %c0_i32_4 : i32
    %10 = arith.andi %8, %9 : i1
    %11 = arith.extui %10 : i1 to i32
    %c0_i32_5 = arith.constant 0 : i32
    %12 = arith.cmpi ne, %11, %c0_i32_5 : i32
    scf.if %12 {
      %c0 = arith.constant 0 : index
      %c0_6 = arith.constant 0 : index
      %13 = vector.load %arg7[%c0, %c0_6] : memref<1x1xf32, #tpu.memory_space<vmem>>, vector<1x1xf32>
      %c0_7 = arith.constant 0 : index
      %c0_8 = arith.constant 0 : index
      %14 = vector.load %arg8[%c0_7, %c0_8] : memref<1x1xf32, #tpu.memory_space<vmem>>, vector<1x1xf32>
      %15 = math.log %14 : vector<1x1xf32>
      %16 = arith.addf %13, %15 : vector<1x1xf32>
      %c0_9 = arith.constant 0 : index
      %c0_10 = arith.constant 0 : index
      %17 = vector.load %arg9[%c0_9, %c0_10] : memref<1x1xf32, #tpu.memory_space<vmem>>, vector<1x1xf32>
      %c0_11 = arith.constant 0 : index
      %c0_12 = arith.constant 0 : index
      %18 = vector.load %arg10[%c0_11, %c0_12] : memref<1x1xf32, #tpu.memory_space<vmem>>, vector<1x1xf32>
      %19 = math.log %18 : vector<1x1xf32>
      %20 = arith.addf %17, %19 : vector<1x1xf32>
      %21 = arith.addf %16, %20 : vector<1x1xf32>
      %cst = arith.constant 0.000000e+00 : f32
      %22 = vector.broadcast %cst : f32 to vector<1x1xf32>
      %23 = arith.maximumf %21, %22 : vector<1x1xf32>
      %24 = math.absf %21 : vector<1x1xf32>
      %cst_13 = arith.constant 0.000000e+00 : f32
      %25 = vector.broadcast %cst_13 : f32 to vector<1x1xf32>
      %26 = arith.subf %25, %24 : vector<1x1xf32>
      %27 = math.exp %26 : vector<1x1xf32>
      %28 = math.log1p %27 : vector<1x1xf32>
      %29 = arith.addf %23, %28 : vector<1x1xf32>
      %cst_14 = arith.constant 3.200000e+01 : f32
      %30 = vector.broadcast %cst_14 : f32 to vector<1x1xf32>
      %31 = arith.divf %29, %30 : vector<1x1xf32>
      %cst_15 = arith.constant 0.000000e+00 : f32
      %32 = vector.broadcast %cst_15 : f32 to vector<1x1xf32>
      %33 = arith.maximumf %31, %32 : vector<1x1xf32>
      %cst_16 = arith.constant 1.000000e+00 : f32
      %34 = vector.broadcast %cst_16 : f32 to vector<1x1xf32>
      %35 = arith.mulf %34, %33 : vector<1x1xf32>
      %cst_17 = arith.constant 2.560000e+02 : f32
      %36 = vector.broadcast %cst_17 : f32 to vector<1x1xf32>
      %37 = arith.divf %35, %36 : vector<1x1xf32>
      %c0_18 = arith.constant 0 : index
      %c0_19 = arith.constant 0 : index
      %38 = memref.load %arg2[%c0_18, %c0_19] : memref<1x1xf32, #tpu.memory_space<smem>>
      %39 = vector.broadcast %38 : f32 to vector<1x1xf32>
      %40 = arith.addf %37, %39 : vector<1x1xf32>
      %c0_20 = arith.constant 0 : index
      %c0_21 = arith.constant 0 : index
      %41 = vector.load %arg6[%c0_20, %c0_21] : memref<1x1xf32, #tpu.memory_space<vmem>>, vector<1x1xf32>
      tpu.vector_store %arg6[%c0_20, %c0_21], %40 {strides = array<i32>} : memref<1x1xf32, #tpu.memory_space<vmem>>, vector<1x1xf32>,
    } else {
    }
    return
  }
  func.func @transform_0(%arg0: i32, %arg1: i32) -> (i32, i32) {
    %c0_i32 = arith.constant 0 : i32
    %c0_i32_0 = arith.constant 0 : i32
    %c0_i32_1 = arith.constant 0 : i32
    return %c0_i32, %c0_i32_0 : i32, i32
  }
  func.func @transform_1(%arg0: i32, %arg1: i32) -> (i32, i32) {
    %c0_i32 = arith.constant 0 : i32
    %c0_i32_0 = arith.constant 0 : i32
    %c0_i32_1 = arith.constant 0 : i32
    return %c0_i32, %c0_i32_0 : i32, i32
  }
  func.func @transform_2(%arg0: i32, %arg1: i32) -> (i32, i32) {
    %c0_i32 = arith.constant 0 : i32
    %c0_i32_0 = arith.constant 0 : i32
    return %arg0, %c0_i32 : i32, i32
  }
  func.func @transform_3(%arg0: i32, %arg1: i32) -> (i32, i32) {
    %c0_i32 = arith.constant 0 : i32
    %c0_i32_0 = arith.constant 0 : i32
    return %c0_i32, %arg1 : i32, i32
  }
  func.func @transform_4(%arg0: i32, %arg1: i32) -> (i32, i32) {
    %c0_i32 = arith.constant 0 : i32
    %c0_i32_0 = arith.constant 0 : i32
    %c0_i32_1 = arith.constant 0 : i32
    return %c0_i32, %c0_i32_0 : i32, i32
  }
}

</mosaic_0001>

<bundles_post_ra>
// kernel: tpu_custom_call.1
= control target key start
LH: loop header
LB: loop body
LE: loop exit
PB: predicated region body
PF: predicated region fallthrough
CT: control target
= control target key end

     0   :  { %vm66_vm0 = vcmask 261120   ;;  %v3470_v9 = vmov 0   ;;  %s6385_s0 = inlined_call_operand.<no memory space> [shape: f32[1,1], index: 0, kind: input, shape index: {}]   ;;  %s6386_s1 = inlined_call_operand.vmem [shape: f32[256,32], index: 1, kind: input, shape index: {}]   ;;  %s6387_s2 = inlined_call_operand.vmem [shape: s32[256,1], index: 2, kind: input, shape index: {}]   ;;  %s6388_s3 = inlined_call_operand.vmem [shape: s32[1,256], index: 3, kind: input, shape index: {}]   ;;  %s6389_s4 = inlined_call_operand.hbm [shape: f32[1,1], index: 4, kind: output, shape index: {}]  }
   0x1   :  { %v3502_v0 = vld [vmem:[%s6386_s1 + $0x80] sm:$0xff]  ;;  %v3507_v1 = vld [vmem:[%s6386_s1 + $0x88] sm:$0xff]  ;;  %vm3518_vm1 = vmpackc.low %vm66_vm0, %vm66_vm0  ;;  %3337 = vset.pattern.permute.xlu1 %v3470_v9  ;;  %3336 = vset.pattern.permute.xlu0 %v3470_v9 }
   0x2   :  { %v3512_v2 = vld [vmem:[%s6386_s1] sm:$0xff]  ;;  %v3268_v3 = vpack.c.bf16 %v3507_v1, %v3502_v0  ;;  %v3525_v5 = vld [vmem:[%s6386_s1 + $0x8] sm:$0xff]  ;;  %v3530_v6 = vld [vmem:[%s6386_s1 + $0x90] sm:$0xff]  ;;  %3236 = vmatprep.mubr.msk.f32.mxu1 %vm66_vm0, %v3502_v0 }
   0x3   :  { %3204 = vmatprep.mubr.msk.f32.mxu0 %vm66_vm0, %v3512_v2  ;;  %v3271_v7 = vpack.c.bf16 %v3525_v5, %v3512_v2  ;;  %v3541_v8 = vld [vmem:[%s6386_s1 + $0x98] sm:$0xff]  ;;  %v3560_v11 = vld [vmem:[%s6386_s1 + $0x10] sm:$0xff]  ;;  %v3570_v13 = vld [vmem:[%s6386_s1 + $0xa0] sm:$0xff] }
   0x4   :  { %3270 = vmatprep.subr.msk.bf16.mxu0 %vm3518_vm1, %v3268_v3  ;;  %3316 = vmatprep.subr.msk.bf16.mxu1 %vm3518_vm1, %v3268_v3  ;;  %v3274_v10 = vpack.c.bf16 %v3541_v8, %v3530_v6  ;;  %v3565_v12 = vld [vmem:[%s6386_s1 + $0x18] sm:$0xff]  ;;  %v3575_v14 = vld [vmem:[%s6386_s1 + $0xa8] sm:$0xff]  ;;  %v422_v17 = vld [vmem:[%s6387_s2 + $0x10] sm:$0xff] }
   0x5   :  { %3273 = vmatpush3.bf16.xpose.msk.msra.mxu0 %vm3518_vm1, %v3271_v7  ;;  %3324 = vmatpush3.bf16.xpose.msk.msra.mxu1 %vm3518_vm1, %v3271_v7  ;;  %v3277_v15 = vpack.c.bf16 %v3565_v12, %v3560_v11  ;;  %v3280_v16 = vpack.c.bf16 %v3575_v14, %v3570_v13  ;;  %v420_v18 = vld [vmem:[%s6387_s2] sm:$0xff]  ;;  %v3603_v20 = vld [vmem:[%s6386_s1 + $0x28] sm:$0xff]  ;;  %v3608_v21 = vld [vmem:[%s6386_s1 + $0xb0] sm:$0xff] }
   0x6   :  { %3276 = vmatprep.subr.msk.bf16.mxu0 %vm3518_vm1, %v3274_v10  ;;  %3317 = vmatprep.subr.msk.bf16.mxu1 %vm3518_vm1, %v3274_v10  ;;  %v3598_v19 = vld [vmem:[%s6386_s1 + $0x20] sm:$0xff]  ;;  %v3613_v22 = vld [vmem:[%s6386_s1 + $0xb8] sm:$0xff]  ;;  %v421_v24 = vld [vmem:[%s6387_s2 + $0x8] sm:$0xff] }
   0x7   :  { %460 = vperm.xlu1 %3337, %v422_v17   ;;  %454 = vperm.xlu0 %3336, %v420_v18   ;;  %v423_v23 = vld [vmem:[%s6387_s2 + $0x18] sm:$0xff]  ;;  %v3283_v25 = vpack.c.bf16 %v3603_v20, %v3598_v19  ;;  %v3286_v26 = vpack.c.bf16 %v3613_v22, %v3608_v21  ;;  %v425_v27 = vld [vmem:[%s6387_s2 + $0x28] sm:$0xff]  ;;  %v424_v28 = vld [vmem:[%s6387_s2 + $0x20] sm:$0xff] }
   0x8   :  { %v3642_v29 = vld [vmem:[%s6386_s1 + $0x30] sm:$0xff]  ;;  %v3647_v30 = vld [vmem:[%s6386_s1 + $0x38] sm:$0xff]  ;;  %v3652_v31 = vld [vmem:[%s6386_s1 + $0xc0] sm:$0xff] }
   0x9   :  { %v3657_v32 = vld [vmem:[%s6386_s1 + $0xc8] sm:$0xff] }
   0xb   :  { %463 = vperm.xlu1 %3337, %v423_v23   ;;  %457 = vperm.xlu0 %3336, %v421_v24  }
   0xd   :  { %3279 = vmatpush3.bf16.xpose.msk.msra.mxu0 %vm3518_vm1, %v3277_v15  ;;  %3325 = vmatpush3.bf16.xpose.msk.msra.mxu1 %vm3518_vm1, %v3277_v15 }
   0xe   :  { %3282 = vmatprep.subr.msk.bf16.mxu0 %vm3518_vm1, %v3280_v16  ;;  %3318 = vmatprep.subr.msk.bf16.mxu1 %vm3518_vm1, %v3280_v16 }
   0xf   :  { %469 = vperm.xlu1 %3337, %v425_v27   ;;  %466 = vperm.xlu0 %3336, %v424_v28  }
  0x15   :  { %3285 = vmatpush3.bf16.xpose.msk.msra.mxu0 %vm3518_vm1, %v3283_v25  ;;  %3326 = vmatpush3.bf16.xpose.msk.msra.mxu1 %vm3518_vm1, %v3283_v25 }
  0x16   :  { %3288 = vmatprep.subr.msk.bf16.mxu0 %vm3518_vm1, %v3286_v26  ;;  %3319 = vmatprep.subr.msk.bf16.mxu1 %vm3518_vm1, %v3286_v26 }
  0x17   :  { %10 = vsyncpa [#allocation8], 0  ;;  %v427_v33 = vld [vmem:[%s6387_s2 + $0x38] sm:$0xff]  ;;  %v426_v34 = vld [vmem:[%s6387_s2 + $0x30] sm:$0xff]  ;;  %v3289_v35 = vpack.c.bf16 %v3647_v30, %v3642_v29  ;;  %v3292_v36 = vpack.c.bf16 %v3657_v32, %v3652_v31  ;;  %s3473_s14 = smov [#allocation7]  }
  0x18   :  { %475 = vperm.xlu1 %3337, %v427_v33   ;;  %472 = vperm.xlu0 %3336, %v426_v34   ;;  %v429_v37 = vld [vmem:[%s6387_s2 + $0x48] sm:$0xff]  ;;  %v428_v38 = vld [vmem:[%s6387_s2 + $0x40] sm:$0xff]  ;;  %v3696_v41 = vld [vmem:[%s6386_s1 + $0xd0] sm:$0xff]  ;;  %s2972_s15 = sshll.u32 %s3473_s14, 4  ;;  %s2973_s15 = int_to_ptr.vmem [resolvable:$true] %s2972_s15 }
  0x19   :  { %v3686_v39 = vld [vmem:[%s6386_s1 + $0x40] sm:$0xff]  ;;  %v3691_v40 = vld [vmem:[%s6386_s1 + $0x48] sm:$0xff]  ;;  %v3701_v42 = vld [vmem:[%s6386_s1 + $0xd8] sm:$0xff]  ;;  %s3446_s16 = scalar_lea.vmem %s2973_s15, 16  ;;  %s3450_s17 = scalar_lea.vmem %s2973_s15, 32 }
  0x1a   :  { %v431_v43 = vld [vmem:[%s6387_s2 + $0x58] sm:$0xff]  ;;  %v430_v44 = vld [vmem:[%s6387_s2 + $0x50] sm:$0xff]  ;;  %v3295_v45 = vpack.c.bf16 %v3691_v40, %v3686_v39  ;;  %v3298_v46 = vpack.c.bf16 %v3701_v42, %v3696_v41  ;;  %v433_v47 = vld [vmem:[%s6387_s2 + $0x68] sm:$0xff]  ;;  %p3447_p0 = scmp.ne.s32.totalorder %s2973_s15, %s3446_s16  ;;  %p3451_p1 = scmp.lt.s32.totalorder %s2973_s15, %s2973_s15 }
  0x1b   :  { %v432_v48 = vld [vmem:[%s6387_s2 + $0x60] sm:$0xff]  ;;  %v3730_v49 = vld [vmem:[%s6386_s1 + $0x50] sm:$0xff]  ;;  %v3735_v50 = vld [vmem:[%s6386_s1 + $0x58] sm:$0xff]  ;;  %p3452_p2 = scmp.lt.s32.totalorder %s3450_s17, %s3446_s16 }
  0x1c   :  { %481 = vperm.xlu1 %3337, %v429_v37   ;;  %478 = vperm.xlu0 %3336, %v428_v38   ;;  %v3740_v51 = vld [vmem:[%s6386_s1 + $0xe0] sm:$0xff]  ;;  %v3745_v52 = vld [vmem:[%s6386_s1 + $0xe8] sm:$0xff]  ;;  %v435_v53 = vld [vmem:[%s6387_s2 + $0x78] sm:$0xff]  ;;  %v3301_v55 = vpack.c.bf16 %v3735_v50, %v3730_v49 }
  0x1d   :  { %3291 = vmatpush3.bf16.xpose.msk.msra.mxu0 %vm3518_vm1, %v3289_v35  ;;  %3327 = vmatpush3.bf16.xpose.msk.msra.mxu1 %vm3518_vm1, %v3289_v35  ;;  %v434_v54 = vld [vmem:[%s6387_s2 + $0x70] sm:$0xff]  ;;  %v3304_v56 = vpack.c.bf16 %v3745_v52, %v3740_v51  ;;  %v437_v57 = vld [vmem:[%s6387_s2 + $0x88] sm:$0xff]  ;;  %v436_v58 = vld [vmem:[%s6387_s2 + $0x80] sm:$0xff]  ;;  %p3453_p3 = por %p3452_p2, %p3451_p1 }
  0x1e   :  { %3294 = vmatprep.subr.msk.bf16.mxu0 %vm3518_vm1, %v3292_v36  ;;  %3320 = vmatprep.subr.msk.bf16.mxu1 %vm3518_vm1, %v3292_v36  ;;  %v3774_v59 = vld [vmem:[%s6386_s1 + $0x60] sm:$0xff]  ;;  %v3779_v60 = vld [vmem:[%s6386_s1 + $0x68] sm:$0xff]  ;;  %v3784_v61 = vld [vmem:[%s6386_s1 + $0xf0] sm:$0xff] }
  0x1f   :  { %v3789_v62 = vld [vmem:[%s6386_s1 + $0xf8] sm:$0xff]  ;;  %v438_v3 = vld [vmem:[%s6387_s2 + $0x90] sm:$0xff]  ;;  %v3307_v7 = vpack.c.bf16 %v3779_v60, %v3774_v59  ;;  %v441_v10 = vld [vmem:[%s6387_s2 + $0xa8] sm:$0xff]  ;;  %p3454_p4 = pnand %p3453_p3, %p3447_p0 }
  0x20   :  { %487 = vperm.xlu1 %3337, %v431_v43   ;;  %484 = vperm.xlu0 %3336, %v430_v44   ;;  %v439_v63 = vld [vmem:[%s6387_s2 + $0x98] sm:$0xff]  ;;  %v3310_v9 = vpack.c.bf16 %v3789_v62, %v3784_v61  ;;  %v440_v15 = vld [vmem:[%s6387_s2 + $0xa0] sm:$0xff]  ;;  %v3818_v16 = vld [vmem:[%s6386_s1 + $0x70] sm:$0xff] }
  0x21   :  { %v3823_v17 = vld [vmem:[%s6386_s1 + $0x78] sm:$0xff]  ;;  %v442_v23 = vld [vmem:[%s6387_s2 + $0xb0] sm:$0xff]  ;;  %v445_v25 = vld [vmem:[%s6387_s2 + $0xc8] sm:$0xff] }
  0x22   :  { %v443_v18 = vld [vmem:[%s6387_s2 + $0xb8] sm:$0xff]  ;;  %v3313_v24 = vpack.c.bf16 %v3823_v17, %v3818_v16  ;;  %v444_v26 = vld [vmem:[%s6387_s2 + $0xc0] sm:$0xff]  ;;  %v446_v28 = vld [vmem:[%s6387_s2 + $0xd0] sm:$0xff] }
  0x23   :  { %v447_v27 = vld [vmem:[%s6387_s2 + $0xd8] sm:$0xff]  ;;  %v449_v4 = vld [vmem:[%s6387_s2 + $0xe8] sm:$0xff]  ;;  %v448_v33 = vld [vmem:[%s6387_s2 + $0xe0] sm:$0xff] }
  0x24   :  { %493 = vperm.xlu1 %3337, %v433_v47   ;;  %490 = vperm.xlu0 %3336, %v432_v48  }
  0x25   :  { %3297 = vmatpush3.bf16.xpose.msk.msra.mxu0 %vm3518_vm1, %v3295_v45  ;;  %3328 = vmatpush3.bf16.xpose.msk.msra.mxu1 %vm3518_vm1, %v3295_v45 }
  0x26   :  { %3300 = vmatprep.subr.msk.bf16.mxu0 %vm3518_vm1, %v3298_v46  ;;  %3321 = vmatprep.subr.msk.bf16.mxu1 %vm3518_vm1, %v3298_v46 }
  0x28   :  { %499 = vperm.xlu1 %3337, %v435_v53   ;;  %496 = vperm.xlu0 %3336, %v434_v54  }
  0x2c   :  { %505 = vperm.xlu1 %3337, %v437_v57   ;;  %502 = vperm.xlu0 %3336, %v436_v58  }
  0x2d   :  { %3303 = vmatpush3.bf16.xpose.msk.msra.mxu0 %vm3518_vm1, %v3301_v55  ;;  %3329 = vmatpush3.bf16.xpose.msk.msra.mxu1 %vm3518_vm1, %v3301_v55 }
  0x2e   :  { %3306 = vmatprep.subr.msk.bf16.mxu0 %vm3518_vm1, %v3304_v56  ;;  %3322 = vmatprep.subr.msk.bf16.mxu1 %vm3518_vm1, %v3304_v56 }
  0x30   :  { %511 = vperm.xlu1 %3337, %v439_v63   ;;  %508 = vperm.xlu0 %3336, %v438_v3  }
  0x34   :  { %517 = vperm.xlu1 %3337, %v441_v10   ;;  %514 = vperm.xlu0 %3336, %v440_v15  }
  0x35   :  { %3309 = vmatpush3.bf16.xpose.msk.msra.mxu0 %vm3518_vm1, %v3307_v7  ;;  %3330 = vmatpush3.bf16.xpose.msk.msra.mxu1 %vm3518_vm1, %v3307_v7 }
  0x36   :  { %3312 = vmatprep.subr.msk.bf16.mxu0 %vm3518_vm1, %v3310_v9  ;;  %3323 = vmatprep.subr.msk.bf16.mxu1 %vm3518_vm1, %v3310_v9 }
  0x38   :  { %523 = vperm.xlu1 %3337, %v443_v18   ;;  %520 = vperm.xlu0 %3336, %v442_v23  }
  0x3c   :  { %529 = vperm.xlu1 %3337, %v445_v25   ;;  %526 = vperm.xlu0 %3336, %v444_v26  }
  0x3d   :  { %3315 = vmatpush3.bf16.xpose.msk.msra.mxu0 %vm3518_vm1, %v3313_v24  ;;  %3331 = vmatpush3.bf16.xpose.msk.msra.mxu1 %vm3518_vm1, %v3313_v24 }
  0x40   :  { %535 = vperm.xlu1 %3337, %v447_v27   ;;  %532 = vperm.xlu0 %3336, %v446_v28  }
  0x44   :  { %3205 = vmatmul.mubr.msk.f32.vlgmr.msra.gmra.mrb[0].mxu0 %vm66_vm0, %v3512_v2  ;;  %3237 = vmatmul.mubr.msk.f32.vlgmr.msra.gmra.mrb[0].mxu1 %vm66_vm0, %v3502_v0  ;;  %v451_v0 = vld [vmem:[%s6387_s2 + $0xf8] sm:$0xff]  ;;  %v450_v2 = vld [vmem:[%s6387_s2 + $0xf0] sm:$0xff] }
  0x45   :  { %3206 = vmatprep.mubr.msk.f32.mxu0 %vm66_vm0, %v3525_v5  ;;  %3238 = vmatprep.mubr.msk.f32.mxu1 %vm66_vm0, %v3507_v1 }
  0x46   :  { %541 = vperm.xlu1 %3337, %v449_v4   ;;  %538 = vperm.xlu0 %3336, %v448_v33  }
  0x48   :  { %3207 = vmatmul.mubr.msk.f32.gmra.mrb[2].mxu0 %vm66_vm0, %v3525_v5  ;;  %3239 = vmatmul.mubr.msk.f32.gmra.mrb[2].mxu1 %vm66_vm0, %v3507_v1 }
  0x49   :  { %3208 = vmatprep.mubr.msk.f32.mxu0 %vm66_vm0, %v3560_v11  ;;  %3240 = vmatprep.mubr.msk.f32.mxu1 %vm66_vm0, %v3530_v6 }
  0x4a   :  { %547 = vperm.xlu1 %3337, %v451_v0   ;;  %544 = vperm.xlu0 %3336, %v450_v2  }
  0x4c   :  { %3209 = vmatmul.mubr.msk.f32.gmra.mrb[4].mxu0 %vm66_vm0, %v3560_v11  ;;  %3241 = vmatmul.mubr.msk.f32.gmra.mrb[4].mxu1 %vm66_vm0, %v3530_v6 }
  0x4d   :  { %3210 = vmatprep.mubr.msk.f32.mxu0 %vm66_vm0, %v3565_v12  ;;  %3242 = vmatprep.mubr.msk.f32.mxu1 %vm66_vm0, %v3541_v8 }
  0x50   :  { %3211 = vmatmul.mubr.msk.f32.gmra.mrb[6].mxu0 %vm66_vm0, %v3565_v12  ;;  %3243 = vmatmul.mubr.msk.f32.gmra.mrb[6].mxu1 %vm66_vm0, %v3541_v8 }
  0x51   :  { %3212 = vmatprep.mubr.msk.f32.mxu0 %vm66_vm0, %v3598_v19  ;;  %3244 = vmatprep.mubr.msk.f32.mxu1 %vm66_vm0, %v3570_v13 }
  0x54   :  { %3213 = vmatmul.mubr.msk.f32.gmra.mrb[8].mxu0 %vm66_vm0, %v3598_v19  ;;  %3245 = vmatmul.mubr.msk.f32.gmra.mrb[8].mxu1 %vm66_vm0, %v3570_v13 }
  0x55   :  { %3214 = vmatprep.mubr.msk.f32.mxu0 %vm66_vm0, %v3603_v20  ;;  %3246 = vmatprep.mubr.msk.f32.mxu1 %vm66_vm0, %v3575_v14 }
  0x58   :  { %3215 = vmatmul.mubr.msk.f32.gmra.mrb[10].mxu0 %vm66_vm0, %v3603_v20  ;;  %3247 = vmatmul.mubr.msk.f32.gmra.mrb[10].mxu1 %vm66_vm0, %v3575_v14 }
  0x59   :  { %3216 = vmatprep.mubr.msk.f32.mxu0 %vm66_vm0, %v3642_v29  ;;  %3248 = vmatprep.mubr.msk.f32.mxu1 %vm66_vm0, %v3608_v21 }
  0x5c   :  { %3217 = vmatmul.mubr.msk.f32.gmra.mrb[12].mxu0 %vm66_vm0, %v3642_v29  ;;  %3249 = vmatmul.mubr.msk.f32.gmra.mrb[12].mxu1 %vm66_vm0, %v3608_v21 }
  0x5d   :  { %3218 = vmatprep.mubr.msk.f32.mxu0 %vm66_vm0, %v3647_v30  ;;  %3250 = vmatprep.mubr.msk.f32.mxu1 %vm66_vm0, %v3613_v22 }
  0x60   :  { %3219 = vmatmul.mubr.msk.f32.gmra.mrb[14].mxu0 %vm66_vm0, %v3647_v30  ;;  %3251 = vmatmul.mubr.msk.f32.gmra.mrb[14].mxu1 %vm66_vm0, %v3613_v22 }
  0x61   :  { %3220 = vmatprep.mubr.msk.f32.mxu0 %vm66_vm0, %v3686_v39  ;;  %3252 = vmatprep.mubr.msk.f32.mxu1 %vm66_vm0, %v3652_v31 }
  0x64   :  { %3221 = vmatmul.mubr.msk.f32.gmra.mrb[16].mxu0 %vm66_vm0, %v3686_v39  ;;  %3253 = vmatmul.mubr.msk.f32.gmra.mrb[16].mxu1 %vm66_vm0, %v3652_v31  ;;  %v549_v31 = vlaneseq }
  0x65   :  { %3222 = vmatprep.mubr.msk.f32.mxu0 %vm66_vm0, %v3691_v40  ;;  %3254 = vmatprep.mubr.msk.f32.mxu1 %vm66_vm0, %v3657_v32 }
  0x66   :  { %v4022_v46 = vand.u32 127, %v549_v31 }
  0x68   :  { %3223 = vmatmul.mubr.msk.f32.gmra.mrb[18].mxu0 %vm66_vm0, %v3691_v40  ;;  %3255 = vmatmul.mubr.msk.f32.gmra.mrb[18].mxu1 %vm66_vm0, %v3657_v32  ;;  %v4014_v40 = vshrl.u32 %v549_v31, 7  ;;  %6730 = vst [vmem:[#allocation14_spill] sm:$0xff] %v4022_v46 }
  0x69   :  { %3224 = vmatprep.mubr.msk.f32.mxu0 %vm66_vm0, %v3730_v49  ;;  %3256 = vmatprep.mubr.msk.f32.mxu1 %vm66_vm0, %v3696_v41 }
  0x6a   :  { %6727 = vst [vmem:[#allocation11_spill] sm:$0xff] %v4014_v40  ;;  %v4035_v56 = vadd.s32 128, %v4014_v40  ;;  %v4052_v7 = vadd.s32 8, %v4014_v40  ;;  %v4055_v9 = vadd.s32 136, %v4014_v40  ;;  %v4058_v10 = vadd.s32 16, %v4014_v40 }
  0x6b   :  { %v4063_v23 = vadd.s32 144, %v4014_v40  ;;  %v4066_v24 = vadd.s32 24, %v4014_v40  ;;  %v4073_v33 = vadd.s32 152, %v4014_v40  ;;  %vm6473_vm4 = vcmp.gt.s32.totalorder %v4022_v46, %v4014_v40 }
  0x6c   :  { %3225 = vmatmul.mubr.msk.f32.gmra.mrb[20].mxu0 %vm66_vm0, %v3730_v49  ;;  %3257 = vmatmul.mubr.msk.f32.gmra.mrb[20].mxu1 %vm66_vm0, %v3696_v41  ;;  %v4027_v49 = vsub.s32 0, %v4014_v40  ;;  %6732 = vst [vmem:[#allocation16_spill] sm:$0xff] %v4035_v56  ;;  %6735 = vst [vmem:[#allocation19_spill] sm:$0xff] %v4052_v7  ;;  %vm6472_vm6 = vcmp.gt.s32.totalorder %v4022_v46, %v4052_v7 }
  0x6d   :  { %3226 = vmatprep.mubr.msk.f32.mxu0 %vm66_vm0, %v3735_v50  ;;  %3258 = vmatprep.mubr.msk.f32.mxu1 %vm66_vm0, %v3701_v42  ;;  %6736 = vst [vmem:[#allocation20_spill] sm:$0xff] %v4055_v9  ;;  %6737 = vst [vmem:[#allocation21_spill] sm:$0xff] %v4058_v10 }
  0x6e   :  { %6731 = vst [vmem:[#allocation15_spill] sm:$0xff] %v4027_v49  ;;  %6738 = vst [vmem:[#allocation22_spill] sm:$0xff] %v4063_v23 }
  0x6f   :  { %6739 = vst [vmem:[#allocation23_spill] sm:$0xff] %v4066_v24  ;;  %6741 = vst [vmem:[#allocation25_spill] sm:$0xff] %v4073_v33 }
  0x70   :  { %3227 = vmatmul.mubr.msk.f32.gmra.mrb[22].mxu0 %vm66_vm0, %v3735_v50  ;;  %3259 = vmatmul.mubr.msk.f32.gmra.mrb[22].mxu1 %vm66_vm0, %v3701_v42  ;;  %v555_v50 = vsub.s32 1, %v4014_v40 }
  0x71   :  { %3228 = vmatprep.mubr.msk.f32.mxu0 %vm66_vm0, %v3774_v59  ;;  %3260 = vmatprep.mubr.msk.f32.mxu1 %vm66_vm0, %v3740_v51 }
  0x74   :  { %3229 = vmatmul.mubr.msk.f32.gmra.mrb[24].mxu0 %vm66_vm0, %v3774_v59  ;;  %3261 = vmatmul.mubr.msk.f32.gmra.mrb[24].mxu1 %vm66_vm0, %v3740_v51 }
  0x75   :  { %3230 = vmatprep.mubr.msk.f32.mxu0 %vm66_vm0, %v3779_v60  ;;  %3262 = vmatprep.mubr.msk.f32.mxu1 %vm66_vm0, %v3745_v52 }
  0x78   :  { %3231 = vmatmul.mubr.msk.f32.gmra.mrb[26].mxu0 %vm66_vm0, %v3779_v60  ;;  %3263 = vmatmul.mubr.msk.f32.gmra.mrb[26].mxu1 %vm66_vm0, %v3745_v52 }
  0x79   :  { %3232 = vmatprep.mubr.msk.f32.mxu0 %vm66_vm0, %v3818_v16  ;;  %3264 = vmatprep.mubr.msk.f32.mxu1 %vm66_vm0, %v3784_v61 }
  0x7c   :  { %3233 = vmatmul.mubr.msk.f32.gmra.mrb[28].mxu0 %vm66_vm0, %v3818_v16  ;;  %3265 = vmatmul.mubr.msk.f32.gmra.mrb[28].mxu1 %vm66_vm0, %v3784_v61  ;;  %v4043_v61 = vadd.s32 128, %v4022_v46 }
  0x7d   :  { %3234 = vmatprep.mubr.msk.f32.mxu0 %vm66_vm0, %v3823_v17  ;;  %3266 = vmatprep.mubr.msk.f32.mxu1 %vm66_vm0, %v3789_v62 }
  0x7e   :  { %6733 = vst [vmem:[#allocation17_spill] sm:$0xff] %v4043_v61  ;;  %vm6474_vm5 = vcmp.gt.s32.totalorder %v4043_v61, %v4035_v56  ;;  %vm6454_vm10 = vcmp.gt.s32.totalorder %v4043_v61, %v4055_v9 }
  0x80   :  { %3235 = vmatmul.mubr.msk.f32.gmra.mrb[30].mxu0 %vm66_vm0, %v3823_v17  ;;  %3267 = vmatmul.mubr.msk.f32.gmra.mrb[30].mxu1 %vm66_vm0, %v3789_v62  ;;  %v452_v62 = vld [vmem:[%s6388_s3] sm:$0x3] }
  0x86   :  { %v3985_v1 = vpop.permute.xlu0 %454  ;;  %v4001_v29 = vpop.permute.xlu1 %460 }
  0x8a   :  { %v3991_v12 = vpop.permute.xlu0 %457  ;;  %v4018_v42 = vpop.permute.xlu1 %463 }
  0x8b   :  { %6728 = vst [vmem:[#allocation12_spill] sm:$0xff] %v4018_v42 }
  0x8e   :  { %v4005_v32 = vpop.permute.xlu0 %466  ;;  %v4048_v63 = vpop.permute.xlu1 %469 }
  0x8f   :  { %6726 = vst [vmem:[#allocation10_spill] sm:$0xff] %v4005_v32  ;;  %6734 = vst [vmem:[#allocation18_spill] sm:$0xff] %v4048_v63 }
  0x97   :  { %v4020_v45 = vpop.permute.xlu0 %472 }
  0x98   :  { %6729 = vst [vmem:[#allocation13_spill] sm:$0xff] %v4020_v45 }
  0x9b   :  { %v4068_v25 = vpop.permute.xlu0 %478 }
  0x9c   :  { %6740 = vst [vmem:[#allocation24_spill] sm:$0xff] %v4068_v25 }
 0x117   :  { %v229_v5 = vpop.f32.mrb[0].mxu0  ;;  %v325_v6 = vpop.f32.mrb[0].mxu1 }
 0x118   :  { %v3987_v8 = vpop.f32.mrb[1].mxu0  ;;  %v3989_v11 = vpop.f32.mrb[1].mxu1  ;;  %v883_v35 = vsub.f32 0.0, %v229_v5  ;;  %v1139_v57 = vadd.f32 0.8, %v229_v5 }
 0x119   :  { %v884_v36 = vsub.f32 0.0, %v3987_v8  ;;  %v916_v51 = vsub.f32 0.0, %v3989_v11  ;;  %v1140_v3 = vadd.f32 0.8, %v3987_v8  ;;  %v3044_v27 = vadd.f32 -0.2, %v229_v5 }
 0x11a   :  { %v947_v43 = vadd.f32 1.0, %v883_v35  ;;  %v1203_v0 = vmax.f32 %v1139_v57, 0.0  ;;  %v3108_v2 = vadd.f32 -0.8, %v229_v5  ;;  %v3045_v31 = vadd.f32 -0.2, %v3987_v8 }
 0x11b   :  { %v3993_v13 = vpop.f32.mrb[2].mxu0  ;;  %v331_v14 = vpop.f32.mrb[2].mxu1  ;;  %v948_v44 = vadd.f32 1.0, %v884_v36  ;;  %v980_v15 = vadd.f32 1.0, %v916_v51 }
 0x11c   :  { %v3995_v19 = vpop.f32.mrb[3].mxu0  ;;  %v3997_v20 = vpop.f32.mrb[3].mxu1  ;;  %v885_v52 = vsub.f32 0.0, %v3993_v13  ;;  %v1011_v53 = vadd.f32 0.8, %v947_v43  ;;  %v4083_v43 = vrot.slane %v452_v62, %v4027_v49 }
 0x11d   :  { %v1012_v54 = vadd.f32 0.8, %v948_v44  ;;  %v886_v58 = vsub.f32 0.0, %v3995_v19  ;;  %v1141_v6 = vadd.f32 0.8, %v3993_v13  ;;  %v4085_v44 = vrot.slane %v452_v62, %v555_v50 }
 0x11e   :  { %v949_v16 = vadd.f32 1.0, %v885_v52  ;;  %v1075_v26 = vmax.f32 %v1011_v53, 0.0  ;;  %v4091_v53 = vpop.permute.xlu1 %475  ;;  %v3046_v24 = vadd.f32 -0.2, %v3993_v13  ;;  %vm4129_vm2 = vcmp.eq.s32.totalorder %v3985_v1, %v4083_v43 }
 0x11f   :  { %v3999_v21 = vpop.f32.mrb[4].mxu0  ;;  %v337_v22 = vpop.f32.mrb[4].mxu1  ;;  %v1076_v28 = vmax.f32 %v1012_v54, 0.0  ;;  %v950_v14 = vadd.f32 1.0, %v886_v58  ;;  %6743 = vst [vmem:[#allocation27_spill] sm:$0xff] %v4091_v53  ;;  %vm4144_vm3 = vcmp.eq.s32.totalorder %v3985_v1, %v4085_v44  ;;  %vm4230_vm7 = vcmp.eq.s32.totalorder %v3991_v12, %v4083_v43 }
 0x120   :  { %v4003_v30 = vpop.f32.mrb[5].mxu0  ;;  %v4007_v34 = vpop.f32.mrb[5].mxu1  ;;  %v1204_v22 = vmax.f32 %v1140_v3, 0.0  ;;  %v1013_v51 = vadd.f32 0.8, %v949_v16  ;;  %v1267_v54 = vsub.f32 0.0, %v1075_v26  ;;  %vm4236_vm8 = vcmp.eq.s32.totalorder %v3991_v12, %v4085_v44 }
 0x121   :  { %v1268_v57 = vsub.f32 0.0, %v1076_v28  ;;  %v3109_v58 = vadd.f32 -0.8, %v3987_v8  ;;  %v4095_v3 = vadd.f32 0.8, %v3989_v11  ;;  %v887_v50 = vsub.f32 0.0, %v3999_v21  ;;  %v4100_v16 = vpop.permute.xlu0 %484 }
 0x122   :  { %v1014_v49 = vadd.f32 0.8, %v950_v14  ;;  %6745 = vst [vmem:[#allocation29_spill] sm:$0xff] %v4100_v16  ;;  %v4103_v53 = vadd.f32 -0.2, %v3989_v11  ;;  %v918_v8 = vsub.f32 0.0, %v3997_v20  ;;  %v1395_v45 = vmul.f32 %v3044_v27, %v1267_v54 }
 0x123   :  { %v4010_v37 = vpop.f32.mrb[6].mxu0  ;;  %v343_v38 = vpop.f32.mrb[6].mxu1  ;;  %v1588_v25 = vmul.f32 %v3109_v58, %v1204_v22  ;;  %v3110_v26 = vadd.f32 -0.8, %v3993_v13  ;;  %v888_v14 = vsub.f32 0.0, %v4003_v30  ;;  %v1396_v16 = vmul.f32 %v3045_v31, %v1268_v57 }
 0x124   :  { %v4012_v39 = vpop.f32.mrb[7].mxu0  ;;  %v4016_v41 = vpop.f32.mrb[7].mxu1  ;;  %v4080_v38 = vadd.s32 32, %v4014_v40  ;;  %v1236_v22 = vmax.f32 %v4095_v3, 0.0  ;;  %v3141_v58 = vadd.f32 -0.8, %v3989_v11  ;;  %vm4406_vm12 = vcmp.eq.s32.totalorder %v4001_v29, %v4083_v43 }
 0x125   :  { %v1078_v32 = vmax.f32 %v1014_v49, 0.0  ;;  %v982_v27 = vadd.f32 1.0, %v918_v8  ;;  %v4123_v31 = vpop.permute.xlu1 %481  ;;  %v952_v3 = vadd.f32 1.0, %v888_v14  ;;  %v6751_v49 = vmov 0 }
 0x126   :  { %6742 = vst [vmem:[#allocation26_spill] sm:$0xff] %v4080_v38  ;;  %v951_v38 = vadd.f32 1.0, %v887_v50  ;;  %6749 = vst [vmem:[#allocation33_spill] sm:$0xff] %v4123_v31  ;;  %v6752_v49 = vsel %vm4129_vm2, 4294967295, %v6751_v49  ;;  %v1459_v13 = vmul.f32 80.0, %v1395_v45  ;;  %v920_v50 = vsub.f32 0.0, %v4007_v34 }
 0x127   :  { %v4024_v47 = vpop.f32.mrb[8].mxu0  ;;  %v349_v48 = vpop.f32.mrb[8].mxu1  ;;  %6753 = vst [vmem:[#allocation35_spill] sm:$0xff] %v6752_v49  ;;  %v6756_v14 = vmov 0  ;;  %v1046_v45 = vadd.f32 0.8, %v982_v27  ;;  %v4161_v42 = vmul.f32 %v3141_v58, %v1236_v22  ;;  %vm4421_vm14 = vcmp.eq.s32.totalorder %v4001_v29, %v4085_v44 }
 0x128   :  { %v4032_v55 = vpop.f32.mrb[9].mxu0  ;;  %v4038_v59 = vpop.f32.mrb[9].mxu1  ;;  %v1044_v48 = vadd.f32 0.8, %v980_v15  ;;  %v6757_v14 = vsel %vm4144_vm3, 4294967295, %v6756_v14 }
 0x129   :  { %6758 = vst [vmem:[#allocation38_spill] sm:$0xff] %v6757_v14  ;;  %v1016_v31 = vadd.f32 0.8, %v952_v3  ;;  %v4157_v1 = vadd.f32 -0.2, %v3997_v20  ;;  %v4168_v3 = vpop.permute.xlu1 %487 }
 0x12a   :  { %v3143_v27 = vadd.f32 -0.8, %v3997_v20  ;;  %6762 = vst [vmem:[#allocation42_spill] sm:$0xff] %v4168_v3  ;;  %v3113_v3 = vadd.f32 -0.8, %v4003_v30 }
 0x12b   :  { %v4040_v60 = vpop.f32.mrb[10].mxu0  ;;  %v355_v17 = vpop.f32.mrb[10].mxu1  ;;  %v1080_v58 = vmax.f32 %v1016_v31, 0.0  ;;  %v3081_v12 = vadd.f32 -0.2, %v4007_v34 }
 0x12c   :  { %v4060_v18 = vpop.f32.mrb[11].mxu0  ;;  %v4070_v4 = vpop.f32.mrb[11].mxu1  ;;  %v1587_v17 = vmul.f32 %v3108_v2, %v1203_v0  ;;  %v1108_v0 = vmax.f32 %v1044_v48, 0.0  ;;  %v1077_v2 = vmax.f32 %v1013_v51, 0.0  ;;  %v4119_v51 = vmul.f32 80.0, %v1588_v25 }
 0x12d   :  { %v1460_v25 = vmul.f32 80.0, %v1396_v16  ;;  %v1143_v16 = vadd.f32 0.8, %v3999_v21  ;;  %v1148_v56 = vadd.f32 0.8, %v4032_v55 }
 0x12e   :  { %v4115_v63 = vmul.f32 80.0, %v1587_v17  ;;  %v1300_v54 = vsub.f32 0.0, %v1108_v0  ;;  %v1269_v57 = vsub.f32 0.0, %v1077_v2  ;;  %v1270_v0 = vsub.f32 0.0, %v1078_v32 }
 0x12f   :  { %v361_v35 = vpop.f32.mrb[12].mxu1  ;;  %v4077_v36 = vpop.f32.mrb[12].mxu0  ;;  %v1174_v2 = vadd.f32 0.8, %v3997_v20  ;;  %v1207_v20 = vmax.f32 %v1143_v16, 0.0 }
 0x130   :  { %v4087_v5 = vpop.f32.mrb[13].mxu0  ;;  %v4089_v52 = vpop.f32.mrb[13].mxu1  ;;  %v1205_v35 = vmax.f32 %v1141_v6, 0.0  ;;  %v1142_v6 = vadd.f32 0.8, %v3995_v19  ;;  %v4191_v31 = vsel %vm4129_vm2, %v1459_v13, %v4115_v63 }
 0x131   :  { %v3049_v16 = vadd.f32 -0.2, %v4003_v30  ;;  %6764 = vst [vmem:[#allocation44_spill] sm:$0xff] %v4191_v31  ;;  %v1779_v63 = vsel %vm6473_vm4, %v4191_v31, -1e+30 }
 0x132   :  { %v1589_v33 = vmul.f32 %v3110_v26, %v1205_v35  ;;  %v1206_v11 = vmax.f32 %v1142_v6, 0.0  ;;  %v3111_v35 = vadd.f32 -0.8, %v3995_v19  ;;  %v1015_v6 = vadd.f32 0.8, %v951_v38 }
 0x133   :  { %v367_v62 = vpop.f32.mrb[14].mxu1  ;;  %v4098_v15 = vpop.f32.mrb[14].mxu0  ;;  %v1144_v38 = vadd.f32 0.8, %v4003_v30  ;;  %v4204_v30 = vsel %vm4144_vm3, %v1460_v25, %v4119_v51  ;;  %v1843_v25 = vsel %vm4129_vm2, %v1779_v63, -1e+30 }
 0x134   :  { %6744 = vst [vmem:[#allocation28_spill] sm:$0xff] %v4098_v15  ;;  %v4107_v28 = vpop.f32.mrb[15].mxu0  ;;  %v4111_v62 = vpop.f32.mrb[15].mxu1  ;;  %v4139_v8 = vmul.f32 80.0, %v1589_v33  ;;  %v1397_v33 = vmul.f32 %v3046_v24, %v1269_v57  ;;  %v1590_v32 = vmul.f32 %v3111_v35, %v1206_v11  ;;  %v3048_v24 = vadd.f32 -0.2, %v3999_v21 }
 0x135   :  { %6746 = vst [vmem:[#allocation30_spill] sm:$0xff] %v4107_v28  ;;  %6747 = vst [vmem:[#allocation31_spill] sm:$0xff] %v4111_v62  ;;  %v3047_v62 = vadd.f32 -0.2, %v3995_v19  ;;  %v1079_v28 = vmax.f32 %v1015_v6, 0.0 }
 0x136   :  { %v4173_v15 = vmul.f32 80.0, %v1397_v33  ;;  %v4175_v22 = vmul.f32 80.0, %v1590_v32  ;;  %6767 = vst [vmem:[#allocation47_spill] sm:$0xff] %v4204_v30  ;;  %v2041_v51 = vsel %vm4144_vm3, -1e+30, %v4204_v30 }
 0x137   :  { %v373_v23 = vpop.f32.mrb[16].mxu1  ;;  %v4117_v48 = vpop.f32.mrb[16].mxu0 }
 0x138   :  { %6748 = vst [vmem:[#allocation32_spill] sm:$0xff] %v4117_v48  ;;  %v4125_v17 = vpop.f32.mrb[17].mxu0  ;;  %v4133_v23 = vpop.permute.xlu0 %490  ;;  %v889_v48 = vsub.f32 0.0, %v4010_v37 }
 0x139   :  { %6750 = vst [vmem:[#allocation34_spill] sm:$0xff] %v4125_v17  ;;  %6754 = vst [vmem:[#allocation36_spill] sm:$0xff] %v4133_v23  ;;  %v4137_v26 = vpop.f32.mrb[17].mxu1  ;;  %v984_v17 = vadd.f32 1.0, %v920_v50  ;;  %v3112_v50 = vadd.f32 -0.8, %v3999_v21 }
 0x13a   :  { %6755 = vst [vmem:[#allocation37_spill] sm:$0xff] %v4137_v26  ;;  %v1271_v21 = vsub.f32 0.0, %v1079_v28  ;;  %v1176_v28 = vadd.f32 0.8, %v4007_v34 }
 0x13b   :  { %v379_v19 = vpop.f32.mrb[18].mxu1  ;;  %v4151_v23 = vpop.f32.mrb[18].mxu0 }
 0x13c   :  { %6759 = vst [vmem:[#allocation39_spill] sm:$0xff] %v4151_v23  ;;  %v4154_v26 = vpop.f32.mrb[19].mxu0  ;;  %v1238_v19 = vmax.f32 %v1174_v2, 0.0  ;;  %v4164_v57 = vpop.f32.mrb[19].mxu1  ;;  %v1110_v23 = vmax.f32 %v1046_v45, 0.0  ;;  %v1208_v2 = vmax.f32 %v1144_v38, 0.0 }
 0x13d   :  { %6760 = vst [vmem:[#allocation40_spill] sm:$0xff] %v4154_v26  ;;  %v4170_v35 = vpop.permute.xlu0 %496  ;;  %v1398_v26 = vmul.f32 %v3047_v62, %v1270_v0  ;;  %v953_v62 = vadd.f32 1.0, %v889_v48  ;;  %v1240_v40 = vmax.f32 %v1176_v28, 0.0 }
 0x13e   :  { %6763 = vst [vmem:[#allocation43_spill] sm:$0xff] %v4170_v35  ;;  %v1048_v35 = vadd.f32 0.8, %v984_v17  ;;  %v4185_v45 = vmul.f32 %v3143_v27, %v1238_v19  ;;  %v890_v17 = vsub.f32 0.0, %v4012_v39  ;;  %v1272_v27 = vsub.f32 0.0, %v1080_v58 }
 0x13f   :  { %v4166_v11 = vpop.f32.mrb[20].mxu0  ;;  %v385_v6 = vpop.f32.mrb[20].mxu1  ;;  %v4193_v32 = vmul.f32 80.0, %v1398_v26  ;;  %v1592_v13 = vmul.f32 %v3113_v3, %v1208_v2  ;;  %v1017_v19 = vadd.f32 0.8, %v953_v62  ;;  %v6776_v2 = vmov 0 }
 0x140   :  { %6761 = vst [vmem:[#allocation41_spill] sm:$0xff] %v4166_v11  ;;  %v4177_v10 = vpop.f32.mrb[21].mxu0  ;;  %v4180_v11 = vmul.f32 %v4103_v53, %v1300_v54  ;;  %v4183_v0 = vpop.f32.mrb[21].mxu1  ;;  %v1302_v53 = vsub.f32 0.0, %v1110_v23  ;;  %v1591_v54 = vmul.f32 %v3112_v50, %v1207_v20  ;;  %v1112_v26 = vmax.f32 %v1048_v35, 0.0 }
 0x141   :  { %v2040_v20 = vsel %vm4129_vm2, -1e+30, %v1779_v63  ;;  %v4214_v50 = vpop.permute.xlu1 %493  ;;  %v503_v58 = vpop.permute.xlu0 %502  ;;  %v1399_v6 = vmul.f32 %v3048_v24, %v1271_v21  ;;  %v1844_v3 = vsel %vm4144_vm3, %v4204_v30, -1e+30  ;;  %v6770_v24 = vmov 0 }
 0x142   :  { %6769 = vst [vmem:[#allocation49_spill] sm:$0xff] %v4214_v50  ;;  %v6771_v24 = vsel %vm4230_vm7, 4294967295, %v6770_v24  ;;  %v6773_v35 = vmov 0  ;;  %vm4241_vm9 = vcmp.eq.s32.totalorder %v503_v58, %v4085_v44  ;;  %v954_v62 = vadd.f32 1.0, %v890_v17 }
 0x143   :  { %v391_v33 = vpop.f32.mrb[22].mxu1  ;;  %v4196_v48 = vpop.f32.mrb[22].mxu0  ;;  %6772 = vst [vmem:[#allocation50_spill] sm:$0xff] %v6771_v24  ;;  %v6774_v35 = vsel %vm4236_vm8, 4294967295, %v6773_v35  ;;  %v6777_v2 = vsel %vm4241_vm9, 4294967295, %v6776_v2  ;;  %v922_v21 = vsub.f32 0.0, %v4016_v41  ;;  %v1907_v63 = vmax.f32 %v1843_v25, %v1844_v3 }
 0x144   :  { %6765 = vst [vmem:[#allocation45_spill] sm:$0xff] %v4196_v48  ;;  %v4198_v38 = vpop.f32.mrb[23].mxu1  ;;  %v4210_v23 = vpop.f32.mrb[23].mxu0  ;;  %6775 = vst [vmem:[#allocation51_spill] sm:$0xff] %v6774_v35  ;;  %v2104_v33 = vmax.f32 %v2040_v20, %v2041_v51  ;;  %v4248_v14 = vmul.f32 80.0, %v1591_v54  ;;  %v1400_v49 = vmul.f32 %v3049_v16, %v1272_v27  ;;  %v891_v17 = vsub.f32 0.0, %v4024_v47 }
 0x145   :  { %6766 = vst [vmem:[#allocation46_spill] sm:$0xff] %v4198_v38  ;;  %6768 = vst [vmem:[#allocation48_spill] sm:$0xff] %v4210_v23  ;;  %v1145_v50 = vadd.f32 0.8, %v4010_v37  ;;  %v3145_v58 = vadd.f32 -0.8, %v4007_v34  ;;  %1908 = vmax.xlane.f32.xlu0 %v1907_v63  ;;  %v4263_v34 = vpop.permute.xlu1 %499  ;;  %v4270_v63 = vmul.f32 %v4157_v1, %v1302_v53 }
 0x146   :  { %6778 = vst [vmem:[#allocation52_spill] sm:$0xff] %v6777_v2  ;;  %v1146_v38 = vadd.f32 0.8, %v4012_v39  ;;  %2105 = vmax.xlane.f32.xlu1 %v2104_v33  ;;  %v4255_v20 = vmul.f32 80.0, %v1399_v6  ;;  %v3050_v54 = vadd.f32 -0.2, %v4010_v37 }
 0x147   :  { %v397_v30 = vpop.f32.mrb[24].mxu1  ;;  %v4246_v31 = vpop.f32.mrb[24].mxu0  ;;  %v3114_v16 = vadd.f32 -0.8, %v4010_v37  ;;  %v1304_v27 = vsub.f32 0.0, %v1112_v26  ;;  %v1081_v51 = vmax.f32 %v1017_v19, 0.0 }
 0x148   :  { %6779 = vst [vmem:[#allocation53_spill] sm:$0xff] %v4246_v31  ;;  %v4257_v30 = vmul.f32 80.0, %v1592_v13  ;;  %v1018_v25 = vadd.f32 0.8, %v954_v62  ;;  %v986_v28 = vadd.f32 1.0, %v922_v21  ;;  %v4261_v3 = vpop.f32.mrb[25].mxu0  ;;  %v4279_v21 = vmul.f32 %v3145_v58, %v1240_v40 }
 0x149   :  { %6780 = vst [vmem:[#allocation54_spill] sm:$0xff] %v4261_v3  ;;  %6781 = vst [vmem:[#allocation55_spill] sm:$0xff] %v4263_v34  ;;  %v4265_v31 = vmul.f32 80.0, %v1400_v49  ;;  %v1209_v33 = vmax.f32 %v1145_v50, 0.0  ;;  %v3051_v6 = vadd.f32 -0.2, %v4012_v39 }
 0x14a   :  { %v3115_v13 = vadd.f32 -0.8, %v4012_v39  ;;  %v1210_v23 = vmax.f32 %v1146_v38, 0.0  ;;  %v4273_v37 = vadd.f32 0.8, %v4016_v41  ;;  %v955_v26 = vadd.f32 1.0, %v891_v17 }
 0x14b   :  { %v4275_v19 = vpop.f32.mrb[25].mxu1  ;;  %v4277_v62 = vpop.f32.mrb[26].mxu0  ;;  %v4282_v49 = vadd.f32 0.8, %v4024_v47  ;;  %v1492_v50 = vmul.f32 80.0, %v4180_v11  ;;  %v1684_v39 = vmul.f32 80.0, %v4161_v42  ;;  %v4288_v38 = vmul.f32 %v3081_v12, %v1304_v27 }
 0x14c   :  { %6782 = vst [vmem:[#allocation56_spill] sm:$0xff] %v4275_v19  ;;  %6783 = vst [vmem:[#allocation57_spill] sm:$0xff] %v4277_v62  ;;  %v403_v1 = vpop.f32.mrb[26].mxu1  ;;  %v4286_v53 = vpop.f32.mrb[27].mxu0  ;;  %v1273_v34 = vsub.f32 0.0, %v1081_v51  ;;  %v1082_v17 = vmax.f32 %v1018_v25, 0.0  ;;  %v4303_v42 = vsel %vm4230_vm7, %v4173_v15, %v4139_v8  ;;  %v4309_v11 = vsel %vm4236_vm8, %v4193_v32, %v4175_v22 }
 0x14d   :  { %6784 = vst [vmem:[#allocation58_spill] sm:$0xff] %v4286_v53  ;;  %v1050_v3 = vadd.f32 0.8, %v986_v28  ;;  %v4290_v19 = vpop.f32.mrb[27].mxu1  ;;  %v892_v40 = vsub.f32 0.0, %v4032_v55  ;;  %v4297_v58 = vsel %vm4241_vm9, %v1492_v50, %v1684_v39  ;;  %6788 = vst [vmem:[#allocation62_spill] sm:$0xff] %v4303_v42  ;;  %v1593_v51 = vmul.f32 %v3114_v16, %v1209_v33 }
 0x14e   :  { %6785 = vst [vmem:[#allocation59_spill] sm:$0xff] %v4290_v19  ;;  %6787 = vst [vmem:[#allocation61_spill] sm:$0xff] %v4297_v58  ;;  %v1019_v25 = vadd.f32 0.8, %v955_v26  ;;  %v1812_v28 = vsel %vm6474_vm5, %v4297_v58, -1e+30  ;;  %v1594_v8 = vmul.f32 %v3115_v13, %v1210_v23  ;;  %v506_v23 = vpop.permute.xlu1 %505  ;;  %v1401_v13 = vmul.f32 %v3050_v54, %v1273_v34 }
 0x14f   :  { %v4292_v62 = vpop.f32.mrb[28].mxu0  ;;  %6789 = vst [vmem:[#allocation63_spill] sm:$0xff] %v4309_v11  ;;  %v409_v12 = vpop.f32.mrb[28].mxu1  ;;  %v4321_v15 = vsel %vm6472_vm6, %v4303_v42, -1e+30  ;;  %v1274_v33 = vsub.f32 0.0, %v1082_v17  ;;  %vm4340_vm11 = vcmp.eq.s32.totalorder %v506_v23, %v4085_v44 }
 0x150   :  { %6786 = vst [vmem:[#allocation60_spill] sm:$0xff] %v4292_v62  ;;  %v4311_v27 = vpop.f32.mrb[29].mxu0  ;;  %v1876_v22 = vsel %vm4241_vm9, %v1812_v28, -1e+30  ;;  %v2042_v32 = vsel %vm4230_vm7, -1e+30, %v4321_v15 }
 0x151   :  { %6790 = vst [vmem:[#allocation64_spill] sm:$0xff] %v4311_v27  ;;  %v2043_v16 = vsel %vm4236_vm8, -1e+30, %v4309_v11  ;;  %v1114_v26 = vmax.f32 %v1050_v3, 0.0  ;;  %v1955_v50 = vmax.f32 %v1876_v22, -1e+30 }
 0x152   :  { %v2107_v39 = vmax.f32 %v2042_v32, %v2043_v16  ;;  %v4331_v1 = vpop.f32.mrb[29].mxu1  ;;  %v956_v7 = vadd.f32 1.0, %v892_v40  ;;  %v893_v42 = vsub.f32 0.0, %v4040_v60  ;;  %v6793_v17 = vmov 0 }
 0x153   :  { %6791 = vst [vmem:[#allocation65_spill] sm:$0xff] %v4331_v1  ;;  %v4333_v12 = vpop.f32.mrb[30].mxu0  ;;  %v6794_v17 = vsel %vm4340_vm11, 4294967295, %v6793_v17  ;;  %v4344_v3 = vmul.f32 80.0, %v1593_v51  ;;  %v1242_v22 = vmax.f32 %v4273_v37, 0.0  ;;  %v924_v54 = vsub.f32 0.0, %v4038_v59  ;;  %1956 = vmax.xlane.f32.xlu1 %v1955_v50 }
 0x154   :  { %6792 = vst [vmem:[#allocation66_spill] sm:$0xff] %v4333_v12  ;;  %6795 = vst [vmem:[#allocation67_spill] sm:$0xff] %v6794_v17  ;;  %v3147_v32 = vadd.f32 -0.8, %v4016_v41  ;;  %2108 = vmax.xlane.f32.xlu0 %v2107_v39  ;;  %v415_v34 = vpop.f32.mrb[30].mxu1  ;;  %v4349_v40 = vmul.f32 80.0, %v1594_v8  ;;  %v1402_v12 = vmul.f32 %v3051_v6, %v1274_v33 }
 0x155   :  { %v3083_v16 = vadd.f32 -0.2, %v4016_v41  ;;  %v1083_v58 = vmax.f32 %v1019_v25, 0.0  ;;  %v3052_v23 = vadd.f32 -0.2, %v4024_v47  ;;  %v1306_v1 = vsub.f32 0.0, %v1114_v26 }
 0x156   :  { %v1211_v51 = vmax.f32 %v4282_v49, 0.0  ;;  %v3116_v37 = vadd.f32 -0.8, %v4024_v47  ;;  %v4355_v27 = vmul.f32 80.0, %v1401_v13  ;;  %v1020_v62 = vadd.f32 0.8, %v956_v7 }
 0x157   :  { %v1212_v19 = vmax.f32 %v1148_v56, 0.0  ;;  %v957_v50 = vadd.f32 1.0, %v893_v42  ;;  %v4357_v39 = vmul.f32 %v3147_v32, %v1242_v22  ;;  %v3117_v8 = vadd.f32 -0.8, %v4032_v55  ;;  %v4361_v25 = vpop.f32.mrb[31].mxu0  ;;  %v4363_v6 = vpop.f32.mrb[31].mxu1 }
 0x158   :  { %v988_v34 = vadd.f32 1.0, %v924_v54  ;;  %v894_v41 = vsub.f32 0.0, %v4060_v18  ;;  %6796 = vst [vmem:[#allocation68_spill] sm:$0xff] %v4361_v25  ;;  %6797 = vst [vmem:[#allocation69_spill] sm:$0xff] %v4363_v6  ;;  %v1275_v33 = vsub.f32 0.0, %v1083_v58  ;;  %v1494_v56 = vmul.f32 80.0, %v4270_v63 }
 0x159   :  { %v1180_v49 = vadd.f32 0.8, %v4038_v59  ;;  %v2073_v47 = vsel %vm4241_vm9, -1e+30, %v1812_v28  ;;  %v4369_v7 = vmul.f32 80.0, %v1402_v12  ;;  %v4371_v42 = vmul.f32 %v3083_v16, %v1306_v1 }
 0x15a   :  { %v1595_v26 = vmul.f32 %v3116_v37, %v1211_v51  ;;  %v3053_v13 = vadd.f32 -0.2, %v4032_v55  ;;  %v1084_v22 = vmax.f32 %v1020_v62, 0.0  ;;  %v1021_v32 = vadd.f32 0.8, %v957_v50 }
 0x15b   :  { %v2152_v54 = vmax.f32 %v2073_v47, -1e+30  ;;  %v1686_v6 = vmul.f32 80.0, %v4185_v45  ;;  %v1596_v58 = vmul.f32 %v3117_v8, %v1212_v19  ;;  %v1052_v25 = vadd.f32 0.8, %v988_v34 }
 0x15c   :  { %v3085_v53 = vadd.f32 -0.2, %v4038_v59  ;;  %v958_v2 = vadd.f32 1.0, %v894_v41  ;;  %v1403_v28 = vmul.f32 %v3052_v23, %v1275_v33  ;;  %v1244_v48 = vmax.f32 %v1180_v49, 0.0 }
 0x15d   :  { %v3149_v63 = vadd.f32 -0.8, %v4038_v59  ;;  %2153 = vmax.xlane.f32.xlu1 %v2152_v54  ;;  %v4379_v1 = vsel %vm4340_vm11, %v1494_v56, %v1686_v6  ;;  %v4381_v55 = vmul.f32 80.0, %v1595_v26  ;;  %v1149_v62 = vadd.f32 0.8, %v4040_v60 }
 0x15e   :  { %6798 = vst [vmem:[#allocation70_spill] sm:$0xff] %v4379_v1  ;;  %v926_v45 = vsub.f32 0.0, %v4070_v4  ;;  %v1814_v19 = vsel %vm6454_vm10, %v4379_v1, -1e+30  ;;  %v1276_v12 = vsub.f32 0.0, %v1084_v22  ;;  %v1085_v16 = vmax.f32 %v1021_v32, 0.0 }
 0x15f   :  { %v1150_v59 = vadd.f32 0.8, %v4060_v18  ;;  %v1878_v23 = vsel %vm4340_vm11, %v1814_v19, -1e+30  ;;  %v1116_v51 = vmax.f32 %v1052_v25, 0.0  ;;  %v895_v50 = vsub.f32 0.0, %v4077_v36 }
 0x160   :  { %v1022_v37 = vadd.f32 0.8, %v958_v2  ;;  %v1958_v8 = vmax.f32 %v1878_v23, -1e+30  ;;  %v4393_v34 = vmul.f32 80.0, %v1403_v28  ;;  %v4395_v41 = vmul.f32 80.0, %v1596_v58 }
 0x161   :  { %v4397_v6 = vmul.f32 %v3149_v63, %v1244_v48  ;;  %v896_v33 = vsub.f32 0.0, %v4087_v5  ;;  %v1213_v49 = vmax.f32 %v1149_v62, 0.0  ;;  %v3054_v47 = vadd.f32 -0.2, %v4040_v60 }
 0x162   :  { %v3118_v56 = vadd.f32 -0.8, %v4040_v60  ;;  %v990_v26 = vadd.f32 1.0, %v926_v45  ;;  %1959 = vmax.xlane.f32.xlu0 %v1958_v8  ;;  %v1277_v25 = vsub.f32 0.0, %v1085_v16  ;;  %v1214_v2 = vmax.f32 %v1150_v59, 0.0  ;;  %v6802_v59 = vld [vmem:[#allocation21_spill] sm:$0xff] }
 0x163   :  { %v3119_v22 = vadd.f32 -0.8, %v4060_v18  ;;  %v1182_v32 = vadd.f32 0.8, %v4070_v4  ;;  %v6799_v48 = vmov 0  ;;  %v1404_v54 = vmul.f32 %v3053_v13, %v1276_v12 }
 0x164   :  { %v6800_v48 = vsel %vm4406_vm12, 4294967295, %v6799_v48  ;;  %v1308_v58 = vsub.f32 0.0, %v1116_v51  ;;  %v1086_v28 = vmax.f32 %v1022_v37, 0.0  ;;  %v959_v63 = vadd.f32 1.0, %v895_v50 }
 0x165   :  { %6801 = vst [vmem:[#allocation71_spill] sm:$0xff] %v6800_v48  ;;  %v960_v62 = vadd.f32 1.0, %v896_v33  ;;  %v928_v60 = vsub.f32 0.0, %v4089_v52  ;;  %v2075_v45 = vsel %vm4340_vm11, -1e+30, %v1814_v19  ;;  %vm6455_vm13 = vcmp.gt.s32.totalorder %v4022_v46, %v6802_v59 }
 0x166   :  { %v1845_v16 = vsel %vm4230_vm7, %v4321_v15, -1e+30  ;;  %v1597_v23 = vmul.f32 %v3118_v56, %v1213_v49  ;;  %v1054_v8 = vadd.f32 0.8, %v990_v26  ;;  %v3151_v13 = vadd.f32 -0.8, %v4070_v4 }
 0x167   :  { %v2155_v12 = vmax.f32 %v2075_v45, -1e+30  ;;  %v6803_v51 = vmov 0  ;;  %v1405_v37 = vmul.f32 %v3054_v47, %v1277_v25  ;;  %v1598_v19 = vmul.f32 %v3119_v22, %v1214_v2 }
 0x168   :  { %v6804_v51 = vsel %vm4421_vm14, 4294967295, %v6803_v51  ;;  %v1246_v50 = vmax.f32 %v1182_v32, 0.0  ;;  %v1846_v15 = vsel %vm4236_vm8, %v4309_v11, -1e+30  ;;  %v1278_v33 = vsub.f32 0.0, %v1086_v28 }
 0x169   :  { %6805 = vst [vmem:[#allocation72_spill] sm:$0xff] %v6804_v51  ;;  %v3055_v49 = vadd.f32 -0.2, %v4060_v18  ;;  %v1023_v56 = vadd.f32 0.8, %v959_v63  ;;  %2156 = vmax.xlane.f32.xlu0 %v2155_v12  ;;  %v1910_v26 = vmax.f32 %v1845_v16, %v1846_v15  ;;  %v4429_v45 = vmul.f32 80.0, %v1404_v54 }
 0x16a   :  { %v4431_v9 = vmul.f32 %v3085_v53, %v1308_v58  ;;  %v1024_v29 = vadd.f32 0.8, %v960_v62  ;;  %v992_v1 = vadd.f32 1.0, %v928_v60  ;;  %v4433_v17 = vmul.f32 80.0, %v1597_v23  ;;  %v6808_v63 = vld [vmem:[#allocation28_spill] sm:$0xff] }
 0x16b   :  { %v1118_v47 = vmax.f32 %v1054_v8, 0.0  ;;  %v3087_v25 = vadd.f32 -0.2, %v4070_v4  ;;  %v1151_v2 = vadd.f32 0.8, %v4077_v36  ;;  %1911 = vmax.xlane.f32.xlu1 %v1910_v26  ;;  %v4437_v22 = vmul.f32 80.0, %v1405_v37 }
 0x16c   :  { %v4439_v18 = vmul.f32 80.0, %v1598_v19  ;;  %v4441_v32 = vmul.f32 %v3151_v13, %v1246_v50  ;;  %v1152_v54 = vadd.f32 0.8, %v4087_v5  ;;  %v1406_v53 = vmul.f32 %v3055_v49, %v1278_v33 }
 0x16d   :  { %v1087_v58 = vmax.f32 %v1023_v56, 0.0  ;;  %v3056_v28 = vadd.f32 -0.2, %v4077_v36  ;;  %v897_v62 = vsub.f32 0.0, %v6808_v63  ;;  %v3120_v60 = vadd.f32 -0.8, %v4077_v36 }
 0x16e   :  { %6806 = vst [vmem:[#allocation73_spill] sm:$0xff] %v4439_v18  ;;  %6807 = vst [vmem:[#allocation74_spill] sm:$0xff] %v4441_v32  ;;  %v1088_v4 = vmax.f32 %v1024_v29, 0.0  ;;  %v1056_v16 = vadd.f32 0.8, %v992_v1  ;;  %v4451_v23 = vsel %vm4406_vm12, %v4255_v20, %v4248_v14  ;;  %v1310_v8 = vsub.f32 0.0, %v1118_v47 }
 0x16f   :  { %6809 = vst [vmem:[#allocation28_spill] sm:$0xff] %v4451_v23  ;;  %v1215_v13 = vmax.f32 %v1151_v2, 0.0  ;;  %v3057_v12 = vadd.f32 -0.2, %v4087_v5  ;;  %v3121_v37 = vadd.f32 -0.8, %v4087_v5  ;;  %v4462_v14 = vsel %vm4421_vm14, %v4265_v31, %v4257_v30 }
 0x170   :  { %v1216_v19 = vmax.f32 %v1152_v54, 0.0  ;;  %v1184_v50 = vadd.f32 0.8, %v4089_v52  ;;  %v3089_v15 = vadd.f32 -0.2, %v4089_v52  ;;  %v6810_v36 = vld [vmem:[#allocation30_spill] sm:$0xff]  ;;  %v4507_v18 = vmul.f32 %v3087_v25, %v1310_v8 }
 0x171   :  { %v898_v33 = vsub.f32 0.0, %v6810_v36  ;;  %v1279_v1 = vsub.f32 0.0, %v1087_v58  ;;  %v961_v49 = vadd.f32 1.0, %v897_v62  ;;  %6811 = vst [vmem:[#allocation30_spill] sm:$0xff] %v4462_v14  ;;  %v1783_v5 = vsel %vm6455_vm13, %v4451_v23, -1e+30 }
 0x172   :  { %v1280_v20 = vsub.f32 0.0, %v1088_v4  ;;  %v1120_v56 = vmax.f32 %v1056_v16, 0.0  ;;  %v3153_v26 = vadd.f32 -0.8, %v4089_v52  ;;  %v2044_v29 = vsel %vm4406_vm12, -1e+30, %v1783_v5  ;;  %v509_v4 = vpop.permute.xlu0 %508 }
 0x173   :  { %v6812_v47 = vld [vmem:[#allocation12_spill] sm:$0xff]  ;;  %v6813_v2 = vmov 0  ;;  %v1599_v31 = vmul.f32 %v3120_v60, %v1215_v13  ;;  %v1153_v30 = vadd.f32 0.8, %v6808_v63  ;;  %v2045_v54 = vsel %vm4421_vm14, -1e+30, %v4462_v14 }
 0x174   :  { %vm4473_vm15 = vcmp.eq.s32.totalorder %v6812_v47, %v4083_v43  ;;  %v1847_v58 = vsel %vm4406_vm12, %v1783_v5, -1e+30  ;;  %v6816_v52 = vld [vmem:[#allocation23_spill] sm:$0xff]  ;;  %vm4487_vm1 = vcmp.eq.s32.totalorder %v6812_v47, %v4085_v44  ;;  %v6817_v62 = vmov 0  ;;  %v6820_v23 = vld [vmem:[#allocation22_spill] sm:$0xff] }
 0x175   :  { %v6814_v2 = vsel %vm4473_vm15, 4294967295, %v6813_v2  ;;  %vm6471_vm0 = vcmp.gt.s32.totalorder %v4022_v46, %v6816_v52  ;;  %v6818_v62 = vsel %vm4487_vm1, 4294967295, %v6817_v62  ;;  %v1600_v60 = vmul.f32 %v3121_v37, %v1216_v19  ;;  %v6824_v19 = vld [vmem:[#allocation31_spill] sm:$0xff] }
 0x176   :  { %6815 = vst [vmem:[#allocation12_spill] sm:$0xff] %v6814_v2  ;;  %6819 = vst [vmem:[#allocation75_spill] sm:$0xff] %v6818_v62  ;;  %v962_v16 = vadd.f32 1.0, %v898_v33  ;;  %v2110_v13 = vmax.f32 %v2044_v29, %v2045_v54  ;;  %v1848_v59 = vsel %vm4421_vm14, %v4462_v14, -1e+30  ;;  %vm6470_vm10 = vcmp.gt.s32.totalorder %v4043_v61, %v6820_v23  ;;  %v6825_v29 = vld [vmem:[#allocation32_spill] sm:$0xff] }
 0x177   :  { %vm4497_vm13 = vcmp.eq.s32.totalorder %v509_v4, %v4085_v44  ;;  %v6821_v5 = vmov 0  ;;  %v1407_v47 = vmul.f32 %v3056_v28, %v1279_v1  ;;  %v1248_v48 = vmax.f32 %v1184_v50, 0.0  ;;  %v6832_v23 = vld [vmem:[#allocation39_spill] sm:$0xff] }
 0x178   :  { %v6822_v5 = vsel %vm4497_vm13, 4294967295, %v6821_v5  ;;  %v1025_v11 = vadd.f32 0.8, %v961_v49  ;;  %v1913_v35 = vmax.f32 %v1847_v58, %v1848_v59  ;;  %v1408_v24 = vmul.f32 %v3057_v12, %v1280_v20  ;;  %2111 = vmax.xlane.f32.xlu1 %v2110_v13 }
 0x179   :  { %6823 = vst [vmem:[#allocation76_spill] sm:$0xff] %v6822_v5  ;;  %v1312_v37 = vsub.f32 0.0, %v1120_v56  ;;  %v930_v33 = vsub.f32 0.0, %v6824_v19  ;;  %v899_v54 = vsub.f32 0.0, %v6825_v29  ;;  %v4503_v14 = vmul.f32 80.0, %v1406_v53 }
 0x17a   :  { %v1217_v51 = vmax.f32 %v1153_v30, 0.0  ;;  %v3122_v32 = vadd.f32 -0.8, %v6808_v63  ;;  %v1154_v4 = vadd.f32 0.8, %v6810_v36  ;;  %1914 = vmax.xlane.f32.xlu0 %v1913_v35  ;;  %v4509_v28 = vmul.f32 80.0, %v1599_v31 }
 0x17b   :  { %v4511_v59 = vmul.f32 80.0, %v1600_v60  ;;  %v1026_v12 = vadd.f32 0.8, %v962_v16  ;;  %v4513_v50 = vmul.f32 80.0, %v1407_v47  ;;  %v4515_v1 = vmul.f32 %v3153_v26, %v1248_v48  ;;  %v6827_v16 = vld [vmem:[#allocation34_spill] sm:$0xff] }
 0x17c   :  { %v1089_v49 = vmax.f32 %v1025_v11, 0.0  ;;  %v3058_v53 = vadd.f32 -0.2, %v6808_v63  ;;  %v4518_v20 = vmul.f32 80.0, %v1408_v24  ;;  %v4520_v56 = vmul.f32 %v3089_v15, %v1312_v37 }
 0x17d   :  { %6826 = vst [vmem:[#allocation31_spill] sm:$0xff] %v4515_v1  ;;  %v994_v30 = vadd.f32 1.0, %v930_v33  ;;  %v963_v35 = vadd.f32 1.0, %v899_v54  ;;  %v1601_v25 = vmul.f32 %v3122_v32, %v1217_v51  ;;  %v1218_v8 = vmax.f32 %v1154_v4, 0.0  ;;  %v6831_v4 = vld [vmem:[#allocation37_spill] sm:$0xff] }
 0x17e   :  { %v3123_v31 = vadd.f32 -0.8, %v6810_v36  ;;  %v1496_v58 = vmul.f32 80.0, %v4288_v38  ;;  %v1090_v60 = vmax.f32 %v1026_v12, 0.0  ;;  %v900_v13 = vsub.f32 0.0, %v6827_v16 }
 0x17f   :  { %v1688_v48 = vmul.f32 80.0, %v4279_v21  ;;  %v4530_v24 = vsel %vm4473_vm15, %v4355_v27, %v4344_v3  ;;  %v1281_v11 = vsub.f32 0.0, %v1089_v49  ;;  %v3059_v63 = vadd.f32 -0.2, %v6810_v36 }
 0x180   :  { %6828 = vst [vmem:[#allocation32_spill] sm:$0xff] %v4530_v24  ;;  %v1186_v51 = vadd.f32 0.8, %v6824_v19  ;;  %v4538_v38 = vsel %vm4487_vm1, %v4369_v7, %v4349_v40  ;;  %v1058_v32 = vadd.f32 0.8, %v994_v30  ;;  %v1602_v3 = vmul.f32 %v3123_v31, %v1218_v8 }
 0x181   :  { %6829 = vst [vmem:[#allocation34_spill] sm:$0xff] %v4538_v38  ;;  %v1027_v15 = vadd.f32 0.8, %v963_v35  ;;  %v4542_v21 = vsel %vm4497_vm13, %v1496_v58, %v1688_v48  ;;  %v4548_v27 = vsel %vm6471_vm0, %v4530_v24, -1e+30  ;;  %v1282_v26 = vsub.f32 0.0, %v1090_v60 }
 0x182   :  { %6830 = vst [vmem:[#allocation77_spill] sm:$0xff] %v4542_v21  ;;  %v1155_v36 = vadd.f32 0.8, %v6825_v29  ;;  %v1816_v40 = vsel %vm6470_vm10, %v4542_v21, -1e+30  ;;  %v964_v47 = vadd.f32 1.0, %v900_v13  ;;  %v1409_v35 = vmul.f32 %v3058_v53, %v1281_v11 }
 0x183   :  { %v1849_v7 = vsel %vm4473_vm15, %v4548_v27, -1e+30  ;;  %v1880_v37 = vsel %vm4497_vm13, %v1816_v40, -1e+30  ;;  %v1850_v33 = vsel %vm4487_vm1, %v4538_v38, -1e+30  ;;  %v1410_v21 = vmul.f32 %v3059_v63, %v1282_v26 }
 0x184   :  { %v1156_v54 = vadd.f32 0.8, %v6827_v16  ;;  %v932_v12 = vsub.f32 0.0, %v6831_v4  ;;  %v1961_v49 = vmax.f32 %v1880_v37, -1e+30  ;;  %v1916_v30 = vmax.f32 %v1849_v7, %v1850_v33  ;;  %v6834_v26 = vld [vmem:[#allocation40_spill] sm:$0xff] }
 0x185   :  { %v1250_v8 = vmax.f32 %v1186_v51, 0.0  ;;  %v3155_v31 = vadd.f32 -0.8, %v6824_v19  ;;  %v1091_v58 = vmax.f32 %v1027_v15, 0.0  ;;  %v4566_v60 = vmul.f32 80.0, %v1601_v25 }
 0x186   :  { %v1122_v13 = vmax.f32 %v1058_v32, 0.0  ;;  %v3091_v48 = vadd.f32 -0.2, %v6824_v19  ;;  %v901_v52 = vsub.f32 0.0, %v6832_v23  ;;  %1962 = vmax.xlane.f32.xlu1 %v1961_v49  ;;  %1917 = vmax.xlane.f32.xlu0 %v1916_v30  ;;  %v1219_v24 = vmax.f32 %v1155_v36, 0.0 }
 0x187   :  { %v3124_v1 = vadd.f32 -0.8, %v6825_v29  ;;  %v1028_v37 = vadd.f32 0.8, %v964_v47  ;;  %v4571_v7 = vmul.f32 80.0, %v1602_v3  ;;  %v1220_v53 = vmax.f32 %v1156_v54, 0.0 }
 0x188   :  { %v3125_v11 = vadd.f32 -0.8, %v6827_v16  ;;  %v996_v51 = vadd.f32 1.0, %v932_v12  ;;  %v4574_v25 = vmul.f32 80.0, %v1409_v35  ;;  %v4576_v32 = vmul.f32 %v3155_v31, %v1250_v8 }
 0x189   :  { %v1283_v19 = vsub.f32 0.0, %v1091_v58  ;;  %v3060_v15 = vadd.f32 -0.2, %v6825_v29  ;;  %v1314_v33 = vsub.f32 0.0, %v1122_v13  ;;  %v1188_v63 = vadd.f32 0.8, %v6831_v4 }
 0x18a   :  { %6833 = vst [vmem:[#allocation37_spill] sm:$0xff] %v4576_v32  ;;  %v965_v36 = vadd.f32 1.0, %v901_v52  ;;  %v902_v49 = vsub.f32 0.0, %v6834_v26  ;;  %v4581_v47 = vmul.f32 80.0, %v1410_v21  ;;  %v1603_v3 = vmul.f32 %v3124_v1, %v1219_v24  ;;  %v6835_v21 = vld [vmem:[#allocation26_spill] sm:$0xff]  ;;  %v512_v24 = vpop.permute.xlu1 %511 }
 0x18b   :  { %v1092_v54 = vmax.f32 %v1028_v37, 0.0  ;;  %v3061_v30 = vadd.f32 -0.2, %v6827_v16  ;;  %v1604_v12 = vmul.f32 %v3125_v11, %v1220_v53  ;;  %v1060_v35 = vadd.f32 0.8, %v996_v51  ;;  %v6836_v1 = vld [vmem:[#allocation10_spill] sm:$0xff] }
 0x18c   :  { %v3157_v8 = vadd.f32 -0.8, %v6831_v4  ;;  %v2077_v31 = vsel %vm4497_vm13, -1e+30, %v1816_v40  ;;  %v1411_v29 = vmul.f32 %v3060_v15, %v1283_v19  ;;  %v1157_v58 = vadd.f32 0.8, %v6832_v23 }
 0x18d   :  { %v2158_v13 = vmax.f32 %v2077_v31, -1e+30  ;;  %v2046_v52 = vsel %vm4473_vm15, -1e+30, %v4548_v27  ;;  %vm6486_vm10 = vcmp.gt.s32.totalorder %v4022_v46, %v6835_v21  ;;  %vm4595_vm0 = vcmp.eq.s32.totalorder %v6836_v1, %v4083_v43  ;;  %v6840_v51 = vld [vmem:[#allocation25_spill] sm:$0xff] }
 0x18e   :  { %v6837_v16 = vmov 0  ;;  %v1252_v37 = vmax.f32 %v1188_v63, 0.0  ;;  %v1029_v40 = vadd.f32 0.8, %v965_v36  ;;  %v966_v53 = vadd.f32 1.0, %v902_v49 }
 0x18f   :  { %v6838_v16 = vsel %vm4595_vm0, 4294967295, %v6837_v16  ;;  %v2047_v11 = vsel %vm4487_vm1, -1e+30, %v4538_v38  ;;  %vm6485_vm6 = vcmp.gt.s32.totalorder %v4043_v61, %v6840_v51  ;;  %vm4606_vm4 = vcmp.eq.s32.totalorder %v6836_v1, %v4085_v44  ;;  %2159 = vmax.xlane.f32.xlu1 %v2158_v13  ;;  %v6849_v38 = vld [vmem:[#allocation41_spill] sm:$0xff] }
 0x190   :  { %6839 = vst [vmem:[#allocation39_spill] sm:$0xff] %v6838_v16  ;;  %v6841_v27 = vmov 0  ;;  %vm4611_vm5 = vcmp.eq.s32.totalorder %v512_v24, %v4085_v44  ;;  %v6844_v19 = vmov 0  ;;  %v4615_v15 = vmul.f32 %v3091_v48, %v1314_v33 }
 0x191   :  { %v6842_v27 = vsel %vm4606_vm4, 4294967295, %v6841_v27  ;;  %v6845_v19 = vsel %vm4611_vm5, 4294967295, %v6844_v19  ;;  %v1158_v63 = vadd.f32 0.8, %v6834_v26  ;;  %v934_v36 = vsub.f32 0.0, %v4164_v57 }
 0x192   :  { %6843 = vst [vmem:[#allocation40_spill] sm:$0xff] %v6842_v27  ;;  %6846 = vst [vmem:[#allocation10_spill] sm:$0xff] %v6845_v19  ;;  %v2113_v49 = vmax.f32 %v2046_v52, %v2047_v11  ;;  %v4619_v31 = vmul.f32 80.0, %v1603_v3  ;;  %v1284_v5 = vsub.f32 0.0, %v1092_v54  ;;  %v1124_v1 = vmax.f32 %v1060_v35, 0.0  ;;  %v6876_v27 = vld [vmem:[#allocation11_spill] sm:$0xff] }
 0x193   :  { %6847 = vst [vmem:[#allocation78_spill] sm:$0xff] %v4615_v15  ;;  %v903_v62 = vsub.f32 0.0, %v6849_v38  ;;  %v4622_v2 = vmul.f32 80.0, %v1604_v12  ;;  %v3093_v24 = vadd.f32 -0.2, %v6831_v4  ;;  %v1221_v32 = vmax.f32 %v1157_v58, 0.0 }
 0x194   :  { %6848 = vst [vmem:[#allocation79_spill] sm:$0xff] %v4619_v31  ;;  %v3126_v48 = vadd.f32 -0.8, %v6832_v23  ;;  %2114 = vmax.xlane.f32.xlu0 %v2113_v49  ;;  %v4626_v33 = vmul.f32 80.0, %v1411_v29  ;;  %v4628_v15 = vmul.f32 %v3157_v8, %v1252_v37  ;;  %v1093_v13 = vmax.f32 %v1029_v40, 0.0 }
 0x195   :  { %6850 = vst [vmem:[#allocation41_spill] sm:$0xff] %v4622_v2  ;;  %v1030_v52 = vadd.f32 0.8, %v966_v53  ;;  %v1222_v3 = vmax.f32 %v1158_v63, 0.0  ;;  %v3127_v54 = vadd.f32 -0.8, %v6834_v26  ;;  %v1412_v12 = vmul.f32 %v3061_v30, %v1284_v5 }
 0x196   :  { %6851 = vst [vmem:[#allocation80_spill] sm:$0xff] %v4628_v15  ;;  %v998_v35 = vadd.f32 1.0, %v934_v36  ;;  %v904_v11 = vsub.f32 0.0, %v4177_v10  ;;  %v1316_v2 = vsub.f32 0.0, %v1124_v1  ;;  %v3062_v4 = vadd.f32 -0.2, %v6832_v23 }
 0x197   :  { %v967_v58 = vadd.f32 1.0, %v903_v62  ;;  %v1605_v31 = vmul.f32 %v3126_v48, %v1221_v32  ;;  %v3063_v49 = vadd.f32 -0.2, %v6834_v26  ;;  %v1190_v29 = vadd.f32 0.8, %v4164_v57 }
 0x198   :  { %v3159_v8 = vadd.f32 -0.8, %v4164_v57  ;;  %v1285_v37 = vsub.f32 0.0, %v1093_v13  ;;  %v1094_v40 = vmax.f32 %v1030_v52, 0.0  ;;  %v1498_v53 = vmul.f32 80.0, %v4371_v42 }
 0x199   :  { %v1690_v63 = vmul.f32 80.0, %v4357_v39  ;;  %v1606_v36 = vmul.f32 %v3127_v54, %v1222_v3  ;;  %v1062_v15 = vadd.f32 0.8, %v998_v35  ;;  %v968_v5 = vadd.f32 1.0, %v904_v11 }
 0x19a   :  { %v4642_v23 = vsel %vm4595_vm0, %v4393_v34, %v4381_v55  ;;  %v1031_v62 = vadd.f32 0.8, %v967_v58  ;;  %v4652_v42 = vsel %vm4606_vm4, %v4429_v45, %v4395_v41  ;;  %v1254_v26 = vmax.f32 %v1190_v29, 0.0  ;;  %v6855_v45 = vld [vmem:[#allocation45_spill] sm:$0xff] }
 0x19b   :  { %6852 = vst [vmem:[#allocation81_spill] sm:$0xff] %v4642_v23  ;;  %v4646_v32 = vsel %vm4611_vm5, %v1498_v53, %v1690_v63  ;;  %6854 = vst [vmem:[#allocation83_spill] sm:$0xff] %v4652_v42  ;;  %v4658_v39 = vsel %vm6486_vm10, %v4642_v23, -1e+30  ;;  %v936_v55 = vsub.f32 0.0, %v4183_v0  ;;  %v1286_v41 = vsub.f32 0.0, %v1094_v40 }
 0x19c   :  { %6853 = vst [vmem:[#allocation82_spill] sm:$0xff] %v4646_v32  ;;  %v1818_v34 = vsel %vm6485_vm6, %v4646_v32, -1e+30  ;;  %v1851_v30 = vsel %vm4595_vm0, %v4658_v39, -1e+30  ;;  %v905_v1 = vsub.f32 0.0, %v6855_v45  ;;  %v4676_v58 = vmul.f32 %v3093_v24, %v1316_v2 }
 0x19d   :  { %v1882_v48 = vsel %vm4611_vm5, %v1818_v34, -1e+30  ;;  %v1852_v13 = vsel %vm4606_vm4, %v4652_v42, -1e+30  ;;  %v1126_v52 = vmax.f32 %v1062_v15, 0.0  ;;  %v4674_v11 = vmul.f32 80.0, %v1412_v12 }
 0x19e   :  { %v1032_v3 = vadd.f32 0.8, %v968_v5  ;;  %v1964_v54 = vmax.f32 %v1882_v48, -1e+30  ;;  %v1919_v35 = vmax.f32 %v1851_v30, %v1852_v13  ;;  %v1159_v29 = vadd.f32 0.8, %v6849_v38 }
 0x19f   :  { %v1160_v40 = vadd.f32 0.8, %v4177_v10  ;;  %v1413_v53 = vmul.f32 %v3062_v4, %v1285_v37  ;;  %v3095_v63 = vadd.f32 -0.2, %v4164_v57  ;;  %v1095_v51 = vmax.f32 %v1031_v62, 0.0 }
 0x1a0   :  { %v1000_v32 = vadd.f32 1.0, %v936_v55  ;;  %1965 = vmax.xlane.f32.xlu0 %v1964_v54  ;;  %1920 = vmax.xlane.f32.xlu1 %v1919_v35  ;;  %v4681_v21 = vmul.f32 80.0, %v1605_v31  ;;  %v1414_v15 = vmul.f32 %v3063_v49, %v1286_v41  ;;  %v4683_v5 = vmul.f32 80.0, %v1606_v36 }
 0x1a1   :  { %v969_v12 = vadd.f32 1.0, %v905_v1  ;;  %v1318_v30 = vsub.f32 0.0, %v1126_v52  ;;  %v4685_v2 = vmul.f32 %v3159_v8, %v1254_v26  ;;  %v3064_v24 = vadd.f32 -0.2, %v6849_v38  ;;  %v6857_v8 = vld [vmem:[#allocation48_spill] sm:$0xff] }
 0x1a2   :  { %v1096_v48 = vmax.f32 %v1032_v3, 0.0  ;;  %v1223_v13 = vmax.f32 %v1159_v29, 0.0  ;;  %v3128_v4 = vadd.f32 -0.8, %v6849_v38  ;;  %v1224_v57 = vmax.f32 %v1160_v40, 0.0  ;;  %v515_v40 = vpop.permute.xlu0 %514 }
 0x1a3   :  { %6856 = vst [vmem:[#allocation45_spill] sm:$0xff] %v4685_v2  ;;  %v3129_v37 = vadd.f32 -0.8, %v4177_v10  ;;  %v4690_v62 = vmul.f32 80.0, %v1413_v53  ;;  %v1287_v31 = vsub.f32 0.0, %v1095_v51  ;;  %v4693_v36 = vmul.f32 80.0, %v1414_v15 }
 0x1a4   :  { %v1064_v55 = vadd.f32 0.8, %v1000_v32  ;;  %v1192_v49 = vadd.f32 0.8, %v4183_v0  ;;  %v1033_v41 = vadd.f32 0.8, %v969_v12  ;;  %v4698_v52 = vmul.f32 %v3095_v63, %v1318_v30 }
 0x1a5   :  { %v906_v26 = vsub.f32 0.0, %v6857_v8  ;;  %v2079_v1 = vsel %vm4611_vm5, -1e+30, %v1818_v34  ;;  %v1288_v38 = vsub.f32 0.0, %v1096_v48  ;;  %v3065_v3 = vadd.f32 -0.2, %v4177_v10 }
 0x1a6   :  { %v1161_v54 = vadd.f32 0.8, %v6855_v45  ;;  %v1607_v35 = vmul.f32 %v3128_v4, %v1223_v13  ;;  %v1608_v51 = vmul.f32 %v3129_v37, %v1224_v57  ;;  %v2161_v32 = vmax.f32 %v2079_v1, -1e+30  ;;  %v6858_v10 = vld [vmem:[#allocation18_spill] sm:$0xff] }
 0x1a7   :  { %v2048_v29 = vsel %vm4595_vm0, -1e+30, %v4658_v39  ;;  %v1415_v53 = vmul.f32 %v3064_v24, %v1287_v31  ;;  %v1256_v15 = vmax.f32 %v1192_v49, 0.0  ;;  %v3161_v12 = vadd.f32 -0.8, %v4183_v0 }
 0x1a8   :  { %v2049_v34 = vsel %vm4606_vm4, -1e+30, %v4652_v42  ;;  %vm4711_vm6 = vcmp.eq.s32.totalorder %v6858_v10, %v4083_v43  ;;  %v6859_v63 = vmov 0  ;;  %vm4716_vm10 = vcmp.eq.s32.totalorder %v515_v40, %v4085_v44  ;;  %2162 = vmax.xlane.f32.xlu0 %v2161_v32 }
 0x1a9   :  { %v6860_v63 = vsel %vm4711_vm6, 4294967295, %v6859_v63  ;;  %v6862_v30 = vmov 0  ;;  %v1128_v39 = vmax.f32 %v1064_v55, 0.0  ;;  %v1097_v24 = vmax.f32 %v1033_v41, 0.0 }
 0x1aa   :  { %6861 = vst [vmem:[#allocation48_spill] sm:$0xff] %v6860_v63  ;;  %v6863_v30 = vsel %vm4716_vm10, 4294967295, %v6862_v30  ;;  %v970_v48 = vadd.f32 1.0, %v906_v26  ;;  %v2116_v13 = vmax.f32 %v2048_v29, %v2049_v34  ;;  %vm4722_vm5 = vcmp.eq.s32.totalorder %v6858_v10, %v4085_v44  ;;  %v6870_v26 = vld [vmem:[#allocation46_spill] sm:$0xff] }
 0x1ab   :  { %6864 = vst [vmem:[#allocation18_spill] sm:$0xff] %v6863_v30  ;;  %v6865_v4 = vmov 0  ;;  %v1416_v57 = vmul.f32 %v3065_v3, %v1288_v38  ;;  %v4727_v37 = vadd.f32 -0.2, %v4183_v0  ;;  %v1225_v31 = vmax.f32 %v1161_v54, 0.0  ;;  %v6873_v38 = vld [vmem:[#allocation53_spill] sm:$0xff] }
 0x1ac   :  { %v6866_v4 = vsel %vm4722_vm5, 4294967295, %v6865_v4  ;;  %v3130_v49 = vadd.f32 -0.8, %v6855_v45  ;;  %v4730_v1 = vmul.f32 80.0, %v1607_v35  ;;  %v4732_v55 = vmul.f32 80.0, %v1608_v51  ;;  %2117 = vmax.xlane.f32.xlu1 %v2116_v13  ;;  %v6874_v0 = vld [vmem:[#allocation54_spill] sm:$0xff] }
 0x1ad   :  { %6867 = vst [vmem:[#allocation84_spill] sm:$0xff] %v6866_v4  ;;  %v1162_v41 = vadd.f32 0.8, %v6857_v8  ;;  %v938_v32 = vsub.f32 0.0, %v6870_v26  ;;  %v4736_v29 = vmul.f32 80.0, %v1415_v53  ;;  %v4738_v40 = vmul.f32 %v3161_v12, %v1256_v15 }
 0x1ae   :  { %6868 = vst [vmem:[#allocation85_spill] sm:$0xff] %v4730_v1  ;;  %6869 = vst [vmem:[#allocation86_spill] sm:$0xff] %v4732_v55  ;;  %v907_v3 = vsub.f32 0.0, %v6873_v38  ;;  %v908_v34 = vsub.f32 0.0, %v6874_v0  ;;  %v1320_v54 = vsub.f32 0.0, %v1128_v39  ;;  %v1289_v10 = vsub.f32 0.0, %v1097_v24 }
 0x1af   :  { %6871 = vst [vmem:[#allocation46_spill] sm:$0xff] %v4736_v29  ;;  %6872 = vst [vmem:[#allocation87_spill] sm:$0xff] %v4738_v40  ;;  %v3066_v35 = vadd.f32 -0.2, %v6855_v45  ;;  %v1034_v19 = vadd.f32 0.8, %v970_v48  ;;  %v1609_v42 = vmul.f32 %v3130_v49, %v1225_v31 }
 0x1b0   :  { %v4743_v51 = vmul.f32 80.0, %v1416_v57  ;;  %v4746_v23 = vadd.f32 -0.2, %v6857_v8  ;;  %v3131_v53 = vadd.f32 -0.8, %v6857_v8  ;;  %v1226_v13 = vmax.f32 %v1162_v41, 0.0 }
 0x1b1   :  { %v1002_v15 = vadd.f32 1.0, %v938_v32  ;;  %v1194_v12 = vadd.f32 0.8, %v6870_v26  ;;  %v4751_v16 = vadd.s32 160, %v6876_v27  ;;  %v971_v39 = vadd.f32 1.0, %v907_v3  ;;  %v6878_v8 = vld [vmem:[#allocation56_spill] sm:$0xff] }
 0x1b2   :  { %6875 = vst [vmem:[#allocation53_spill] sm:$0xff] %v4743_v51  ;;  %v972_v24 = vadd.f32 1.0, %v908_v34  ;;  %v1500_v45 = vmul.f32 80.0, %v4431_v9  ;;  %v1692_v48 = vmul.f32 80.0, %v4397_v6  ;;  %v1417_v57 = vmul.f32 %v3066_v35, %v1289_v10  ;;  %v6883_v35 = vld [vmem:[#allocation73_spill] sm:$0xff] }
 0x1b3   :  { %6877 = vst [vmem:[#allocation54_spill] sm:$0xff] %v4751_v16  ;;  %v1098_v31 = vmax.f32 %v1034_v19, 0.0  ;;  %v4756_v49 = vadd.f32 -0.2, %v6870_v26  ;;  %vm6505_vm4 = vcmp.gt.s32.totalorder %v4043_v61, %v4751_v16  ;;  %v940_v41 = vsub.f32 0.0, %v6878_v8  ;;  %v6882_v19 = vld [vmem:[#allocation57_spill] sm:$0xff] }
 0x1b4   :  { %v4763_v32 = vsel %vm4716_vm10, %v1500_v45, %v1692_v48  ;;  %v4766_v3 = vadd.s32 40, %v6876_v27  ;;  %v4772_v9 = vsel %vm4711_vm6, %v4437_v22, %v4433_v17  ;;  %v1066_v6 = vadd.f32 0.8, %v1002_v15 }
 0x1b5   :  { %6879 = vst [vmem:[#allocation56_spill] sm:$0xff] %v4763_v32  ;;  %6881 = vst [vmem:[#allocation89_spill] sm:$0xff] %v4772_v9  ;;  %v909_v34 = vsub.f32 0.0, %v6882_v19  ;;  %v1820_v10 = vsel %vm6505_vm4, %v4763_v32, -1e+30  ;;  %v4783_v45 = vsel %vm4722_vm5, %v4503_v14, %v6883_v35  ;;  %v1610_v22 = vmul.f32 %v3131_v53, %v1226_v13 }
 0x1b6   :  { %6880 = vst [vmem:[#allocation88_spill] sm:$0xff] %v4766_v3  ;;  %6884 = vst [vmem:[#allocation57_spill] sm:$0xff] %v4783_v45  ;;  %v1035_v48 = vadd.f32 0.8, %v971_v39  ;;  %v1036_v40 = vadd.f32 0.8, %v972_v24  ;;  %vm6509_vm0 = vcmp.gt.s32.totalorder %v4022_v46, %v4766_v3  ;;  %v4809_v1 = vmul.f32 %v4727_v37, %v1320_v54 }
 0x1b7   :  { %v1884_v17 = vsel %vm4716_vm10, %v1820_v10, -1e+30  ;;  %v1789_v16 = vsel %vm6509_vm0, %v4772_v9, -1e+30  ;;  %v1854_v14 = vsel %vm4722_vm5, %v4783_v45, -1e+30 }
 0x1b8   :  { %v1967_v15 = vmax.f32 %v1884_v17, -1e+30  ;;  %v4796_v35 = vmul.f32 80.0, %v1609_v42  ;;  %v3163_v39 = vadd.f32 -0.8, %v6870_v26  ;;  %v1004_v24 = vadd.f32 1.0, %v940_v41 }
 0x1b9   :  { %v1853_v32 = vsel %vm4711_vm6, %v1789_v16, -1e+30  ;;  %v1163_v53 = vadd.f32 0.8, %v6873_v38  ;;  %v1164_v13 = vadd.f32 0.8, %v6874_v0 }
 0x1ba   :  { %6885 = vst [vmem:[#allocation73_spill] sm:$0xff] %v4796_v35  ;;  %v973_v17 = vadd.f32 1.0, %v909_v34  ;;  %1968 = vmax.xlane.f32.xlu1 %v1967_v15  ;;  %v1922_v3 = vmax.f32 %v1853_v32, %v1854_v14  ;;  %v4803_v9 = vmul.f32 80.0, %v1417_v57  ;;  %v1258_v51 = vmax.f32 %v1194_v12, 0.0 }
 0x1bb   :  { %v1099_v55 = vmax.f32 %v1035_v48, 0.0  ;;  %v1100_v29 = vmax.f32 %v1036_v40, 0.0  ;;  %v1290_v42 = vsub.f32 0.0, %v1098_v31  ;;  %v4805_v35 = vmul.f32 80.0, %v1610_v22  ;;  %v6886_v22 = vld [vmem:[#allocation58_spill] sm:$0xff] }
 0x1bc   :  { %v1130_v26 = vmax.f32 %v1066_v6, 0.0  ;;  %v3068_v41 = vadd.f32 -0.2, %v6873_v38  ;;  %1923 = vmax.xlane.f32.xlu0 %v1922_v3  ;;  %v3132_v2 = vadd.f32 -0.8, %v6873_v38  ;;  %v1227_v57 = vmax.f32 %v1163_v53, 0.0 }
 0x1bd   :  { %v3069_v34 = vadd.f32 -0.2, %v6874_v0  ;;  %v1068_v32 = vadd.f32 0.8, %v1004_v24  ;;  %v1228_v15 = vmax.f32 %v1164_v13, 0.0  ;;  %v1291_v31 = vsub.f32 0.0, %v1099_v55 }
 0x1be   :  { %v3133_v12 = vadd.f32 -0.8, %v6874_v0  ;;  %v1037_v40 = vadd.f32 0.8, %v973_v17  ;;  %v1292_v48 = vsub.f32 0.0, %v1100_v29  ;;  %v910_v14 = vsub.f32 0.0, %v6886_v22 }
 0x1bf   :  { %v1196_v6 = vadd.f32 0.8, %v6878_v8  ;;  %v4816_v3 = vmul.f32 %v3163_v39, %v1258_v51  ;;  %v2081_v37 = vsel %vm4716_vm10, -1e+30, %v1820_v10  ;;  %v2050_v38 = vsel %vm4711_vm6, -1e+30, %v1789_v16  ;;  %v518_v16 = vpop.permute.xlu1 %517 }
 0x1c0   :  { %v2051_v54 = vsel %vm4722_vm5, -1e+30, %v4783_v45  ;;  %v1418_v0 = vmul.f32 %v4746_v23, %v1290_v42  ;;  %v1322_v55 = vsub.f32 0.0, %v1130_v26  ;;  %v1132_v29 = vmax.f32 %v1068_v32, 0.0  ;;  %v6887_v17 = vld [vmem:[#allocation13_spill] sm:$0xff] }
 0x1c1   :  { %v1165_v24 = vadd.f32 0.8, %v6882_v19  ;;  %v1611_v53 = vmul.f32 %v3132_v2, %v1227_v57  ;;  %v1101_v13 = vmax.f32 %v1037_v40, 0.0  ;;  %v2164_v51 = vmax.f32 %v2081_v37, -1e+30 }
 0x1c2   :  { %v2119_v39 = vmax.f32 %v2050_v38, %v2051_v54  ;;  %vm4829_vm4 = vcmp.eq.s32.totalorder %v6887_v17, %v4083_v43  ;;  %v6888_v10 = vmov 0  ;;  %v1612_v30 = vmul.f32 %v3133_v12, %v1228_v15  ;;  %v6897_v38 = vld [vmem:[#allocation59_spill] sm:$0xff] }
 0x1c3   :  { %v6889_v10 = vsel %vm4829_vm4, 4294967295, %v6888_v10  ;;  %v3101_v45 = vadd.f32 -0.2, %v6878_v8  ;;  %v3165_v23 = vadd.f32 -0.8, %v6878_v8  ;;  %vm4837_vm0 = vcmp.eq.s32.totalorder %v518_v16, %v4085_v44  ;;  %2165 = vmax.xlane.f32.xlu1 %v2164_v51 }
 0x1c4   :  { %6890 = vst [vmem:[#allocation58_spill] sm:$0xff] %v6889_v10  ;;  %v1166_v42 = vadd.f32 0.8, %v6886_v22  ;;  %v6891_v2 = vmov 0  ;;  %v1419_v26 = vmul.f32 %v3068_v41, %v1291_v31  ;;  %v1420_v32 = vmul.f32 %v3069_v34, %v1292_v48  ;;  %2120 = vmax.xlane.f32.xlu0 %v2119_v39 }
 0x1c5   :  { %v6892_v2 = vsel %vm4837_vm0, 4294967295, %v6891_v2  ;;  %v1260_v57 = vmax.f32 %v1196_v6, 0.0  ;;  %v974_v40 = vadd.f32 1.0, %v910_v14  ;;  %vm4843_vm10 = vcmp.eq.s32.totalorder %v6887_v17, %v4085_v44 }
 0x1c6   :  { %6893 = vst [vmem:[#allocation13_spill] sm:$0xff] %v6892_v2  ;;  %v6894_v15 = vmov 0  ;;  %v1324_v8 = vsub.f32 0.0, %v1132_v29  ;;  %v1229_v12 = vmax.f32 %v1165_v24, 0.0  ;;  %v3134_v37 = vadd.f32 -0.8, %v6882_v19 }
 0x1c7   :  { %v6895_v15 = vsel %vm4843_vm10, 4294967295, %v6894_v15  ;;  %v942_v54 = vsub.f32 0.0, %v6897_v38  ;;  %v4849_v16 = vmul.f32 80.0, %v1418_v0  ;;  %v4852_v41 = vmul.f32 %v4756_v49, %v1322_v55 }
 0x1c8   :  { %6896 = vst [vmem:[#allocation90_spill] sm:$0xff] %v6895_v15  ;;  %v1293_v34 = vsub.f32 0.0, %v1101_v13  ;;  %v3070_v31 = vadd.f32 -0.2, %v6882_v19  ;;  %v4855_v48 = vmul.f32 80.0, %v1611_v53  ;;  %v1230_v6 = vmax.f32 %v1166_v42, 0.0 }
 0x1c9   :  { %v3135_v14 = vadd.f32 -0.8, %v6886_v22  ;;  %v1198_v29 = vadd.f32 0.8, %v6897_v38  ;;  %v4859_v24 = vmul.f32 80.0, %v1419_v26  ;;  %v4861_v51 = vmul.f32 80.0, %v1612_v30 }
 0x1ca   :  { %v4863_v39 = vmul.f32 %v3165_v23, %v1260_v57  ;;  %v1038_v0 = vadd.f32 0.8, %v974_v40  ;;  %v4865_v17 = vmul.f32 80.0, %v1420_v32  ;;  %v4867_v49 = vmul.f32 %v3101_v45, %v1324_v8  ;;  %v6899_v30 = vld [vmem:[#allocation27_spill] sm:$0xff]  ;;  %v521_v32 = vpop.permute.xlu0 %520  ;;  %v6906_v8 = vld [vmem:[#allocation74_spill] sm:$0xff] }
 0x1cb   :  { %v1613_v55 = vmul.f32 %v3134_v37, %v1229_v12  ;;  %v1006_v19 = vadd.f32 1.0, %v942_v54  ;;  %v1421_v53 = vmul.f32 %v3070_v31, %v1293_v34  ;;  %v4870_v13 = vadd.f32 -0.2, %v6886_v22 }
 0x1cc   :  { %v4873_v42 = vadd.s32 168, %v6876_v27  ;;  %v1502_v26 = vmul.f32 80.0, %v4507_v18  ;;  %vm4878_vm5 = vcmp.eq.s32.totalorder %v6899_v30, %v4083_v43  ;;  %v6900_v23 = vmov 0 }
 0x1cd   :  { %v6901_v23 = vsel %vm4878_vm5, 4294967295, %v6900_v23  ;;  %vm4884_vm6 = vcmp.eq.s32.totalorder %v6899_v30, %v4085_v44  ;;  %v6903_v45 = vmov 0  ;;  %v1614_v22 = vmul.f32 %v3135_v14, %v1230_v6 }
 0x1ce   :  { %6898 = vst [vmem:[#allocation59_spill] sm:$0xff] %v4873_v42  ;;  %6902 = vst [vmem:[#allocation27_spill] sm:$0xff] %v6901_v23  ;;  %v6904_v45 = vsel %vm4884_vm6, 4294967295, %v6903_v45  ;;  %v1262_v57 = vmax.f32 %v1198_v29, 0.0  ;;  %v3167_v40 = vadd.f32 -0.8, %v6897_v38  ;;  %vm4891_vm13 = vcmp.eq.s32.totalorder %v521_v32, %v4085_v44  ;;  %v527_v2 = vpop.permute.xlu0 %526 }
 0x1cf   :  { %6905 = vst [vmem:[#allocation91_spill] sm:$0xff] %v6904_v45  ;;  %v1694_v12 = vmul.f32 80.0, %v6906_v8  ;;  %v6907_v18 = vmov 0  ;;  %v1102_v37 = vmax.f32 %v1038_v0, 0.0  ;;  %vm6522_vm1 = vcmp.gt.s32.totalorder %v4043_v61, %v4873_v42 }
 0x1d0   :  { %v6908_v18 = vsel %vm4891_vm13, 4294967295, %v6907_v18  ;;  %v4898_v54 = vadd.s32 48, %v6876_v27  ;;  %v4904_v34 = vsel %vm4829_vm4, %v4513_v50, %v4509_v28  ;;  %v4906_v31 = vmul.f32 80.0, %v1613_v55  ;;  %v524_v50 = vpop.permute.xlu1 %523 }
 0x1d1   :  { %6909 = vst [vmem:[#allocation74_spill] sm:$0xff] %v6908_v18  ;;  %6911 = vst [vmem:[#allocation93_spill] sm:$0xff] %v4904_v34  ;;  %v1070_v6 = vadd.f32 0.8, %v1006_v19  ;;  %v4909_v14 = vadd.f32 -0.2, %v6897_v38  ;;  %v4913_v29 = vsel %vm4837_vm0, %v1502_v26, %v1694_v12  ;;  %v4927_v28 = vsel %vm4843_vm10, %v4518_v20, %v4511_v59 }
 0x1d2   :  { %6910 = vst [vmem:[#allocation92_spill] sm:$0xff] %v4898_v54  ;;  %6912 = vst [vmem:[#allocation94_spill] sm:$0xff] %v4913_v29  ;;  %v4915_v0 = vmul.f32 80.0, %v1421_v53  ;;  %v1822_v30 = vsel %vm6522_vm1, %v4913_v29, -1e+30  ;;  %vm6531_vm15 = vcmp.gt.s32.totalorder %v4022_v46, %v4898_v54  ;;  %v4929_v38 = vmul.f32 80.0, %v1614_v22 }
 0x1d3   :  { %6913 = vst [vmem:[#allocation95_spill] sm:$0xff] %v4927_v28  ;;  %v1886_v55 = vsel %vm4837_vm0, %v1822_v30, -1e+30  ;;  %v1791_v19 = vsel %vm6531_vm15, %v4904_v34, -1e+30  ;;  %v4938_v53 = vadd.s32 176, %v6876_v27  ;;  %vm4947_vm11 = vcmp.eq.s32.totalorder %v524_v50, %v4085_v44 }
 0x1d4   :  { %v6915_v26 = vld [vmem:[#allocation24_spill] sm:$0xff]  ;;  %v6916_v32 = vmov 0  ;;  %v6919_v59 = vmov 0  ;;  %v1294_v20 = vsub.f32 0.0, %v1102_v37  ;;  %v4951_v22 = vmul.f32 %v3167_v40, %v1262_v57 }
 0x1d5   :  { %6914 = vst [vmem:[#allocation96_spill] sm:$0xff] %v4938_v53  ;;  %vm4942_vm1 = vcmp.eq.s32.totalorder %v6915_v26, %v4083_v43  ;;  %v6920_v59 = vsel %vm4947_vm11, 4294967295, %v6919_v59  ;;  %v1970_v8 = vmax.f32 %v1886_v55, -1e+30  ;;  %v1855_v12 = vsel %vm4829_vm4, %v1791_v19, -1e+30 }
 0x1d6   :  { %v6917_v32 = vsel %vm4942_vm1, 4294967295, %v6916_v32  ;;  %6921 = vst [vmem:[#allocation97_spill] sm:$0xff] %v6920_v59  ;;  %v1134_v42 = vmax.f32 %v1070_v6, 0.0  ;;  %v1856_v29 = vsel %vm4843_vm10, %v4927_v28, -1e+30  ;;  %v1504_v50 = vmul.f32 80.0, %v4520_v56 }
 0x1d7   :  { %6918 = vst [vmem:[#allocation24_spill] sm:$0xff] %v6917_v32  ;;  %v2083_v54 = vsel %vm4837_vm0, -1e+30, %v1822_v30  ;;  %v6922_v34 = vld [vmem:[#allocation60_spill] sm:$0xff]  ;;  %1971 = vmax.xlane.f32.xlu0 %v1970_v8  ;;  %v1925_v57 = vmax.f32 %v1855_v12, %v1856_v29  ;;  %v2052_v40 = vsel %vm4829_vm4, -1e+30, %v1791_v19  ;;  %vm4969_vm15 = vcmp.eq.s32.totalorder %v6915_v26, %v4085_v44 }
 0x1d8   :  { %v911_v4 = vsub.f32 0.0, %v6922_v34  ;;  %v4963_v37 = vadd.f32 0.8, %v6922_v34  ;;  %v6923_v6 = vmov 0  ;;  %v2053_v56 = vsel %vm4843_vm10, -1e+30, %v4927_v28 }
 0x1d9   :  { %v6924_v6 = vsel %vm4969_vm15, 4294967295, %v6923_v6  ;;  %v6926_v30 = vld [vmem:[#allocation31_spill] sm:$0xff]  ;;  %v4980_v29 = vadd.s32 56, %v6876_v27  ;;  %1926 = vmax.xlane.f32.xlu1 %v1925_v57  ;;  %v2167_v19 = vmax.f32 %v2083_v54, -1e+30  ;;  %v4986_v26 = vsel %vm4878_vm5, %v4574_v25, %v4566_v60  ;;  %v6932_v25 = vld [vmem:[#allocation78_spill] sm:$0xff] }
 0x1da   :  { %6925 = vst [vmem:[#allocation60_spill] sm:$0xff] %v6924_v6  ;;  %v1696_v55 = vmul.f32 80.0, %v6926_v30  ;;  %6928 = vst [vmem:[#allocation98_spill] sm:$0xff] %v4986_v26  ;;  %v4992_v8 = vsel %vm4884_vm6, %v4581_v47, %v4571_v7  ;;  %v4995_v12 = vadd.s32 184, %v6876_v27  ;;  %v1506_v54 = vmul.f32 80.0, %v6932_v25  ;;  %v6933_v57 = vld [vmem:[#allocation33_spill] sm:$0xff] }
 0x1db   :  { %6927 = vst [vmem:[#allocation31_spill] sm:$0xff] %v4980_v29  ;;  %6929 = vst [vmem:[#allocation99_spill] sm:$0xff] %v4992_v8  ;;  %vm6548_vm0 = vcmp.gt.s32.totalorder %v4022_v46, %v4980_v29  ;;  %v1858_v60 = vsel %vm4884_vm6, %v4992_v8, -1e+30  ;;  %vm5009_vm10 = vcmp.eq.s32.totalorder %v6933_v57, %v4083_v43  ;;  %v6934_v7 = vmov 0  ;;  %2168 = vmax.xlane.f32.xlu0 %v2167_v19  ;;  %v6938_v28 = vld [vmem:[#allocation37_spill] sm:$0xff] }
 0x1dc   :  { %6930 = vst [vmem:[#allocation100_spill] sm:$0xff] %v4995_v12  ;;  %v4999_v30 = vsel %vm4891_vm13, %v1504_v50, %v1696_v55  ;;  %v6935_v7 = vsel %vm5009_vm10, 4294967295, %v6934_v7  ;;  %v2122_v47 = vmax.f32 %v2052_v40, %v2053_v56  ;;  %vm6937_vm4 = vcmp.gt.s32.totalorder %v4043_v61, %v4938_v53 }
 0x1dd   :  { %6931 = vst [vmem:[#allocation101_spill] sm:$0xff] %v4999_v30  ;;  %6936 = vst [vmem:[#allocation78_spill] sm:$0xff] %v6935_v7  ;;  %v1824_v50 = vsel %vm6937_vm4, %v4999_v30, -1e+30  ;;  %v1793_v55 = vsel %vm6548_vm0, %v4986_v26, -1e+30  ;;  %vm6554_vm14 = vcmp.gt.s32.totalorder %v4043_v61, %v4995_v12  ;;  %vm5029_vm4 = vcmp.eq.s32.totalorder %v527_v2, %v4085_v44 }
 0x1de   :  { %v1698_v25 = vmul.f32 80.0, %v6938_v28  ;;  %v975_v15 = vadd.f32 1.0, %v911_v4  ;;  %v1888_v10 = vsel %vm4891_vm13, %v1824_v50, -1e+30  ;;  %v1857_v40 = vsel %vm4878_vm5, %v1793_v55, -1e+30  ;;  %2123 = vmax.xlane.f32.xlu1 %v2122_v47 }
 0x1df   :  { %v6939_v56 = vmov 0  ;;  %v5033_v19 = vsub.f32 0.0, %v1134_v42  ;;  %v1231_v28 = vmax.f32 %v4963_v37, 0.0  ;;  %v1928_v4 = vmax.f32 %v1857_v40, %v1858_v60  ;;  %v6947_v60 = vld [vmem:[#allocation79_spill] sm:$0xff] }
 0x1e0   :  { %v6940_v56 = vsel %vm5029_vm4, 4294967295, %v6939_v56  ;;  %v2055_v53 = vsel %vm4884_vm6, -1e+30, %v4992_v8  ;;  %vm5041_vm0 = vcmp.eq.s32.totalorder %v6933_v57, %v4085_v44  ;;  %v6942_v30 = vmov 0 }
 0x1e1   :  { %6941 = vst [vmem:[#allocation33_spill] sm:$0xff] %v6940_v56  ;;  %v6943_v30 = vsel %vm5041_vm0, 4294967295, %v6942_v30  ;;  %v2054_v2 = vsel %vm4878_vm5, -1e+30, %v1793_v55  ;;  %v5049_v42 = vsel %vm4947_vm11, %v1506_v54, %v1698_v25  ;;  %v5052_v37 = vadd.s32 64, %v6876_v27  ;;  %1929 = vmax.xlane.f32.xlu0 %v1928_v4  ;;  %v6950_v4 = vld [vmem:[#allocation41_spill] sm:$0xff] }
 0x1e2   :  { %6944 = vst [vmem:[#allocation37_spill] sm:$0xff] %v6943_v30  ;;  %6945 = vst [vmem:[#allocation102_spill] sm:$0xff] %v5049_v42  ;;  %v5058_v47 = vsel %vm4942_vm1, %v4626_v33, %v6947_v60  ;;  %v1422_v57 = vmul.f32 %v4870_v13, %v1294_v20  ;;  %v5062_v40 = vadd.f32 -0.2, %v6922_v34  ;;  %v1973_v29 = vmax.f32 %v1888_v10, -1e+30 }
 0x1e3   :  { %6946 = vst [vmem:[#allocation103_spill] sm:$0xff] %v5052_v37  ;;  %6948 = vst [vmem:[#allocation79_spill] sm:$0xff] %v5058_v47  ;;  %v1826_v54 = vsel %vm6554_vm14, %v5049_v42, -1e+30  ;;  %v5068_v55 = vadd.f32 0.8, %v975_v15  ;;  %vm6562_vm6 = vcmp.gt.s32.totalorder %v4022_v46, %v5052_v37  ;;  %v2125_v10 = vmax.f32 %v2054_v2, %v2055_v53 }
 0x1e4   :  { %v3136_v25 = vadd.f32 -0.8, %v6922_v34  ;;  %v2085_v33 = vsel %vm4891_vm13, -1e+30, %v1824_v50  ;;  %v6949_v13 = vld [vmem:[#allocation64_spill] sm:$0xff]  ;;  %1974 = vmax.xlane.f32.xlu1 %v1973_v29  ;;  %v5080_v60 = vsel %vm4969_vm15, %v4674_v11, %v6950_v4  ;;  %v530_v34 = vpop.permute.xlu1 %529  ;;  %v5092_v53 = vadd.s32 192, %v6876_v27 }
 0x1e5   :  { %v912_v20 = vsub.f32 0.0, %v6949_v13  ;;  %6951 = vst [vmem:[#allocation64_spill] sm:$0xff] %v5080_v60  ;;  %v1795_v15 = vsel %vm6562_vm6, %v5058_v47, -1e+30  ;;  %v5087_v50 = vadd.f32 0.8, %v6949_v13  ;;  %vm5096_vm14 = vcmp.eq.s32.totalorder %v530_v34, %v4085_v44  ;;  %2126 = vmax.xlane.f32.xlu0 %v2125_v10 }
 0x1e6   :  { %v1890_v12 = vsel %vm4947_vm11, %v1826_v54, -1e+30  ;;  %6952 = vst [vmem:[#allocation41_spill] sm:$0xff] %v5092_v53  ;;  %v1508_v29 = vmul.f32 80.0, %v4676_v58  ;;  %v6953_v11 = vmov 0  ;;  %v6956_v2 = vld [vmem:[#allocation65_spill] sm:$0xff]  ;;  %v1615_v8 = vmul.f32 %v3136_v25, %v1231_v28 }
 0x1e7   :  { %v6954_v11 = vsel %vm5096_vm14, 4294967295, %v6953_v11  ;;  %v944_v4 = vsub.f32 0.0, %v6956_v2  ;;  %v2170_v42 = vmax.f32 %v2085_v33, -1e+30  ;;  %v6957_v37 = vld [vmem:[#allocation80_spill] sm:$0xff]  ;;  %v5103_v18 = vadd.s32 72, %v6876_v27 }
 0x1e8   :  { %6955 = vst [vmem:[#allocation104_spill] sm:$0xff] %v6954_v11  ;;  %v1700_v47 = vmul.f32 80.0, %v6957_v37  ;;  %v1859_v26 = vsel %vm4942_vm1, %v1795_v15, -1e+30  ;;  %v1860_v58 = vsel %vm4969_vm15, %v5080_v60, -1e+30  ;;  %v5114_v34 = vsel %vm5009_vm10, %v4690_v62, %v4681_v21 }
 0x1e9   :  { %6958 = vst [vmem:[#allocation65_spill] sm:$0xff] %v5103_v18  ;;  %6959 = vst [vmem:[#allocation80_spill] sm:$0xff] %v5114_v34  ;;  %v6960_v33 = vld [vmem:[#allocation29_spill] sm:$0xff]  ;;  %v6961_v37 = vmov 0  ;;  %v5123_v28 = vadd.f32 -0.2, %v6949_v13  ;;  %2171 = vmax.xlane.f32.xlu1 %v2170_v42  ;;  %vm6571_vm13 = vcmp.gt.s32.totalorder %v4022_v46, %v5103_v18  ;;  %v5146_v42 = vsel %vm5041_vm0, %v4693_v36, %v4683_v5 }
 0x1ea   :  { %vm5118_vm6 = vcmp.eq.s32.totalorder %v6960_v33, %v4083_v43  ;;  %v3137_v25 = vadd.f32 -0.8, %v6949_v13  ;;  %v1976_v10 = vmax.f32 %v1890_v12, -1e+30  ;;  %v5129_v45 = vadd.f32 0.8, %v6956_v2 }
 0x1eb   :  { %v6962_v37 = vsel %vm5118_vm6, 4294967295, %v6961_v37  ;;  %v2087_v21 = vsel %vm4947_vm11, -1e+30, %v1826_v54  ;;  %v5137_v62 = vsel %vm5029_vm4, %v1508_v29, %v1700_v47  ;;  %v1931_v13 = vmax.f32 %v1859_v26, %v1860_v58  ;;  %6965 = vst [vmem:[#allocation106_spill] sm:$0xff] %v5146_v42  ;;  %v6970_v36 = vld [vmem:[#allocation45_spill] sm:$0xff] }
 0x1ec   :  { %6963 = vst [vmem:[#allocation29_spill] sm:$0xff] %v6962_v37  ;;  %6964 = vst [vmem:[#allocation105_spill] sm:$0xff] %v5137_v62  ;;  %1977 = vmax.xlane.f32.xlu0 %v1976_v10  ;;  %v2057_v12 = vsel %vm4969_vm15, -1e+30, %v5080_v60  ;;  %v1797_v54 = vsel %vm6571_vm13, %v5114_v34, -1e+30  ;;  %vm5154_vm5 = vcmp.eq.s32.totalorder %v6960_v33, %v4085_v44  ;;  %vm6971_vm13 = vcmp.gt.s32.totalorder %v4043_v61, %v5092_v53 }
 0x1ed   :  { %v6966_v47 = vmov 0  ;;  %v2056_v26 = vsel %vm4942_vm1, -1e+30, %v1795_v15  ;;  %v5161_v29 = vadd.s32 200, %v6876_v27  ;;  %v1510_v5 = vmul.f32 80.0, %v4698_v52  ;;  %1932 = vmax.xlane.f32.xlu1 %v1931_v13 }
 0x1ee   :  { %v6967_v47 = vsel %vm5154_vm5, 4294967295, %v6966_v47  ;;  %v1702_v58 = vmul.f32 80.0, %v6970_v36  ;;  %v5165_v10 = vmul.f32 80.0, %v1422_v57  ;;  %v1103_v18 = vmax.f32 %v5068_v55, 0.0  ;;  %v6973_v55 = vld [vmem:[#allocation42_spill] sm:$0xff] }
 0x1ef   :  { %6968 = vst [vmem:[#allocation107_spill] sm:$0xff] %v6967_v47  ;;  %6969 = vst [vmem:[#allocation108_spill] sm:$0xff] %v5161_v29  ;;  %v2173_v34 = vmax.f32 %v2087_v21, -1e+30  ;;  %v1828_v33 = vsel %vm6971_vm13, %v5137_v62, -1e+30  ;;  %vm5182_vm11 = vcmp.eq.s32.totalorder %v6973_v55, %v4083_v43  ;;  %v2128_v53 = vmax.f32 %v2056_v26, %v2057_v12  ;;  %v533_v62 = vpop.permute.xlu0 %532 }
 0x1f0   :  { %v976_v59 = vadd.f32 1.0, %v912_v20  ;;  %v1861_v15 = vsel %vm5009_vm10, %v1797_v54, -1e+30  ;;  %v1862_v52 = vsel %vm5041_vm0, %v5146_v42, -1e+30  ;;  %v5178_v57 = vadd.s32 80, %v6876_v27 }
 0x1f1   :  { %v6974_v21 = vmov 0  ;;  %v5186_v13 = vmul.f32 80.0, %v1615_v8  ;;  %v1232_v20 = vmax.f32 %v5087_v50, 0.0  ;;  %v1008_v36 = vadd.f32 1.0, %v944_v4  ;;  %2174 = vmax.xlane.f32.xlu0 %v2173_v34  ;;  %2129 = vmax.xlane.f32.xlu1 %v2128_v53  ;;  %v6984_v26 = vld [vmem:[#allocation85_spill] sm:$0xff] }
 0x1f2   :  { %6972 = vst [vmem:[#allocation45_spill] sm:$0xff] %v5178_v57  ;;  %v6975_v21 = vsel %vm5182_vm11, 4294967295, %v6974_v21  ;;  %v1264_v60 = vmax.f32 %v5129_v45, 0.0  ;;  %v1892_v6 = vsel %vm5029_vm4, %v1828_v33, -1e+30  ;;  %v5196_v32 = vsel %vm5096_vm14, %v1510_v5, %v1702_v58 }
 0x1f3   :  { %6976 = vst [vmem:[#allocation42_spill] sm:$0xff] %v6975_v21  ;;  %6977 = vst [vmem:[#allocation109_spill] sm:$0xff] %v5196_v32  ;;  %vm5199_vm15 = vcmp.eq.s32.totalorder %v533_v62, %v4085_v44  ;;  %v6978_v8 = vmov 0  ;;  %v1295_v50 = vsub.f32 0.0, %v1103_v18  ;;  %v5204_v4 = vadd.f32 -0.2, %v6956_v2 }
 0x1f4   :  { %v6979_v8 = vsel %vm5199_vm15, 4294967295, %v6978_v8  ;;  %v3169_v45 = vadd.f32 -0.8, %v6956_v2  ;;  %v1934_v34 = vmax.f32 %v1861_v15, %v1862_v52  ;;  %vm5209_vm13 = vcmp.eq.s32.totalorder %v6973_v55, %v4085_v44  ;;  %v6985_v2 = vld [vmem:[#allocation46_spill] sm:$0xff] }
 0x1f5   :  { %6980 = vst [vmem:[#allocation110_spill] sm:$0xff] %v6979_v8  ;;  %v6981_v12 = vmov 0  ;;  %v2058_v62 = vsel %vm5009_vm10, -1e+30, %v1797_v54  ;;  %v2059_v18 = vsel %vm5041_vm0, -1e+30, %v5146_v42  ;;  %vm6596_vm1 = vcmp.gt.s32.totalorder %v4022_v46, %v5178_v57 }
 0x1f6   :  { %v6982_v12 = vsel %vm5209_vm13, 4294967295, %v6981_v12  ;;  %v5224_v53 = vsel %vm5118_vm6, %v6985_v2, %v6984_v26  ;;  %v5228_v5 = vmul.f32 %v4909_v14, %v5033_v19  ;;  %v1040_v58 = vadd.f32 0.8, %v976_v59  ;;  %1935 = vmax.xlane.f32.xlu0 %v1934_v34  ;;  %v6989_v2 = vld [vmem:[#allocation66_spill] sm:$0xff] }
 0x1f7   :  { %6983 = vst [vmem:[#allocation111_spill] sm:$0xff] %v6982_v12  ;;  %6986 = vst [vmem:[#allocation85_spill] sm:$0xff] %v5224_v53  ;;  %v1979_v15 = vmax.f32 %v1892_v6, -1e+30  ;;  %vm6987_vm0 = vcmp.gt.s32.totalorder %v4043_v61, %v5161_v29  ;;  %v1616_v52 = vmul.f32 %v3137_v25, %v1232_v20  ;;  %v1072_v55 = vadd.f32 0.8, %v1008_v36  ;;  %v536_v20 = vpop.permute.xlu1 %535 }
 0x1f8   :  { %v1830_v54 = vsel %vm6987_vm0, %v5196_v32, -1e+30  ;;  %v2089_v42 = vsel %vm5029_vm4, -1e+30, %v1828_v33  ;;  %v5237_v26 = vadd.s32 88, %v6876_v27  ;;  %v913_v30 = vsub.f32 0.0, %v6989_v2 }
 0x1f9   :  { %1980 = vmax.xlane.f32.xlu1 %v1979_v15  ;;  %v2131_v14 = vmax.f32 %v2058_v62, %v2059_v18  ;;  %v6990_v59 = vld [vmem:[#allocation86_spill] sm:$0xff]  ;;  %v6991_v6 = vld [vmem:[#allocation53_spill] sm:$0xff]  ;;  %v1799_v25 = vsel %vm6596_vm1, %v5224_v53, -1e+30  ;;  %v1894_v33 = vsel %vm5096_vm14, %v1830_v54, -1e+30  ;;  %vm5258_vm0 = vcmp.eq.s32.totalorder %v536_v20, %v4085_v44 }
 0x1fa   :  { %6988 = vst [vmem:[#allocation46_spill] sm:$0xff] %v5237_v26  ;;  %v5244_v19 = vsel %vm5154_vm5, %v6991_v6, %v6990_v59  ;;  %v5253_v36 = vadd.s32 208, %v6876_v27  ;;  %v1512_v34 = vmul.f32 80.0, %v4809_v1  ;;  %v6994_v62 = vld [vmem:[#allocation87_spill] sm:$0xff]  ;;  %v6995_v15 = vmov 0  ;;  %v6998_v20 = vld [vmem:[#allocation73_spill] sm:$0xff] }
 0x1fb   :  { %6992 = vst [vmem:[#allocation66_spill] sm:$0xff] %v5244_v19  ;;  %v1704_v18 = vmul.f32 80.0, %v6994_v62  ;;  %v6996_v15 = vsel %vm5258_vm0, 4294967295, %v6995_v15  ;;  %v1423_v59 = vmul.f32 %v5062_v40, %v1295_v50  ;;  %v1104_v6 = vmax.f32 %v1040_v58, 0.0  ;;  %2132 = vmax.xlane.f32.xlu0 %v2131_v14  ;;  %v7004_v62 = vld [vmem:[#allocation68_spill] sm:$0xff] }
 0x1fc   :  { %6993 = vst [vmem:[#allocation86_spill] sm:$0xff] %v5253_v36  ;;  %6997 = vst [vmem:[#allocation53_spill] sm:$0xff] %v6996_v15  ;;  %v5263_v29 = vmul.f32 %v3169_v45, %v1264_v60  ;;  %v2176_v32 = vmax.f32 %v2089_v42, -1e+30  ;;  %v1863_v56 = vsel %vm5118_vm6, %v1799_v25, -1e+30  ;;  %v5276_v40 = vsel %vm5182_vm11, %v4803_v9, %v6998_v20 }
 0x1fd   :  { %v1864_v1 = vsel %vm5154_vm5, %v5244_v19, -1e+30  ;;  %6999 = vst [vmem:[#allocation87_spill] sm:$0xff] %v5276_v40  ;;  %v7000_v60 = vld [vmem:[#allocation36_spill] sm:$0xff]  ;;  %v7001_v42 = vmov 0  ;;  %v1136_v50 = vmax.f32 %v1072_v55, 0.0  ;;  %v5294_v9 = vsel %vm5199_vm15, %v1512_v34, %v1704_v18 }
 0x1fe   :  { %vm5280_vm4 = vcmp.eq.s32.totalorder %v7000_v60, %v4083_v43  ;;  %v977_v45 = vadd.f32 1.0, %v913_v30  ;;  %v5285_v58 = vadd.f32 0.8, %v6989_v2  ;;  %2177 = vmax.xlane.f32.xlu1 %v2176_v32  ;;  %v1982_v14 = vmax.f32 %v1894_v33, -1e+30  ;;  %7005 = vst [vmem:[#allocation36_spill] sm:$0xff] %v5294_v9 }
 0x1ff   :  { %v7002_v42 = vsel %vm5280_vm4, 4294967295, %v7001_v42  ;;  %v914_v57 = vsub.f32 0.0, %v7004_v62  ;;  %v2091_v53 = vsel %vm5096_vm14, -1e+30, %v1830_v54  ;;  %v1937_v55 = vmax.f32 %v1863_v56, %v1864_v1 }
 0x200   :  { %7003 = vst [vmem:[#allocation73_spill] sm:$0xff] %v7002_v42  ;;  %1983 = vmax.xlane.f32.xlu0 %v1982_v14  ;;  %v2060_v30 = vsel %vm5118_vm6, -1e+30, %v1799_v25  ;;  %v5302_v32 = vsel %vm5209_vm13, %v4849_v16, %v4805_v35  ;;  %vm7007_vm14 = vcmp.gt.s32.totalorder %v4022_v46, %v5237_v26  ;;  %vm5310_vm1 = vcmp.eq.s32.totalorder %v7000_v60, %v4085_v44 }
 0x201   :  { %7006 = vst [vmem:[#allocation68_spill] sm:$0xff] %v5302_v32  ;;  %v1801_v54 = vsel %vm7007_vm14, %v5276_v40, -1e+30  ;;  %v7008_v33 = vmov 0  ;;  %v2061_v56 = vsel %vm5154_vm5, -1e+30, %v5244_v19  ;;  %vm7012_vm14 = vcmp.gt.s32.totalorder %v4043_v61, %v5253_v36 }
 0x202   :  { %v7009_v33 = vsel %vm5310_vm1, 4294967295, %v7008_v33  ;;  %v5318_v25 = vadd.s32 216, %v6876_v27  ;;  %v1514_v35 = vmul.f32 80.0, %v4852_v41  ;;  %v1706_v16 = vmul.f32 80.0, %v4816_v3  ;;  %1938 = vmax.xlane.f32.xlu1 %v1937_v55 }
 0x203   :  { %7010 = vst [vmem:[#allocation112_spill] sm:$0xff] %v7009_v33  ;;  %v5322_v34 = vmul.f32 80.0, %v1423_v59  ;;  %v5324_v18 = vmul.f32 80.0, %v1616_v52  ;;  %v2179_v1 = vmax.f32 %v2091_v53, -1e+30  ;;  %v1296_v60 = vsub.f32 0.0, %v1104_v6 }
 0x204   :  { %7011 = vst [vmem:[#allocation113_spill] sm:$0xff] %v5318_v25  ;;  %v1832_v20 = vsel %vm7012_vm14, %v5294_v9, -1e+30  ;;  %v1865_v14 = vsel %vm5182_vm11, %v1801_v54, -1e+30  ;;  %v5336_v3 = vadd.s32 96, %v6876_v27  ;;  %v2134_v36 = vmax.f32 %v2060_v30, %v2061_v56  ;;  %v539_v9 = vpop.permute.xlu0 %538 }
 0x205   :  { %v1866_v41 = vsel %vm5209_vm13, %v5302_v32, -1e+30  ;;  %v7014_v52 = vld [vmem:[#allocation49_spill] sm:$0xff]  ;;  %v7015_v53 = vmov 0  ;;  %v1328_v59 = vsub.f32 0.0, %v1136_v50  ;;  %2180 = vmax.xlane.f32.xlu0 %v2179_v1  ;;  %v978_v11 = vadd.f32 1.0, %v914_v57 }
 0x206   :  { %7013 = vst [vmem:[#allocation114_spill] sm:$0xff] %v5336_v3  ;;  %vm5340_vm5 = vcmp.eq.s32.totalorder %v7014_v52, %v4083_v43  ;;  %v1041_v55 = vadd.f32 0.8, %v977_v45  ;;  %v5345_v6 = vadd.f32 -0.2, %v6989_v2  ;;  %v5353_v40 = vsel %vm5258_vm0, %v1514_v35, %v1706_v16  ;;  %v7022_v57 = vld [vmem:[#allocation69_spill] sm:$0xff]  ;;  %2135 = vmax.xlane.f32.xlu1 %v2134_v36 }
 0x207   :  { %v7016_v53 = vsel %vm5340_vm5, 4294967295, %v7015_v53  ;;  %v1896_v26 = vsel %vm5199_vm15, %v1832_v20, -1e+30  ;;  %7018 = vst [vmem:[#allocation115_spill] sm:$0xff] %v5353_v40  ;;  %vm5356_vm6 = vcmp.eq.s32.totalorder %v539_v9, %v4085_v44  ;;  %v7019_v50 = vmov 0 }
 0x208   :  { %7017 = vst [vmem:[#allocation49_spill] sm:$0xff] %v7016_v53  ;;  %v7020_v50 = vsel %vm5356_vm6, 4294967295, %v7019_v50  ;;  %v1233_v45 = vmax.f32 %v5285_v58, 0.0  ;;  %v3138_v30 = vadd.f32 -0.8, %v6989_v2  ;;  %v946_v56 = vsub.f32 0.0, %v7022_v57 }
 0x209   :  { %7021 = vst [vmem:[#allocation116_spill] sm:$0xff] %v7020_v50  ;;  %v1940_v1 = vmax.f32 %v1865_v14, %v1866_v41  ;;  %vm5365_vm14 = vcmp.eq.s32.totalorder %v7014_v52, %v4085_v44  ;;  %v7023_v19 = vmov 0  ;;  %v2062_v9 = vsel %vm5182_vm11, -1e+30, %v1801_v54 }
 0x20a   :  { %v7024_v19 = vsel %vm5365_vm14, 4294967295, %v7023_v19  ;;  %v2063_v35 = vsel %vm5209_vm13, -1e+30, %v5302_v32  ;;  %vm6619_vm10 = vcmp.gt.s32.totalorder %v4022_v46, %v5336_v3  ;;  %v5380_v2 = vsel %vm5280_vm4, %v4859_v24, %v4855_v48 }
 0x20b   :  { %7025 = vst [vmem:[#allocation69_spill] sm:$0xff] %v7024_v19  ;;  %7026 = vst [vmem:[#allocation117_spill] sm:$0xff] %v5380_v2  ;;  %v1424_v36 = vmul.f32 %v5123_v28, %v1296_v60  ;;  %v5384_v58 = vadd.f32 0.8, %v7004_v62  ;;  %v1985_v16 = vmax.f32 %v1896_v26, -1e+30  ;;  %1941 = vmax.xlane.f32.xlu0 %v1940_v1  ;;  %vm7027_vm13 = vcmp.gt.s32.totalorder %v4043_v61, %v5318_v25  ;;  %v542_v60 = vpop.permute.xlu1 %541 }
 0x20c   :  { %v1834_v54 = vsel %vm7027_vm13, %v5353_v40, -1e+30  ;;  %v1105_v14 = vmax.f32 %v1041_v55, 0.0  ;;  %v1042_v41 = vadd.f32 0.8, %v978_v11  ;;  %v5393_v48 = vadd.s32 104, %v6876_v27 }
 0x20d   :  { %v2093_v52 = vsel %vm5199_vm15, -1e+30, %v1832_v20  ;;  %v1010_v24 = vadd.f32 1.0, %v946_v56  ;;  %1986 = vmax.xlane.f32.xlu1 %v1985_v16  ;;  %v2137_v28 = vmax.f32 %v2062_v9, %v2063_v35  ;;  %v5399_v26 = vsel %vm5310_vm1, %v4865_v17, %v4861_v51 }
 0x20e   :  { %7028 = vst [vmem:[#allocation118_spill] sm:$0xff] %v5393_v48  ;;  %7029 = vst [vmem:[#allocation119_spill] sm:$0xff] %v5399_v26  ;;  %v1803_v11 = vsel %vm6619_vm10, %v5380_v2, -1e+30  ;;  %v1898_v20 = vsel %vm5258_vm0, %v1834_v54, -1e+30  ;;  %vm5413_vm13 = vcmp.eq.s32.totalorder %v542_v60, %v4085_v44  ;;  %v5418_v17 = vmul.f32 %v5204_v4, %v1328_v59 }
 0x20f   :  { %v5408_v55 = vadd.s32 224, %v6876_v27  ;;  %v1516_v56 = vmul.f32 80.0, %v4867_v49  ;;  %v1708_v1 = vmul.f32 80.0, %v4863_v39  ;;  %v7031_v51 = vmov 0  ;;  %2138 = vmax.xlane.f32.xlu0 %v2137_v28  ;;  %v7035_v4 = vld [vmem:[#allocation43_spill] sm:$0xff] }
 0x210   :  { %v7032_v51 = vsel %vm5413_vm13, 4294967295, %v7031_v51  ;;  %v3075_v9 = vadd.f32 -0.2, %v7004_v62  ;;  %v3139_v35 = vadd.f32 -0.8, %v7004_v62  ;;  %v5433_v49 = vsel %vm5340_vm5, %v4915_v0, %v4906_v31 }
 0x211   :  { %7030 = vst [vmem:[#allocation120_spill] sm:$0xff] %v5408_v55  ;;  %7033 = vst [vmem:[#allocation121_spill] sm:$0xff] %v7032_v51  ;;  %v2182_v16 = vmax.f32 %v2093_v52, -1e+30  ;;  %v1867_v25 = vsel %vm5280_vm4, %v1803_v11, -1e+30  ;;  %vm5437_vm15 = vcmp.eq.s32.totalorder %v7035_v4, %v4083_v43  ;;  %v5448_v31 = vsel %vm5356_vm6, %v1516_v56, %v1708_v1 }
 0x212   :  { %v1868_v39 = vsel %vm5310_vm1, %v5399_v26, -1e+30  ;;  %7034 = vst [vmem:[#allocation122_spill] sm:$0xff] %v5433_v49  ;;  %v7036_v62 = vmov 0  ;;  %v1297_v59 = vsub.f32 0.0, %v1105_v14  ;;  %v1106_v52 = vmax.f32 %v1042_v41, 0.0 }
 0x213   :  { %v7037_v62 = vsel %vm5437_vm15, 4294967295, %v7036_v62  ;;  %v1234_v28 = vmax.f32 %v5384_v58, 0.0  ;;  %2183 = vmax.xlane.f32.xlu1 %v2182_v16  ;;  %v1988_v60 = vmax.f32 %v1898_v20, -1e+30  ;;  %v1074_v40 = vadd.f32 0.8, %v1010_v24 }
 0x214   :  { %7038 = vst [vmem:[#allocation43_spill] sm:$0xff] %v7037_v62  ;;  %v2095_v8 = vsel %vm5258_vm0, -1e+30, %v1834_v54  ;;  %7039 = vst [vmem:[#allocation123_spill] sm:$0xff] %v5448_v31  ;;  %v1943_v0 = vmax.f32 %v1867_v25, %v1868_v39  ;;  %v2064_v14 = vsel %vm5280_vm4, -1e+30, %v1803_v11  ;;  %v5456_v58 = vsel %vm5365_vm14, %v5165_v10, %v4929_v38 }
 0x215   :  { %1989 = vmax.xlane.f32.xlu0 %v1988_v60  ;;  %7040 = vst [vmem:[#allocation124_spill] sm:$0xff] %v5456_v58  ;;  %vm7041_vm0 = vcmp.gt.s32.totalorder %v4022_v46, %v5393_v48  ;;  %vm5464_vm10 = vcmp.eq.s32.totalorder %v7035_v4, %v4085_v44  ;;  %v7042_v41 = vmov 0  ;;  %v2065_v25 = vsel %vm5310_vm1, -1e+30, %v5399_v26 }
 0x216   :  { %v1805_v54 = vsel %vm7041_vm0, %v5433_v49, -1e+30  ;;  %v7043_v41 = vsel %vm5464_vm10, 4294967295, %v7042_v41  ;;  %v5472_v24 = vadd.s32 232, %v6876_v27  ;;  %v1518_v38 = vmul.f32 80.0, %v5228_v5 }
 0x217   :  { %7044 = vst [vmem:[#allocation125_spill] sm:$0xff] %v7043_v41  ;;  %v1710_v10 = vmul.f32 80.0, %v4951_v22  ;;  %v1617_v11 = vmul.f32 %v3138_v30, %v1233_v45  ;;  %v1202_v20 = vadd.f32 0.8, %v7022_v57  ;;  %1944 = vmax.xlane.f32.xlu1 %v1943_v0  ;;  %v2185_v56 = vmax.f32 %v2095_v8, -1e+30 }
 0x218   :  { %7045 = vst [vmem:[#allocation126_spill] sm:$0xff] %v5472_v24  ;;  %vm7046_vm0 = vcmp.gt.s32.totalorder %v4043_v61, %v5408_v55  ;;  %v1488_v16 = vmul.f32 80.0, %v1424_v36  ;;  %v1869_v39 = vsel %vm5340_vm5, %v1805_v54, -1e+30  ;;  %v1870_v5 = vsel %vm5365_vm14, %v5456_v58, -1e+30 }
 0x219   :  { %v1836_v1 = vsel %vm7046_vm0, %v5448_v31, -1e+30  ;;  %v5487_v22 = vadd.s32 112, %v6876_v27  ;;  %v7048_v45 = vld [vmem:[#allocation55_spill] sm:$0xff]  ;;  %v7049_v8 = vmov 0  ;;  %v1298_v30 = vsub.f32 0.0, %v1106_v52  ;;  %2186 = vmax.xlane.f32.xlu0 %v2185_v56 }
 0x21a   :  { %vm5491_vm1 = vcmp.eq.s32.totalorder %v7048_v45, %v4083_v43  ;;  %v1138_v4 = vmax.f32 %v1074_v40, 0.0  ;;  %v3107_v36 = vadd.f32 -0.2, %v7022_v57  ;;  %v2140_v60 = vmax.f32 %v2064_v14, %v2065_v25 }
 0x21b   :  { %7047 = vst [vmem:[#allocation127_spill] sm:$0xff] %v5487_v22  ;;  %v7050_v8 = vsel %vm5491_vm1, 4294967295, %v7049_v8  ;;  %v1425_v0 = vmul.f32 %v5345_v6, %v1297_v59  ;;  %v1900_v55 = vsel %vm5356_vm6, %v1836_v1, -1e+30  ;;  %v5503_v43 = vsel %vm5413_vm13, %v1518_v38, %v1710_v10 }
 0x21c   :  { %7051 = vst [vmem:[#allocation55_spill] sm:$0xff] %v7050_v8  ;;  %7052 = vst [vmem:[#allocation128_spill] sm:$0xff] %v5503_v43  ;;  %v1618_v31 = vmul.f32 %v3139_v35, %v1234_v28  ;;  %v1266_v15 = vmax.f32 %v1202_v20, 0.0  ;;  %v3171_v40 = vadd.f32 -0.8, %v7022_v57  ;;  %2141 = vmax.xlane.f32.xlu1 %v2140_v60  ;;  %v1946_v52 = vmax.f32 %v1869_v39, %v1870_v5 }
 0x21d   :  { %v2066_v14 = vsel %vm5340_vm5, -1e+30, %v1805_v54  ;;  %v2067_v6 = vsel %vm5365_vm14, -1e+30, %v5456_v58  ;;  %vm6635_vm0 = vcmp.gt.s32.totalorder %v4022_v46, %v5487_v22  ;;  %v5517_v35 = vsel %vm5437_vm15, %v5322_v34, %v5186_v13 }
 0x21e   :  { %7053 = vst [vmem:[#allocation129_spill] sm:$0xff] %v5517_v35  ;;  %v1426_v59 = vmul.f32 %v3075_v9, %v1298_v30  ;;  %v1330_v57 = vsub.f32 0.0, %v1138_v4  ;;  %v1991_v28 = vmax.f32 %v1900_v55, -1e+30  ;;  %1947 = vmax.xlane.f32.xlu0 %v1946_v52  ;;  %vm7054_vm5 = vcmp.gt.s32.totalorder %v4043_v61, %v5472_v24  ;;  %v545_v9 = vpop.permute.xlu0 %544 }
 0x21f   :  { %v1838_v54 = vsel %vm7054_vm5, %v5503_v43, -1e+30  ;;  %v1489_v25 = vmul.f32 80.0, %v1425_v0  ;;  %v1681_v38 = vmul.f32 80.0, %v1617_v11  ;;  %v2097_v10 = vsel %vm5356_vm6, -1e+30, %v1836_v1 }
 0x220   :  { %v5526_v20 = vadd.s32 120, %v6876_v27  ;;  %v1682_v56 = vmul.f32 80.0, %v1618_v31  ;;  %1992 = vmax.xlane.f32.xlu1 %v1991_v28  ;;  %v2143_v13 = vmax.f32 %v2066_v14, %v2067_v6  ;;  %v5531_v34 = vsel %vm5464_vm10, %v1488_v16, %v5324_v18 }
 0x221   :  { %7056 = vst [vmem:[#allocation131_spill] sm:$0xff] %v5531_v34  ;;  %v1807_v55 = vsel %vm6635_vm0, %v5517_v35, -1e+30  ;;  %v1902_v11 = vsel %vm5413_vm13, %v1838_v54, -1e+30  ;;  %v5540_v1 = vadd.s32 240, %v6876_v27  ;;  %v1458_v30 = vmul.f32 %v3107_v36, %v1330_v57 }
 0x222   :  { %7055 = vst [vmem:[#allocation130_spill] sm:$0xff] %v5526_v20  ;;  %v1520_v31 = vmul.f32 80.0, %v5418_v17  ;;  %v1712_v39 = vmul.f32 80.0, %v5263_v29  ;;  %v1490_v5 = vmul.f32 80.0, %v1426_v59  ;;  %v1650_v18 = vmul.f32 %v3171_v40, %v1266_v15  ;;  %2144 = vmax.xlane.f32.xlu0 %v2143_v13  ;;  %v548_v59 = vpop.permute.xlu1 %547 }
 0x223   :  { %7057 = vst [vmem:[#allocation132_spill] sm:$0xff] %v5540_v1  ;;  %v2188_v16 = vmax.f32 %v2097_v10, -1e+30  ;;  %v1871_v4 = vsel %vm5437_vm15, %v1807_v55, -1e+30  ;;  %v5553_v17 = vsel %vm5491_vm1, %v1489_v25, %v1681_v38  ;;  %vm5556_vm0 = vcmp.eq.s32.totalorder %v545_v9, %v4085_v44 }
 0x224   :  { %v1872_v60 = vsel %vm5464_vm10, %v5531_v34, -1e+30  ;;  %7058 = vst [vmem:[#allocation133_spill] sm:$0xff] %v5553_v17  ;;  %v7059_v29 = vmov 0  ;;  %v1994_v15 = vmax.f32 %v1902_v11, -1e+30  ;;  %vm5562_vm6 = vcmp.eq.s32.totalorder %v7048_v45, %v4085_v44 }
 0x225   :  { %v7060_v29 = vsel %vm5556_vm0, 4294967295, %v7059_v29  ;;  %2189 = vmax.xlane.f32.xlu1 %v2188_v16  ;;  %v7062_v36 = vmov 0  ;;  %v2099_v0 = vsel %vm5413_vm13, -1e+30, %v1838_v54  ;;  %vm6640_vm5 = vcmp.gt.s32.totalorder %v4043_v61, %v5540_v1 }
 0x226   :  { %7061 = vst [vmem:[#allocation134_spill] sm:$0xff] %v7060_v29  ;;  %v7063_v36 = vsel %vm5562_vm6, 4294967295, %v7062_v36  ;;  %v5572_v40 = vsel %vm5556_vm0, %v1520_v31, %v1712_v39  ;;  %v1714_v52 = vmul.f32 80.0, %v1650_v18  ;;  %1995 = vmax.xlane.f32.xlu0 %v1994_v15  ;;  %v1949_v14 = vmax.f32 %v1871_v4, %v1872_v60  ;;  %v5625_v15 = vpop.xlane.xlu0 %1908 }
 0x227   :  { %7064 = vst [vmem:[#allocation135_spill] sm:$0xff] %v7063_v36  ;;  %7065 = vst [vmem:[#allocation136_spill] sm:$0xff] %v5572_v40  ;;  %v5576_v6 = vsel %vm5562_vm6, %v1490_v5, %v1682_v56  ;;  %vm7067_vm14 = vcmp.gt.s32.totalorder %v4022_v46, %v5526_v20  ;;  %v1522_v57 = vmul.f32 80.0, %v1458_v30  ;;  %v2068_v28 = vsel %vm5437_vm15, -1e+30, %v1807_v55 }
 0x228   :  { %7066 = vst [vmem:[#allocation137_spill] sm:$0xff] %v5576_v6  ;;  %v1809_v45 = vsel %vm7067_vm14, %v5553_v17, -1e+30  ;;  %v2069_v54 = vsel %vm5464_vm10, -1e+30, %v5531_v34  ;;  %v5588_v25 = vadd.s32 248, %v6876_v27  ;;  %vm5600_vm14 = vcmp.eq.s32.totalorder %v548_v59, %v4085_v44 }
 0x229   :  { %1950 = vmax.xlane.f32.xlu1 %v1949_v14  ;;  %v2191_v38 = vmax.f32 %v2099_v0, -1e+30  ;;  %v1840_v10 = vsel %vm6640_vm5, %v5572_v40, -1e+30  ;;  %v1873_v56 = vsel %vm5491_vm1, %v1809_v45, -1e+30  ;;  %v2146_v9 = vmax.f32 %v2068_v28, %v2069_v54 }
 0x22a   :  { %7068 = vst [vmem:[#allocation138_spill] sm:$0xff] %v5588_v25  ;;  %v1874_v13 = vsel %vm5562_vm6, %v5576_v6, -1e+30  ;;  %v7069_v55 = vmov 0  ;;  %v1904_v11 = vsel %vm5556_vm0, %v1840_v10, -1e+30  ;;  %vm6641_vm5 = vcmp.gt.s32.totalorder %v4043_v61, %v5588_v25  ;;  %v5631_v59 = vpop.xlane.xlu0 %2108 }
 0x22b   :  { %v7070_v55 = vsel %vm5600_vm14, 4294967295, %v7069_v55  ;;  %2192 = vmax.xlane.f32.xlu0 %v2191_v38  ;;  %v5610_v31 = vsel %vm5600_vm14, %v1522_v57, %v1714_v52  ;;  %v1952_v39 = vmax.f32 %v1873_v56, %v1874_v13  ;;  %v2070_v44 = vsel %vm5491_vm1, -1e+30, %v1809_v45  ;;  %v5627_v52 = vpop.xlane.xlu1 %2105 }
 0x22c   :  { %7071 = vst [vmem:[#allocation139_spill] sm:$0xff] %v7070_v55  ;;  %7072 = vst [vmem:[#allocation140_spill] sm:$0xff] %v5610_v31  ;;  %v2071_v5 = vsel %vm5562_vm6, -1e+30, %v5576_v6  ;;  %v1997_v30 = vmax.f32 %v1904_v11, -1e+30 }
 0x22d   :  { %2147 = vmax.xlane.f32.xlu1 %v2146_v9  ;;  %v1842_v18 = vsel %vm6641_vm5, %v5610_v31, -1e+30  ;;  %v2101_v16 = vsel %vm5556_vm0, -1e+30, %v1840_v10  ;;  %v2149_v4 = vmax.f32 %v2070_v44, %v2071_v5  ;;  %vm6704_vm5 = vcmask 0  }
 0x22e   :  { %v1906_v60 = vsel %vm5600_vm14, %v1842_v18, -1e+30  ;;  %v2194_v0 = vmax.f32 %v2101_v16, -1e+30  ;;  %v2103_v45 = vsel %vm5600_vm14, -1e+30, %v1842_v18  ;;  %v5635_v54 = vpop.xlane.xlu0 %1959 }
 0x22f   :  { %1953 = vmax.xlane.f32.xlu0 %v1952_v39  ;;  %v2000_v14 = vmax.f32 %v1906_v60, -1e+30  ;;  %v2197_v57 = vmax.f32 %v2103_v45, -1e+30  ;;  %v5633_v28 = vpop.xlane.xlu1 %1956  ;;  %v3472_v3 = vmov 0.0  }
 0x230   :  { %28 = vst.msk [vmem:[#allocation3] sm:$0x1] %vm6704_vm5, %v3472_v3  ;;  %29 = vst.msk [vmem:[#allocation5] sm:$0x1] %vm6704_vm5, %v3472_v3 }
 0x231   :  { %1998 = vmax.xlane.f32.xlu1 %v1997_v30  ;;  %v3471_v30 = vmov -1e+30  }
 0x232   :  { %v5639_v10 = vpop.xlane.xlu0 %2156  ;;  %26 = vst.msk [vmem:[#allocation2] sm:$0x1] %vm6704_vm5, %v3471_v30  ;;  %27 = vst.msk [vmem:[#allocation4] sm:$0x1] %vm6704_vm5, %v3471_v30 }
 0x233   :  { %2150 = vmax.xlane.f32.xlu0 %v2149_v4  ;;  %v5637_v38 = vpop.xlane.xlu1 %2153 }
 0x235   :  { %2195 = vmax.xlane.f32.xlu1 %v2194_v0 }
 0x236   :  { %v5641_v13 = vpop.xlane.xlu0 %1914 }
 0x237   :  { %2001 = vmax.xlane.f32.xlu0 %v2000_v14  ;;  %v1912_v56 = vpop.xlane.xlu1 %1911 }
 0x23a   :  { %v5645_v11 = vpop.xlane.xlu0 %1917 }
 0x23b   :  { %2198 = vmax.xlane.f32.xlu0 %v2197_v57  ;;  %v5643_v9 = vpop.xlane.xlu1 %2111 }
 0x23e   :  { %v5649_v44 = vpop.xlane.xlu0 %2114 }
 0x23f   :  { %v5647_v39 = vpop.xlane.xlu1 %1962 }
 0x242   :  { %v5655_v18 = vpop.xlane.xlu0 %1965 }
 0x243   :  { %v5651_v5 = vpop.xlane.xlu1 %2159 }
 0x246   :  { %v5657_v4 = vpop.xlane.xlu0 %2162 }
 0x247   :  { %v1921_v16 = vpop.xlane.xlu1 %1920 }
 0x248   :  { %v2003_v12 = vmax.f32 %v5625_v15, %v1921_v16 }
 0x24a   :  { %v1924_v0 = vpop.xlane.xlu0 %1923 }
 0x24b   :  { %v2118_v60 = vpop.xlane.xlu1 %2117  ;;  %v2004_v32 = vmax.f32 %v1912_v56, %v1924_v0 }
 0x24c   :  { %v2200_v3 = vmax.f32 %v5627_v52, %v2118_v60 }
 0x24f   :  { %v5659_v14 = vpop.xlane.xlu1 %1968 }
 0x251   :  { %v2121_v45 = vpop.xlane.xlu0 %2120 }
 0x252   :  { %v2201_v23 = vmax.f32 %v5631_v59, %v2121_v45 }
 0x253   :  { %v5661_v57 = vpop.xlane.xlu1 %2165 }
 0x264   :  { %v5663_v25 = vpop.xlane.xlu0 %1971 }
 0x266   :  { %v1927_v31 = vpop.xlane.xlu1 %1926 }
 0x267   :  { %v2005_v63 = vmax.f32 %v5641_v13, %v1927_v31 }
 0x268   :  { %v5665_v1 = vpop.xlane.xlu0 %2168 }
 0x26b   :  { %v2124_v55 = vpop.xlane.xlu1 %2123 }
 0x26c   :  { %v2202_v15 = vmax.f32 %v5643_v9, %v2124_v55 }
 0x26e   :  { %v1930_v40 = vpop.xlane.xlu0 %1929 }
 0x271   :  { %v5667_v30 = vpop.xlane.xlu1 %1974 }
 0x272   :  { %v5669_v24 = vpop.xlane.xlu0 %2126 }
 0x276   :  { %v5671_v29 = vpop.xlane.xlu1 %2171 }
 0x279   :  { %v5673_v43 = vpop.xlane.xlu0 %1977 }
 0x27a   :  { %v1933_v51 = vpop.xlane.xlu1 %1932 }
 0x27b   :  { %v2007_v37 = vmax.f32 %v2003_v12, %v1933_v51 }
 0x27e   :  { %v5675_v50 = vpop.xlane.xlu0 %2174  ;;  %v2130_v20 = vpop.xlane.xlu1 %2129 }
 0x27f   :  { %7073 = vst [vmem:[#allocation141_spill] sm:$0xff] %v5675_v50 }
 0x283   :  { %v1936_v6 = vpop.xlane.xlu0 %1935 }
 0x284   :  { %v2008_v47 = vmax.f32 %v2004_v32, %v1936_v6 }
 0x286   :  { %v1981_v17 = vpop.xlane.xlu1 %1980 }
 0x288   :  { %v2133_v36 = vpop.xlane.xlu0 %2132 }
 0x28b   :  { %v5677_v22 = vpop.xlane.xlu1 %2177 }
 0x28d   :  { %v1984_v8 = vpop.xlane.xlu0 %1983 }
 0x28f   :  { %v1939_v34 = vpop.xlane.xlu1 %1938 }
 0x290   :  { %v2009_v50 = vmax.f32 %v2005_v63, %v1939_v34 }
 0x292   :  { %v5679_v35 = vpop.xlane.xlu0 %2180 }
 0x293   :  { %v2136_v41 = vpop.xlane.xlu1 %2135 }
 0x298   :  { %v1942_v48 = vpop.xlane.xlu0 %1941 }
 0x29a   :  { %v1987_v62 = vpop.xlane.xlu1 %1986 }
 0x29c   :  { %v2139_v58 = vpop.xlane.xlu0 %2138 }
 0x2a0   :  { %v5681_v49 = vpop.xlane.xlu1 %2183 }
 0x2a1   :  { %7074 = vst [vmem:[#allocation142_spill] sm:$0xff] %v5681_v49  ;;  %v2204_v49 = vmax.f32 %v2200_v3, %v2130_v20 }
 0x2a2   :  { %v1990_v19 = vpop.xlane.xlu0 %1989 }
 0x2a4   :  { %v1945_v53 = vpop.xlane.xlu1 %1944 }
 0x2a5   :  { %v2011_v46 = vmax.f32 %v2007_v37, %v1945_v53 }
 0x2a6   :  { %v5685_v26 = vpop.xlane.xlu0 %2186 }
 0x2a7   :  { %7075 = vst [vmem:[#allocation143_spill] sm:$0xff] %v5685_v26  ;;  %v2205_v26 = vmax.f32 %v2201_v23, %v2133_v36  ;;  %v2015_v6 = vmax.f32 %v2011_v46, %v5633_v28  ;;  %v2203_v46 = vmax.f32 %v5649_v44, %v5669_v24 }
 0x2a9   :  { %v2142_v2 = vpop.xlane.xlu1 %2141 }
 0x2aa   :  { %v2208_v59 = vmax.f32 %v2204_v49, %v2142_v2 }
 0x2ab   :  { %v1948_v33 = vpop.xlane.xlu0 %1947 }
 0x2ac   :  { %v2012_v27 = vmax.f32 %v2008_v47, %v1948_v33  ;;  %v2006_v47 = vmax.f32 %v5645_v11, %v1930_v40  ;;  %v2206_v33 = vmax.f32 %v2202_v15, %v2136_v41  ;;  %v2207_v41 = vmax.f32 %v2203_v46, %v2139_v58 }
 0x2ad   :  { %v5687_v42 = vpop.xlane.xlu1 %1992 }
 0x2ae   :  { %v2016_v32 = vmax.f32 %v2012_v27, %v5635_v54  ;;  %v2010_v23 = vmax.f32 %v2006_v47, %v1942_v48  ;;  %v2212_v27 = vmax.f32 %v2208_v59, %v5637_v38  ;;  %v7078_v0 = vld [vmem:[#allocation143_spill] sm:$0xff] }
 0x2af   :  { %v2145_v21 = vpop.xlane.xlu0 %2144 }
 0x2b0   :  { %v2209_v12 = vmax.f32 %v2205_v26, %v2145_v21  ;;  %v2020_v20 = vmax.f32 %v2016_v32, %v5663_v25  ;;  %v2019_v21 = vmax.f32 %v2015_v6, %v5659_v14  ;;  %v2216_v55 = vmax.f32 %v2212_v27, %v5661_v57  ;;  %v5732_v27 = vld [vmem:[#allocation4] sm:$0x1] }
 0x2b1   :  { %7082 = vst [vmem:[#allocation143_spill] sm:$0xff] %v5732_v27 }
 0x2b2   :  { %v5690_v7 = vpop.xlane.xlu1 %2189  ;;  %v2213_v63 = vmax.f32 %v2209_v12, %v5639_v10  ;;  %v2024_v48 = vmax.f32 %v2020_v20, %v1984_v8  ;;  %v2023_v25 = vmax.f32 %v2019_v21, %v1981_v17  ;;  %v2220_v17 = vmax.f32 %v2216_v55, %v5677_v22 }
 0x2b3   :  { %v1996_v61 = vpop.xlane.xlu0 %1995 }
 0x2b4   :  { %v2217_v36 = vmax.f32 %v2213_v63, %v5665_v1  ;;  %v2028_v10 = vmax.f32 %v2024_v48, %v1996_v61  ;;  %v2027_v1 = vmax.f32 %v2023_v25, %v5687_v42  ;;  %v7081_v63 = vld [vmem:[#allocation15_spill] sm:$0xff] }
 0x2b5   :  { %v7085_v48 = vld [vmem:[#allocation35_spill] sm:$0xff] }
 0x2b6   :  { %v1951_v56 = vpop.xlane.xlu1 %1950  ;;  %v2221_v13 = vmax.f32 %v2217_v36, %v5679_v35  ;;  %v2031_v60 = vmax.f32 %v2027_v1, %v2028_v10 }
 0x2b7   :  { %v2013_v51 = vmax.f32 %v2009_v50, %v1951_v56 }
 0x2b8   :  { %v2193_v16 = vpop.xlane.xlu0 %2192 }
 0x2b9   :  { %v2017_v37 = vmax.f32 %v2013_v51, %v5647_v39  ;;  %v7076_v39 = vld [vmem:[#allocation142_spill] sm:$0xff] }
 0x2ba   :  { %v2148_v53 = vpop.xlane.xlu1 %2147 }
 0x2bb   :  { %v2210_v34 = vmax.f32 %v2206_v33, %v2148_v53  ;;  %v2021_v26 = vmax.f32 %v2017_v37, %v5667_v30  ;;  %v2239_v53 = vld [vmem:[#allocation4] sm:$0x1] }
 0x2bc   :  { %v1954_v50 = vpop.xlane.xlu0 %1953 }
 0x2bd   :  { %v2214_v2 = vmax.f32 %v2210_v34, %v5651_v5  ;;  %v2014_v49 = vmax.f32 %v2010_v23, %v1954_v50  ;;  %v2025_v28 = vmax.f32 %v2021_v26, %v1987_v62  ;;  %v7077_v5 = vld [vmem:[#allocation141_spill] sm:$0xff] }
 0x2be   :  { %v1999_v31 = vpop.xlane.xlu1 %1998 }
 0x2bf   :  { %v2018_v40 = vmax.f32 %v2014_v49, %v5655_v18  ;;  %v2218_v54 = vmax.f32 %v2214_v2, %v5671_v29  ;;  %v2029_v11 = vmax.f32 %v2025_v28, %v1999_v31  ;;  %v7153_v49 = vld [vmem:[#allocation90_spill] sm:$0xff] }
 0x2c0   :  { %v2151_v52 = vpop.xlane.xlu0 %2150 }
 0x2c1   :  { %v2211_v24 = vmax.f32 %v2207_v41, %v2151_v52  ;;  %v2022_v38 = vmax.f32 %v2018_v40, %v5673_v43  ;;  %v2222_v44 = vmax.f32 %v2218_v54, %v7076_v39  ;;  %v2225_v43 = vmax.f32 %v2221_v13, %v2193_v16  ;;  %v5721_v16 = vld [vmem:[#allocation2] sm:$0x1]  ;;  %v7086_v40 = vld [vmem:[#allocation38_spill] sm:$0xff]  ;;  %v7089_v54 = vld [vmem:[#allocation44_spill] sm:$0xff] }
 0x2c2   :  { %v2196_v18 = vpop.xlane.xlu1 %2195  ;;  %7079 = vst [vmem:[#allocation142_spill] sm:$0xff] %v5721_v16  ;;  %v7088_v52 = vld [vmem:[#allocation61_spill] sm:$0xff] }
 0x2c3   :  { %v2215_v58 = vmax.f32 %v2211_v24, %v5657_v4  ;;  %v2026_v8 = vmax.f32 %v2022_v38, %v1990_v19  ;;  %v2224_v19 = vmax.f32 %v2220_v17, %v5690_v7  ;;  %v2226_v4 = vmax.f32 %v2222_v44, %v2196_v18  ;;  %v7090_v38 = vld [vmem:[#allocation47_spill] sm:$0xff]  ;;  %v7095_v44 = vld [vmem:[#allocation72_spill] sm:$0xff] }
 0x2c4   :  { %v2002_v9 = vpop.xlane.xlu0 %2001  ;;  %v7093_v17 = vld [vmem:[#allocation63_spill] sm:$0xff] }
 0x2c5   :  { %v2030_v62 = vmax.f32 %v2026_v8, %v2002_v9  ;;  %v2219_v29 = vmax.f32 %v2215_v58, %v7077_v5  ;;  %v2228_v22 = vmax.f32 %v2224_v19, %v2225_v43  ;;  %v7092_v8 = vld [vmem:[#allocation62_spill] sm:$0xff]  ;;  %v7097_v5 = vld [vmem:[#allocation17_spill] sm:$0xff]  ;;  %v7101_v43 = vld [vmem:[#allocation11_spill] sm:$0xff] }
 0x2c7   :  { %v2032_v61 = vmax.f32 %v2029_v11, %v2030_v62  ;;  %v2223_v35 = vmax.f32 %v2219_v29, %v7078_v0  ;;  %v7094_v11 = vld [vmem:[#allocation71_spill] sm:$0xff]  ;;  %v7098_v29 = vld [vmem:[#allocation16_spill] sm:$0xff] }
 0x2c8   :  { %v2199_v14 = vpop.xlane.xlu0 %2198  ;;  %vm7099_vm14 = vcmp.gt.s32.totalorder %v7097_v5, %v7098_v29 }
 0x2c9   :  { %v2033_v42 = vmax.f32 %v2031_v60, %v2032_v61  ;;  %v2227_v45 = vmax.f32 %v2223_v35, %v2199_v14  ;;  %v7100_v60 = vld [vmem:[#allocation14_spill] sm:$0xff]  ;;  %v7103_v35 = vld [vmem:[#allocation28_spill] sm:$0xff] }
 0x2ca   :  { %vm7102_vm0 = vcmp.gt.s32.totalorder %v7100_v60, %v7101_v43  ;;  %v7131_v43 = vld [vmem:[#allocation81_spill] sm:$0xff] }
 0x2cb   :  { %v2034_v57 = vrot.slane %v2033_v42, 4  ;;  %v2229_v30 = vmax.f32 %v2226_v4, %v2227_v45 }
 0x2cd   :  { %v2035_v3 = vmax.f32 %v2033_v42, %v2034_v57  ;;  %v2230_v56 = vmax.f32 %v2228_v22, %v2229_v30  ;;  %v7104_v42 = vld [vmem:[#allocation19_spill] sm:$0xff]  ;;  %v7106_v22 = vld [vmem:[#allocation30_spill] sm:$0xff] }
 0x2ce   :  { %vm7105_vm13 = vcmp.gt.s32.totalorder %v7100_v60, %v7104_v42 }
 0x2cf   :  { %v2036_v15 = vrot.slane %v2035_v3, 2  ;;  %v2231_v32 = vrot.slane %v2230_v56, 4 }
 0x2d1   :  { %v2037_v12 = vmax.f32 %v2035_v3, %v2036_v15  ;;  %v2232_v51 = vmax.f32 %v2230_v56, %v2231_v32  ;;  %v7107_v56 = vld [vmem:[#allocation21_spill] sm:$0xff] }
 0x2d3   :  { %v2038_v6 = vrot.slane %v2037_v12, 1  ;;  %v2233_v59 = vrot.slane %v2232_v51, 2 }
 0x2d5   :  { %v2234_v47 = vmax.f32 %v2232_v51, %v2233_v59  ;;  %v2039_v33 = vmax.f32 %v2037_v12, %v2038_v6  ;;  %v7109_v51 = vld [vmem:[#allocation67_spill] sm:$0xff]  ;;  %v7111_v59 = vld [vmem:[#allocation70_spill] sm:$0xff] }
 0x2d7   :  { %v2235_v37 = vrot.slane %v2234_v47, 1  ;;  %v5724_v7 = vmax.f32 %v5721_v16, %v2039_v33  ;;  %v7112_v33 = vld [vmem:[#allocation12_spill] sm:$0xff] }
 0x2d9   :  { %7080 = vst [vmem:[#allocation141_spill] sm:$0xff] %v5724_v7  ;;  %v2236_v23 = vmax.f32 %v2234_v47, %v2235_v37  ;;  %v2245_v20 = vrot.slane %v5724_v7, %v7081_v63  ;;  %2926 = vst.msk [vmem:[#allocation2] sm:$0x1] %vm6704_vm5, %v5724_v7 }
 0x2db   :  { %2247 = vperm.xlu1 %3337, %v2245_v20   ;;  %v5734_v21 = vmax.f32 %v2239_v53, %v2236_v23  ;;  %v7114_v53 = vld [vmem:[#allocation75_spill] sm:$0xff] }
 0x2dd   :  { %7083 = vst [vmem:[#allocation15_spill] sm:$0xff] %v5734_v21  ;;  %v2254_v50 = vrot.slane %v5734_v21, %v7081_v63  ;;  %2927 = vst.msk [vmem:[#allocation4] sm:$0x1] %vm6704_vm5, %v5734_v21  ;;  %vm7096_vm5 = vnez %v7095_v44  ;;  %v7116_v63 = vld [vmem:[#allocation32_spill] sm:$0xff] }
 0x2df   :  { %2256 = vperm.xlu0 %3336, %v2254_v50   ;;  %v7117_v50 = vld [vmem:[#allocation34_spill] sm:$0xff] }
 0x35a   :  { %v5742_v2 = vpop.permute.xlu1 %2247 }
 0x35e   :  { %v5744_v26 = vpop.permute.xlu0 %2256 }
 0x35f   :  { %v2292_v41 = vsel %vm4241_vm9, %v5742_v2, %v5744_v26  ;;  %v2259_v36 = vsel %vm4129_vm2, %v5742_v2, %v5744_v26  ;;  %v2260_v25 = vsel %vm4144_vm3, %v5742_v2, %v5744_v26  ;;  %v2261_v31 = vsel %vm4230_vm7, %v5742_v2, %v5744_v26 }
 0x360   :  { %v2356_v28 = vsub.f32 %v7088_v52, %v2292_v41  ;;  %v2323_v24 = vsub.f32 %v7089_v54, %v2259_v36  ;;  %v2324_v10 = vsub.f32 %v7090_v38, %v2260_v25  ;;  %v2262_v58 = vsel %vm4236_vm8, %v5742_v2, %v5744_v26  ;;  %v7118_v36 = vld [vmem:[#allocation76_spill] sm:$0xff] }
 0x361   :  { %v2325_v1 = vsub.f32 %v7092_v8, %v2261_v31  ;;  %v2326_v9 = vsub.f32 %v7093_v17, %v2262_v58  ;;  %v2263_v39 = vsel %vm4406_vm12, %v5742_v2, %v5744_v26  ;;  %v2264_v62 = vsel %vm7096_vm5, %v5742_v2, %v5744_v26  ;;  %v7120_v31 = vld [vmem:[#allocation20_spill] sm:$0xff]  ;;  %v7125_v58 = vld [vmem:[#allocation23_spill] sm:$0xff] }
 0x362   :  { %v2420_v18 = vsel %vm7099_vm14, %v2356_v28, -1e+30  ;;  %v2387_v61 = vsel %vm7102_vm0, %v2323_v24, -1e+30  ;;  %v2453_v0 = vmul.f32 1.442695, %v2324_v10  ;;  %v2327_v14 = vsub.f32 %v7103_v35, %v2263_v39 }
 0x363   :  { %v2517_v19 = vmul.f32 1.442695, %v2420_v18  ;;  %v2451_v4 = vmul.f32 1.442695, %v2387_v61  ;;  %v2389_v45 = vsel %vm7105_vm13, %v2325_v1, -1e+30  ;;  %v2328_v57 = vsub.f32 %v7106_v22, %v2264_v62 }
 0x364   :  { %3338 = vpow2.f32 %v2453_v0  ;;  %v2455_v30 = vmul.f32 1.442695, %v2389_v45  ;;  %v2457_v3 = vmul.f32 1.442695, %v2326_v9  ;;  %vm7108_vm14 = vcmp.gt.s32.totalorder %v7100_v60, %v7107_v56  ;;  %v7122_v28 = vld [vmem:[#allocation77_spill] sm:$0xff]  ;;  %v7123_v24 = vld [vmem:[#allocation39_spill] sm:$0xff] }
 0x365   :  { %v2391_v15 = vsel %vm7108_vm14, %v2327_v14, -1e+30  ;;  %3340 = vpow2.f32 %v2517_v19  ;;  %v2461_v12 = vmul.f32 1.442695, %v2328_v57  ;;  %vm7110_vm0 = vnez %v7109_v51  ;;  %v7127_v9 = vld [vmem:[#allocation22_spill] sm:$0xff]  ;;  %v7129_v62 = vld [vmem:[#allocation40_spill] sm:$0xff] }
 0x366   :  { %v2459_v32 = vmul.f32 1.442695, %v2391_v15  ;;  %v2294_v6 = vsel %vm7110_vm0, %v5742_v2, %v5744_v26  ;;  %3342 = vpow2.f32 %v2451_v4  ;;  %vm7113_vm13 = vnez %v7112_v33  ;;  %v7132_v0 = vld [vmem:[#allocation83_spill] sm:$0xff]  ;;  %v7133_v14 = vld [vmem:[#allocation10_spill] sm:$0xff]  ;;  %v7135_v4 = vld [vmem:[#allocation48_spill] sm:$0xff] }
 0x367   :  { %v2358_v47 = vsub.f32 %v7111_v59, %v2294_v6  ;;  %v2265_v37 = vsel %vm7113_vm13, %v5742_v2, %v5744_v26  ;;  %vm7115_vm14 = vnez %v7114_v53  ;;  %3344 = vpow2.f32 %v2455_v30  ;;  %v7137_v45 = vld [vmem:[#allocation84_spill] sm:$0xff]  ;;  %v7139_v57 = vld [vmem:[#allocation26_spill] sm:$0xff]  ;;  %v7142_v6 = vld [vmem:[#allocation89_spill] sm:$0xff] }
 0x368   :  { %v2266_v23 = vsel %vm7115_vm14, %v5742_v2, %v5744_v26  ;;  %v2329_v20 = vsub.f32 %v7116_v63, %v2265_v37  ;;  %vm7119_vm3 = vnez %v7118_v36  ;;  %3346 = vpow2.f32 %v2457_v3  ;;  %v7141_v56 = vld [vmem:[#allocation82_spill] sm:$0xff]  ;;  %v7144_v63 = vld [vmem:[#allocation25_spill] sm:$0xff] }
 0x369   :  { %v2330_v41 = vsub.f32 %v7117_v50, %v2266_v23  ;;  %v2296_v25 = vsel %vm7119_vm3, %v5742_v2, %v5744_v26  ;;  %vm7121_vm2 = vcmp.gt.s32.totalorder %v7097_v5, %v7120_v31  ;;  %vm7124_vm14 = vnez %v7123_v24  ;;  %v7146_v50 = vld [vmem:[#allocation18_spill] sm:$0xff] }
 0x36a   :  { %v2422_v52 = vsel %vm7121_vm2, %v2358_v47, -1e+30  ;;  %v2360_v54 = vsub.f32 %v7122_v28, %v2296_v25  ;;  %v2267_v38 = vsel %vm7124_vm14, %v5742_v2, %v5744_v26  ;;  %3348 = vpow2.f32 %v2459_v32  ;;  %v7143_v47 = vld [vmem:[#allocation57_spill] sm:$0xff]  ;;  %v7148_v25 = vld [vmem:[#allocation58_spill] sm:$0xff] }
 0x36b   :  { %v2521_v10 = vmul.f32 1.442695, %v2422_v52  ;;  %vm7126_vm13 = vcmp.gt.s32.totalorder %v7100_v60, %v7125_v58  ;;  %v2465_v1 = vmul.f32 1.442695, %v2330_v41  ;;  %3350 = vpow2.f32 %v2461_v12 }
 0x36c   :  { %v2393_v8 = vsel %vm7126_vm13, %v2329_v20, -1e+30  ;;  %vm7128_vm5 = vcmp.gt.s32.totalorder %v7097_v5, %v7127_v9  ;;  %vm7130_vm2 = vnez %v7129_v62  ;;  %v2331_v61 = vsub.f32 %v7131_v43, %v2267_v38  ;;  %v7150_v38 = vld [vmem:[#allocation88_spill] sm:$0xff]  ;;  %v7155_v43 = vld [vmem:[#allocation93_spill] sm:$0xff] }
 0x36d   :  { %v2463_v17 = vmul.f32 1.442695, %v2393_v8  ;;  %v2424_v39 = vsel %vm7128_vm5, %v2360_v54, -1e+30  ;;  %v2268_v29 = vsel %vm7130_vm2, %v5742_v2, %v5744_v26  ;;  %3352 = vpow2.f32 %v2521_v10 }
 0x36e   :  { %v2525_v18 = vmul.f32 1.442695, %v2424_v39  ;;  %v2332_v35 = vsub.f32 %v7132_v0, %v2268_v29  ;;  %vm7134_vm13 = vnez %v7133_v14  ;;  %vm7136_vm5 = vnez %v7135_v4  ;;  %v5848_v32 = vpop.eup %3338  ;;  %v7156_v0 = vld [vmem:[#allocation13_spill] sm:$0xff] }
 0x36f   :  { %3354 = vpow2.f32 %v2463_v17  ;;  %v2298_v19 = vsel %vm7134_vm13, %v5742_v2, %v5744_v26  ;;  %v2269_v42 = vsel %vm7136_vm5, %v5742_v2, %v5744_v26  ;;  %vm7138_vm2 = vnez %v7137_v45  ;;  %v3341_v23 = vpop.eup %3340  ;;  %v7152_v17 = vld [vmem:[#allocation56_spill] sm:$0xff]  ;;  %v7202_v14 = vld [vmem:[#allocation29_spill] sm:$0xff] }
 0x370   :  { %v2270_v22 = vsel %vm7138_vm2, %v5742_v2, %v5744_v26  ;;  %3356 = vpow2.f32 %v2465_v1  ;;  %vm7140_vm14 = vcmp.gt.s32.totalorder %v7100_v60, %v7139_v57  ;;  %v2469_v3 = vmul.f32 1.442695, %v2332_v35  ;;  %v5863_v52 = vpop.eup %3342  ;;  %2628 = vadd.xlane.f32.xlu1 %v3341_v23 }
 0x371   :  { %v2395_v30 = vsel %vm7140_vm14, %v2331_v61, -1e+30  ;;  %v2362_v15 = vsub.f32 %v7141_v56, %v2298_v19  ;;  %3358 = vpow2.f32 %v2525_v18  ;;  %v2333_v59 = vsub.f32 %v7142_v6, %v2269_v42  ;;  %v5870_v58 = vpop.eup %3344 }
 0x372   :  { %v2467_v12 = vmul.f32 1.442695, %v2395_v30  ;;  %v2334_v37 = vsub.f32 %v7143_v47, %v2270_v22  ;;  %3360 = vpow2.f32 %v2469_v3  ;;  %vm7145_vm2 = vcmp.gt.s32.totalorder %v7097_v5, %v7144_v63  ;;  %v5873_v39 = vpop.eup %3346  ;;  %v7158_v22 = vld [vmem:[#allocation54_spill] sm:$0xff]  ;;  %v7160_v30 = vld [vmem:[#allocation95_spill] sm:$0xff] }
 0x373   :  { %v2426_v20 = vsel %vm7145_vm2, %v2362_v15, -1e+30  ;;  %vm7147_vm14 = vnez %v7146_v50  ;;  %vm7149_vm5 = vnez %v7148_v25  ;;  %v2745_v28 = vsel %vm4241_vm9, %v3341_v23, 0.0 }
 0x374   :  { %v2300_v41 = vsel %vm7147_vm14, %v5742_v2, %v5744_v26  ;;  %v2271_v31 = vsel %vm7149_vm5, %v5742_v2, %v5744_v26  ;;  %3362 = vpow2.f32 %v2467_v12  ;;  %v2529_v54 = vmul.f32 1.442695, %v2426_v20  ;;  %2825 = vadd.xlane.f32.xlu0 %v2745_v28  ;;  %v5886_v19 = vpop.eup %3348  ;;  %v7161_v12 = vld [vmem:[#allocation92_spill] sm:$0xff]  ;;  %v7164_v20 = vld [vmem:[#allocation27_spill] sm:$0xff] }
 0x375   :  { %vm7151_vm2 = vcmp.gt.s32.totalorder %v7100_v60, %v7150_v38  ;;  %v2473_v1 = vmul.f32 1.442695, %v2334_v37  ;;  %v2364_v9 = vsub.f32 %v7152_v17, %v2300_v41  ;;  %v2579_v29 = vadd.f32 %v5863_v52, %v5848_v32  ;;  %v5894_v56 = vpop.eup %3350  ;;  %v7166_v38 = vld [vmem:[#allocation59_spill] sm:$0xff] }
 0x376   :  { %v2397_v10 = vsel %vm7151_vm2, %v2333_v59, -1e+30  ;;  %vm7154_vm9 = vnez %v7153_v49  ;;  %v2335_v61 = vsub.f32 %v7155_v43, %v2271_v31  ;;  %vm7157_vm2 = vnez %v7156_v0  ;;  %v7163_v59 = vld [vmem:[#allocation94_spill] sm:$0xff]  ;;  %v7171_v43 = vld [vmem:[#allocation99_spill] sm:$0xff] }
 0x377   :  { %v2471_v8 = vmul.f32 1.442695, %v2397_v10  ;;  %v2272_v18 = vsel %vm7154_vm9, %v5742_v2, %v5744_v26  ;;  %v2302_v35 = vsel %vm7157_vm2, %v5742_v2, %v5744_v26  ;;  %v2582_v42 = vadd.f32 %v5873_v39, %v5870_v58  ;;  %2580 = vadd.xlane.f32.xlu1 %v2579_v29  ;;  %v5900_v37 = vpop.eup %3352  ;;  %v7170_v29 = vld [vmem:[#allocation98_spill] sm:$0xff] }
 0x378   :  { %3364 = vpow2.f32 %v2529_v54  ;;  %vm7159_vm5 = vcmp.gt.s32.totalorder %v7097_v5, %v7158_v22  ;;  %v2336_v3 = vsub.f32 %v7160_v30, %v2272_v18  ;;  %vm7162_vm9 = vcmp.gt.s32.totalorder %v7100_v60, %v7161_v12  ;;  %v7176_v12 = vld [vmem:[#allocation31_spill] sm:$0xff] }
 0x379   :  { %v2428_v57 = vsel %vm7159_vm5, %v2364_v9, -1e+30  ;;  %3366 = vpow2.f32 %v2471_v8  ;;  %v2399_v6 = vsel %vm7162_vm9, %v2335_v61, -1e+30  ;;  %v2366_v47 = vsub.f32 %v7163_v59, %v2302_v35  ;;  %2583 = vadd.xlane.f32.xlu0 %v2582_v42  ;;  %v5906_v31 = vpop.eup %3354  ;;  %v7168_v8 = vld [vmem:[#allocation91_spill] sm:$0xff]  ;;  %v7172_v42 = vld [vmem:[#allocation74_spill] sm:$0xff] }
 0x37a   :  { %v2533_v15 = vmul.f32 1.442695, %v2428_v57  ;;  %3368 = vpow2.f32 %v2473_v1  ;;  %v2475_v23 = vmul.f32 1.442695, %v2399_v6  ;;  %v2477_v63 = vmul.f32 1.442695, %v2336_v3  ;;  %v5920_v17 = vpop.eup %3356 }
 0x37b   :  { %vm7165_vm5 = vnez %v7164_v20  ;;  %v2585_v28 = vadd.f32 %v5894_v56, %v5886_v19  ;;  %v2747_v54 = vsel %vm7110_vm0, %v5900_v37, 0.0  ;;  %vm7167_vm9 = vcmp.gt.s32.totalorder %v7097_v5, %v7166_v38  ;;  %v5924_v35 = vpop.eup %3358  ;;  %v7174_v57 = vld [vmem:[#allocation24_spill] sm:$0xff] }
 0x37c   :  { %v2273_v41 = vsel %vm7165_vm5, %v5742_v2, %v5744_v26  ;;  %v2430_v10 = vsel %vm7167_vm9, %v2366_v47, -1e+30  ;;  %vm7169_vm12 = vnez %v7168_v8  ;;  %3370 = vpow2.f32 %v2533_v15  ;;  %v5936_v3 = vpop.eup %3360  ;;  %v7179_v38 = vld [vmem:[#allocation60_spill] sm:$0xff] }
 0x37d   :  { %v2274_v1 = vsel %vm7169_vm12, %v5742_v2, %v5744_v26  ;;  %v2537_v9 = vmul.f32 1.442695, %v2430_v10  ;;  %v2337_v18 = vsub.f32 %v7170_v29, %v2273_v41  ;;  %2586 = vadd.xlane.f32.xlu1 %v2585_v28  ;;  %v2588_v51 = vadd.f32 %v5920_v17, %v5906_v31  ;;  %2828 = vadd.xlane.f32.xlu0 %v2747_v54  ;;  %v7178_v41 = vld [vmem:[#allocation101_spill] sm:$0xff]  ;;  %v7181_v10 = vld [vmem:[#allocation79_spill] sm:$0xff] }
 0x37e   :  { %v2338_v61 = vsub.f32 %v7171_v43, %v2274_v1  ;;  %3372 = vpow2.f32 %v2475_v23  ;;  %vm7173_vm0 = vnez %v7172_v42  ;;  %vm7175_vm9 = vnez %v7174_v57  ;;  %v5944_v47 = vpop.eup %3362 }
 0x37f   :  { %v2304_v22 = vsel %vm7173_vm0, %v5742_v2, %v5744_v26  ;;  %v2275_v30 = vsel %vm7175_vm9, %v5742_v2, %v5744_v26  ;;  %v2749_v15 = vsel %vm7119_vm3, %v5924_v35, 0.0  ;;  %3374 = vpow2.f32 %v2477_v63  ;;  %v7182_v63 = vld [vmem:[#allocation64_spill] sm:$0xff] }
 0x380   :  { %vm7177_vm12 = vcmp.gt.s32.totalorder %v7100_v60, %v7176_v12  ;;  %v2481_v59 = vmul.f32 1.442695, %v2338_v61  ;;  %v2368_v28 = vsub.f32 %v7178_v41, %v2304_v22  ;;  %vm7180_vm9 = vnez %v7179_v38  ;;  %v7185_v61 = vld [vmem:[#allocation96_spill] sm:$0xff]  ;;  %v7187_v12 = vld [vmem:[#allocation103_spill] sm:$0xff] }
 0x381   :  { %v2401_v6 = vsel %vm7177_vm12, %v2337_v18, -1e+30  ;;  %v2276_v54 = vsel %vm7180_vm9, %v5742_v2, %v5744_v26  ;;  %v2339_v1 = vsub.f32 %v7181_v10, %v2275_v30  ;;  %v2591_v36 = vadd.f32 %v5944_v47, %v5936_v3  ;;  %v7183_v18 = vld [vmem:[#allocation97_spill] sm:$0xff]  ;;  %2589 = vadd.xlane.f32.xlu1 %v2588_v51  ;;  %2831 = vadd.xlane.f32.xlu0 %v2749_v15  ;;  %v7191_v51 = vld [vmem:[#allocation78_spill] sm:$0xff] }
 0x382   :  { %v2479_v23 = vmul.f32 1.442695, %v2401_v6  ;;  %3376 = vpow2.f32 %v2537_v9  ;;  %v2340_v29 = vsub.f32 %v7182_v63, %v2276_v54  ;;  %vm7184_vm3 = vnez %v7183_v18  ;;  %v7189_v6 = vld [vmem:[#allocation102_spill] sm:$0xff]  ;;  %v5966_v9 = vpop.eup %3364 }
 0x383   :  { %v2306_v43 = vsel %vm7184_vm3, %v5742_v2, %v5744_v26  ;;  %3378 = vpow2.f32 %v2481_v59  ;;  %vm7186_vm12 = vcmp.gt.s32.totalorder %v7097_v5, %v7185_v61  ;;  %vm7188_vm9 = vcmp.gt.s32.totalorder %v7100_v60, %v7187_v12  ;;  %7190 = vst [vmem:[#allocation52_spill] sm:$0xff] %v5966_v9  ;;  %v5972_v63 = vpop.eup %3366  ;;  %v7193_v61 = vld [vmem:[#allocation100_spill] sm:$0xff] }
 0x384   :  { %v2432_v22 = vsel %vm7186_vm12, %v2368_v28, -1e+30  ;;  %v2403_v30 = vsel %vm7188_vm9, %v2339_v1, -1e+30  ;;  %v2370_v41 = vsub.f32 %v7189_v6, %v2306_v43  ;;  %3380 = vpow2.f32 %v2479_v23  ;;  %v7195_v43 = vld [vmem:[#allocation37_spill] sm:$0xff]  ;;  %v7197_v23 = vld [vmem:[#allocation80_spill] sm:$0xff]  ;;  %v5982_v12 = vpop.eup %3368 }
 0x385   :  { %v2541_v54 = vmul.f32 1.442695, %v2432_v22  ;;  %v2483_v10 = vmul.f32 1.442695, %v2403_v30  ;;  %vm7192_vm5 = vnez %v7191_v51  ;;  %v2485_v28 = vmul.f32 1.442695, %v2340_v29  ;;  %2592 = vadd.xlane.f32.xlu1 %v2591_v36 }
 0x386   :  { %v2277_v59 = vsel %vm7192_vm5, %v5742_v2, %v5744_v26  ;;  %vm7194_vm12 = vcmp.gt.s32.totalorder %v7097_v5, %v7193_v61  ;;  %vm7196_vm9 = vnez %v7195_v43  ;;  %v7198_v6 = vld [vmem:[#allocation106_spill] sm:$0xff]  ;;  %v2751_v29 = vsel %vm7134_vm13, %v5966_v9, 0.0  ;;  %v5991_v34 = vpop.eup %3370 }
 0x387   :  { %v2434_v1 = vsel %vm7194_vm12, %v2370_v41, -1e+30  ;;  %v2278_v15 = vsel %vm7196_vm9, %v5742_v2, %v5744_v26  ;;  %v2341_v22 = vsub.f32 %v7197_v23, %v2277_v59  ;;  %3382 = vpow2.f32 %v2541_v54  ;;  %v7199_v41 = vld [vmem:[#allocation65_spill] sm:$0xff]  ;;  %7201 = vst [vmem:[#allocation35_spill] sm:$0xff] %v5991_v34  ;;  %2834 = vadd.xlane.f32.xlu0 %v2751_v29 }
 0x388   :  { %v2545_v30 = vmul.f32 1.442695, %v2434_v1  ;;  %v2342_v46 = vsub.f32 %v7198_v6, %v2278_v15  ;;  %3384 = vpow2.f32 %v2483_v10  ;;  %vm7200_vm12 = vcmp.gt.s32.totalorder %v7100_v60, %v7199_v41  ;;  %v5993_v54 = vpop.eup %3372  ;;  %v7204_v1 = vld [vmem:[#allocation107_spill] sm:$0xff]  ;;  %v7207_v6 = vld [vmem:[#allocation66_spill] sm:$0xff] }
 0x389   :  { %v2405_v61 = vsel %vm7200_vm12, %v2341_v22, -1e+30  ;;  %3386 = vpow2.f32 %v2485_v28  ;;  %v2594_v36 = vadd.f32 %v5982_v12, %v5972_v63  ;;  %vm7203_vm13 = vnez %v7202_v14  ;;  %v6005_v22 = vpop.eup %3374  ;;  %v7206_v28 = vld [vmem:[#allocation85_spill] sm:$0xff] }
 0x38a   :  { %v2487_v59 = vmul.f32 1.442695, %v2405_v61  ;;  %v2489_v23 = vmul.f32 1.442695, %v2342_v46  ;;  %3388 = vpow2.f32 %v2545_v30  ;;  %v2279_v10 = vsel %vm7203_vm13, %v5742_v2, %v5744_v26  ;;  %v7209_v61 = vld [vmem:[#allocation45_spill] sm:$0xff] }
 0x38b   :  { %vm7205_vm12 = vnez %v7204_v1  ;;  %v2343_v46 = vsub.f32 %v7206_v28, %v2279_v10  ;;  %2595 = vadd.xlane.f32.xlu1 %v2594_v36  ;;  %v2753_v30 = vsel %vm7147_vm14, %v5991_v34, 0.0  ;;  %vm7210_vm13 = vcmp.gt.s32.totalorder %v7100_v60, %v7209_v61  ;;  %v7212_v28 = vld [vmem:[#allocation111_spill] sm:$0xff]  ;;  %v7232_v10 = vld [vmem:[#allocation124_spill] sm:$0xff] }
 0x38c   :  { %v2280_v15 = vsel %vm7205_vm12, %v5742_v2, %v5744_v26  ;;  %3390 = vpow2.f32 %v2487_v59  ;;  %v6012_v41 = vpop.eup %3376  ;;  %2837 = vadd.xlane.f32.xlu0 %v2753_v30  ;;  %v2597_v50 = vadd.f32 %v6005_v22, %v5993_v54  ;;  %vm7213_vm14 = vnez %v7212_v28 }
 0x38d   :  { %v2344_v29 = vsub.f32 %v7207_v6, %v2280_v15  ;;  %7208 = vst [vmem:[#allocation38_spill] sm:$0xff] %v6012_v41  ;;  %3392 = vpow2.f32 %v2489_v23  ;;  %v2407_v21 = vsel %vm7210_vm13, %v2343_v46, -1e+30  ;;  %v2281_v15 = vsel %vm5182_vm11, %v5742_v2, %v5744_v26  ;;  %v6021_v36 = vpop.eup %3378  ;;  %v7214_v6 = vld [vmem:[#allocation87_spill] sm:$0xff] }
 0x38e   :  { %v2491_v59 = vmul.f32 1.442695, %v2407_v21  ;;  %v2282_v23 = vsel %vm7213_vm14, %v5742_v2, %v5744_v26  ;;  %v2345_v30 = vsub.f32 %v7214_v6, %v2281_v15  ;;  %v6030_v46 = vpop.eup %3380  ;;  %v2755_v7 = vsel %vm7157_vm2, %v6012_v41, 0.0  ;;  %v7216_v21 = vld [vmem:[#allocation46_spill] sm:$0xff] }
 0x38f   :  { %v2493_v27 = vmul.f32 1.442695, %v2344_v29  ;;  %v7215_v29 = vld [vmem:[#allocation68_spill] sm:$0xff]  ;;  %2598 = vadd.xlane.f32.xlu1 %v2597_v50  ;;  %vm7217_vm13 = vcmp.gt.s32.totalorder %v7100_v60, %v7216_v21  ;;  %v2283_v15 = vsel %vm5280_vm4, %v5742_v2, %v5744_v26  ;;  %v7223_v21 = vld [vmem:[#allocation119_spill] sm:$0xff]  ;;  %v2288_v18 = vsel %vm5464_vm10, %v5742_v2, %v5744_v26 }
 0x390   :  { %v2346_v61 = vsub.f32 %v7215_v29, %v2282_v23  ;;  %v2409_v16 = vsel %vm7217_vm13, %v2345_v30, -1e+30  ;;  %2840 = vadd.xlane.f32.xlu0 %v2755_v7  ;;  %v7220_v50 = vld [vmem:[#allocation112_spill] sm:$0xff]  ;;  %v2600_v30 = vadd.f32 %v6030_v46, %v6021_v36  ;;  %v7224_v7 = vld [vmem:[#allocation114_spill] sm:$0xff] }
 0x391   :  { %3394 = vpow2.f32 %v2493_v27  ;;  %v6043_v6 = vpop.eup %3382  ;;  %v2495_v27 = vmul.f32 1.442695, %v2409_v16  ;;  %vm7221_vm14 = vnez %v7220_v50  ;;  %vm7225_vm2 = vcmp.gt.s32.totalorder %v7100_v60, %v7224_v7  ;;  %v7231_v7 = vld [vmem:[#allocation122_spill] sm:$0xff] }
 0x392   :  { %3396 = vpow2.f32 %v2491_v59  ;;  %7219 = vst [vmem:[#allocation50_spill] sm:$0xff] %v6043_v6  ;;  %v2497_v23 = vmul.f32 1.442695, %v2346_v61  ;;  %v2284_v0 = vsel %vm7221_vm14, %v5742_v2, %v5744_v26  ;;  %v7222_v59 = vld [vmem:[#allocation117_spill] sm:$0xff]  ;;  %v6050_v41 = vpop.eup %3384 }
 0x393   :  { %v2347_v29 = vsub.f32 %v7222_v59, %v2283_v15  ;;  %v2348_v5 = vsub.f32 %v7223_v21, %v2284_v0  ;;  %v6055_v34 = vpop.eup %3386  ;;  %v7226_v61 = vld [vmem:[#allocation49_spill] sm:$0xff]  ;;  %2601 = vadd.xlane.f32.xlu1 %v2600_v30  ;;  %v2757_v15 = vsel %vm7173_vm0, %v6043_v6, 0.0  ;;  %3398 = vpow2.f32 %v2495_v27 }
 0x394   :  { %vm7227_vm13 = vnez %v7226_v61  ;;  %v6064_v9 = vpop.eup %3388  ;;  %2843 = vadd.xlane.f32.xlu0 %v2757_v15  ;;  %3400 = vpow2.f32 %v2497_v23  ;;  %v2603_v30 = vadd.f32 %v6055_v34, %v6050_v41  ;;  %v2287_v23 = vsel %vm5437_vm15, %v5742_v2, %v5744_v26 }
 0x395   :  { %v2411_v16 = vsel %vm7225_vm2, %v2347_v29, -1e+30  ;;  %v2285_v50 = vsel %vm7227_vm13, %v5742_v2, %v5744_v26  ;;  %7228 = vst [vmem:[#allocation61_spill] sm:$0xff] %v6064_v9  ;;  %v2501_v59 = vmul.f32 1.442695, %v2348_v5  ;;  %v7229_v29 = vld [vmem:[#allocation69_spill] sm:$0xff] }
 0x396   :  { %v2499_v0 = vmul.f32 1.442695, %v2411_v16  ;;  %vm7230_vm2 = vnez %v7229_v29  ;;  %v2349_v61 = vsub.f32 %v7231_v7, %v2285_v50  ;;  %v6074_v28 = vpop.eup %3390  ;;  %v2759_v16 = vsel %vm7184_vm3, %v6064_v9, 0.0  ;;  %v7237_v9 = vld [vmem:[#allocation129_spill] sm:$0xff] }
 0x397   :  { %v2286_v21 = vsel %vm7230_vm2, %v5742_v2, %v5744_v26  ;;  %v6083_v5 = vpop.eup %3392  ;;  %v2714_v50 = vsel %vm4230_vm7, %v5870_v58, 0.0  ;;  %v2715_v15 = vsel %vm4236_vm8, %v5873_v39, 0.0  ;;  %2604 = vadd.xlane.f32.xlu1 %v2603_v30  ;;  %v2351_v27 = vsub.f32 %v7237_v9, %v2287_v23  ;;  %v7238_v58 = vld [vmem:[#allocation131_spill] sm:$0xff] }
 0x398   :  { %v2350_v42 = vsub.f32 %v7232_v10, %v2286_v21  ;;  %v7234_v10 = vld [vmem:[#allocation118_spill] sm:$0xff]  ;;  %3402 = vpow2.f32 %v2499_v0  ;;  %2846 = vadd.xlane.f32.xlu0 %v2759_v16  ;;  %v2352_v39 = vsub.f32 %v7238_v58, %v2288_v18  ;;  %v2289_v0 = vsel %vm5491_vm1, %v5742_v2, %v5744_v26 }
 0x399   :  { %vm7235_vm0 = vcmp.gt.s32.totalorder %v7100_v60, %v7234_v10  ;;  %3404 = vpow2.f32 %v2501_v59  ;;  %v2606_v10 = vadd.f32 %v6083_v5, %v6074_v28  ;;  %v2779_v23 = vadd.f32 %v2715_v15, %v2714_v50 }
 0x39a   :  { %v2413_v21 = vsel %vm7235_vm0, %v2349_v61, -1e+30  ;;  %v2505_v13 = vmul.f32 1.442695, %v2350_v42  ;;  %v2290_v42 = vsel %vm5562_vm6, %v5742_v2, %v5744_v26  ;;  %vm7243_vm8 = vnez %v7094_v11  ;;  %v7245_v61 = vld [vmem:[#allocation133_spill] sm:$0xff] }
 0x39b   :  { %v2503_v7 = vmul.f32 1.442695, %v2413_v21  ;;  %v6102_v55 = vpop.eup %3394  ;;  %v7240_v21 = vld [vmem:[#allocation127_spill] sm:$0xff]  ;;  %v2716_v16 = vsel %vm7243_vm8, %v5886_v19, 0.0  ;;  %vm7244_vm3 = vnez %v7095_v44  ;;  %2607 = vadd.xlane.f32.xlu1 %v2606_v10  ;;  %v2509_v59 = vmul.f32 1.442695, %v2352_v39 }
 0x39c   :  { %v6109_v30 = vpop.eup %3396  ;;  %vm7241_vm7 = vcmp.gt.s32.totalorder %v7100_v60, %v7240_v21  ;;  %v2717_v18 = vsel %vm7244_vm3, %v5894_v56, 0.0  ;;  %v2353_v21 = vsub.f32 %v7245_v61, %v2289_v0  ;;  %2780 = vadd.xlane.f32.xlu0 %v2779_v23  ;;  %vm7247_vm0 = vnez %v7085_v48  ;;  %v7249_v56 = vld [vmem:[#allocation130_spill] sm:$0xff] }
 0x39d   :  { %v2415_v9 = vsel %vm7241_vm7, %v2351_v27, -1e+30  ;;  %3406 = vpow2.f32 %v2503_v7  ;;  %v7246_v27 = vld [vmem:[#allocation137_spill] sm:$0xff]  ;;  %v2712_v50 = vsel %vm7247_vm0, %v5863_v52, 0.0  ;;  %vm7248_vm7 = vnez %v7086_v40  ;;  %v6134_v44 = vpop.eup %3398 }
 0x39e   :  { %v2507_v58 = vmul.f32 1.442695, %v2415_v9  ;;  %v2354_v6 = vsub.f32 %v7246_v27, %v2290_v42  ;;  %3408 = vpow2.f32 %v2505_v13  ;;  %v2713_v11 = vsel %vm7248_vm7, %v5848_v32, 0.0  ;;  %v6141_v13 = vpop.eup %3400  ;;  %v7272_v27 = vld [vmem:[#allocation52_spill] sm:$0xff] }
 0x39f   :  { %v2609_v19 = vadd.f32 %v6109_v30, %v6102_v55  ;;  %vm7250_vm8 = vcmp.gt.s32.totalorder %v7100_v60, %v7249_v56  ;;  %v2776_v7 = vadd.f32 %v2713_v11, %v2712_v50  ;;  %v2782_v39 = vadd.f32 %v2717_v18, %v2716_v16  ;;  %v7276_v56 = vld [vmem:[#allocation41_spill] sm:$0xff] }
 0x3a0   :  { %v2417_v15 = vsel %vm7250_vm8, %v2353_v21, -1e+30  ;;  %vm7251_vm3 = vnez %v7112_v33  ;;  %vm7252_vm0 = vnez %v7114_v53  ;;  %3410 = vpow2.f32 %v2507_v58 }
 0x3a1   :  { %2610 = vadd.xlane.f32.xlu1 %v2609_v19  ;;  %v2718_v48 = vsel %vm7251_vm3, %v5906_v31, 0.0  ;;  %v2719_v40 = vsel %vm7252_vm0, %v5920_v17, 0.0  ;;  %v2513_v32 = vmul.f32 1.442695, %v2354_v6  ;;  %2783 = vadd.xlane.f32.xlu0 %v2782_v39  ;;  %3412 = vpow2.f32 %v2509_v59  ;;  %v7275_v19 = vld [vmem:[#allocation17_spill] sm:$0xff]  ;;  %v7279_v39 = vld [vmem:[#allocation110_spill] sm:$0xff] }
 0x3a2   :  { %v2511_v52 = vmul.f32 1.442695, %v2417_v15  ;;  %v6149_v60 = vpop.eup %3402  ;;  %v2612_v61 = vadd.f32 %v6141_v13, %v6134_v44  ;;  %v2785_v10 = vadd.f32 %v2719_v40, %v2718_v48  ;;  %vm7253_vm7 = vnez %v7123_v24 }
 0x3a3   :  { %v6153_v0 = vpop.eup %3404  ;;  %v2720_v33 = vsel %vm7253_vm7, %v5944_v47, 0.0  ;;  %vm7254_vm8 = vnez %v7129_v62  ;;  %3414 = vpow2.f32 %v2513_v32  ;;  %vm7255_vm3 = vnez %v7135_v4 }
 0x3a4   :  { %v2721_v53 = vsel %vm7254_vm8, %v5936_v3, 0.0  ;;  %3416 = vpow2.f32 %v2511_v52  ;;  %v2615_v17 = vadd.f32 %v6153_v0, %v6149_v60  ;;  %v2722_v24 = vsel %vm7255_vm3, %v5972_v63, 0.0  ;;  %v7281_v52 = vld [vmem:[#allocation35_spill] sm:$0xff] }
 0x3a5   :  { %2613 = vadd.xlane.f32.xlu1 %v2612_v61  ;;  %2786 = vadd.xlane.f32.xlu0 %v2785_v10  ;;  %v2788_v9 = vadd.f32 %v2721_v53, %v2720_v33  ;;  %vm7256_vm0 = vnez %v7137_v45  ;;  %vm7257_vm7 = vnez %v7148_v25  ;;  %vm7258_vm8 = vnez %v7153_v49  ;;  %v7283_v10 = vld [vmem:[#allocation108_spill] sm:$0xff] }
 0x3a6   :  { %v2723_v62 = vsel %vm7256_vm0, %v5982_v12, 0.0  ;;  %v2724_v23 = vsel %vm7257_vm7, %v5993_v54, 0.0  ;;  %v2725_v4 = vsel %vm7258_vm8, %v6005_v22, 0.0  ;;  %vm7259_vm3 = vnez %v7164_v20  ;;  %v7285_v53 = vld [vmem:[#allocation36_spill] sm:$0xff] }
 0x3a7   :  { %v6161_v31 = vpop.eup %3406  ;;  %v2791_v42 = vadd.f32 %v2723_v62, %v2722_v24  ;;  %v2794_v16 = vadd.f32 %v2725_v4, %v2724_v23  ;;  %v2726_v18 = vsel %vm7259_vm3, %v6030_v46, 0.0  ;;  %vm7260_vm0 = vnez %v7168_v8  ;;  %v7291_v4 = vld [vmem:[#allocation86_spill] sm:$0xff] }
 0x3a8   :  { %v6165_v6 = vpop.eup %3408  ;;  %v2727_v25 = vsel %vm7260_vm0, %v6021_v36, 0.0  ;;  %vm7261_vm7 = vnez %v7174_v57  ;;  %vm7262_vm8 = vnez %v7179_v38  ;;  %v2730_v8 = vsel %vm7192_vm5, %v6074_v28, 0.0  ;;  %v7264_v38 = vld [vmem:[#allocation33_spill] sm:$0xff] }
 0x3a9   :  { %2616 = vadd.xlane.f32.xlu1 %v2615_v17  ;;  %2789 = vadd.xlane.f32.xlu0 %v2788_v9  ;;  %v2618_v47 = vadd.f32 %v6165_v6, %v6161_v31  ;;  %v2797_v54 = vadd.f32 %v2727_v25, %v2726_v18  ;;  %v2728_v22 = vsel %vm7261_vm7, %v6050_v41, 0.0  ;;  %v2729_v58 = vsel %vm7262_vm8, %v6055_v34, 0.0  ;;  %v7286_v9 = vld [vmem:[#allocation53_spill] sm:$0xff]  ;;  %v7294_v25 = vld [vmem:[#allocation116_spill] sm:$0xff] }
 0x3aa   :  { %v6173_v3 = vpop.eup %3410  ;;  %v2800_v20 = vadd.f32 %v2729_v58, %v2728_v22  ;;  %v2731_v36 = vsel %vm7196_vm9, %v6083_v5, 0.0  ;;  %vm7263_vm3 = vnez %v7202_v14  ;;  %v2733_v34 = vsel %vm7205_vm12, %v6102_v55, 0.0  ;;  %v7267_v14 = vld [vmem:[#allocation111_spill] sm:$0xff]  ;;  %v7269_v5 = vld [vmem:[#allocation105_spill] sm:$0xff]  ;;  %v7270_v55 = vld [vmem:[#allocation104_spill] sm:$0xff] }
 0x3ab   :  { %v6177_v59 = vpop.eup %3412  ;;  %v2803_v46 = vadd.f32 %v2731_v36, %v2730_v8  ;;  %v2732_v57 = vsel %vm7263_vm3, %v6109_v30, 0.0  ;;  %vm7265_vm5 = vnez %v7264_v38  ;;  %vm7268_vm9 = vnez %v7267_v14  ;;  %v7299_v36 = vld [vmem:[#allocation113_spill] sm:$0xff]  ;;  %v7305_v14 = vld [vmem:[#allocation120_spill] sm:$0xff] }
 0x3ac   :  { %v2621_v63 = vadd.f32 %v6177_v59, %v6173_v3  ;;  %v2308_v51 = vsel %vm7265_vm5, %v5742_v2, %v5744_v26  ;;  %v2806_v43 = vadd.f32 %v2733_v34, %v2732_v57  ;;  %v2735_v28 = vsel %vm7268_vm9, %v6141_v13, 0.0  ;;  %v7301_v57 = vld [vmem:[#allocation123_spill] sm:$0xff] }
 0x3ad   :  { %2619 = vadd.xlane.f32.xlu1 %v2618_v47  ;;  %2792 = vadd.xlane.f32.xlu0 %v2791_v42  ;;  %v6185_v45 = vpop.eup %3414  ;;  %v2372_v1 = vsub.f32 %v7269_v5, %v2308_v51  ;;  %vm7271_vm12 = vnez %v7270_v55  ;;  %v2736_v50 = vsel %vm5280_vm4, %v6149_v60, 0.0  ;;  %vm7280_vm0 = vnez %v7279_v39  ;;  %v7302_v51 = vld [vmem:[#allocation121_spill] sm:$0xff] }
 0x3ae   :  { %v6189_v12 = vpop.eup %3416  ;;  %v2310_v30 = vsel %vm7271_vm12, %v5742_v2, %v5744_v26  ;;  %v2312_v48 = vsel %vm7280_vm0, %v5742_v2, %v5744_v26  ;;  %v2738_v61 = vsel %vm7227_vm13, %v6161_v31, 0.0  ;;  %vm7284_vm4 = vcmp.gt.s32.totalorder %v7275_v19, %v7283_v10  ;;  %v7288_v31 = vld [vmem:[#allocation38_spill] sm:$0xff] }
 0x3af   :  { %v2624_v49 = vadd.f32 %v6189_v12, %v6185_v45  ;;  %v2376_v17 = vsub.f32 %v7285_v53, %v2312_v48  ;;  %v2741_v23 = vsel %vm5464_vm10, %v6177_v59, 0.0  ;;  %vm7292_vm13 = vcmp.gt.s32.totalorder %v7275_v19, %v7291_v4 }
 0x3b0   :  { %v2742_v59 = vsel %vm5491_vm1, %v6189_v12, 0.0  ;;  %v2743_v8 = vsel %vm5562_vm6, %v6185_v45, 0.0  ;;  %vm7300_vm10 = vcmp.gt.s32.totalorder %v7275_v19, %v7299_v36  ;;  %v7304_v12 = vld [vmem:[#allocation61_spill] sm:$0xff]  ;;  %vm7306_vm6 = vcmp.gt.s32.totalorder %v7275_v19, %v7305_v14 }
 0x3b1   :  { %2622 = vadd.xlane.f32.xlu1 %v2621_v63  ;;  %2795 = vadd.xlane.f32.xlu0 %v2794_v16  ;;  %v2440_v63 = vsel %vm7292_vm13, %v2376_v17, -1e+30  ;;  %v7293_v16 = vld [vmem:[#allocation115_spill] sm:$0xff]  ;;  %v2821_v41 = vadd.f32 %v2743_v8, %v2742_v59  ;;  %vm7326_vm9 = vcmask 0  }
 0x3b2   :  { %v2557_v22 = vmul.f32 1.442695, %v2440_v63 }
 0x3b5   :  { %2625 = vadd.xlane.f32.xlu1 %v2624_v49  ;;  %2798 = vadd.xlane.f32.xlu0 %v2797_v54 }
 0x3b9   :  { %2777 = vadd.xlane.f32.xlu1 %v2776_v7  ;;  %2801 = vadd.xlane.f32.xlu0 %v2800_v20  ;;  %v7278_v7 = vld [vmem:[#allocation109_spill] sm:$0xff] }
 0x3ba   :  { %v2374_v13 = vsub.f32 %v7278_v7, %v2310_v30  ;;  %v7308_v30 = vld [vmem:[#allocation134_spill] sm:$0xff]  ;;  %v7313_v7 = vld [vmem:[#allocation139_spill] sm:$0xff] }
 0x3bb   :  { %vm7309_vm1 = vnez %v7308_v30  ;;  %vm7314_vm8 = vnez %v7313_v7 }
 0x3bc   :  { %v2438_v33 = vsel %vm7284_vm4, %v2374_v13, -1e+30  ;;  %v2322_v13 = vsel %vm7314_vm8, %v5742_v2, %v5744_v26 }
 0x3bd   :  { %2631 = vadd.xlane.f32.xlu1 %v5900_v37  ;;  %2804 = vadd.xlane.f32.xlu0 %v2803_v46  ;;  %v2734_v37 = vsel %vm5182_vm11, %v6134_v44, 0.0  ;;  %v2737_v44 = vsel %vm7221_vm14, %v6153_v0, 0.0  ;;  %vm7277_vm11 = vcmp.gt.s32.totalorder %v7275_v19, %v7276_v56  ;;  %v2739_v0 = vsel %vm7230_vm2, %v6165_v6, 0.0 }
 0x3be   :  { %v2809_v21 = vadd.f32 %v2735_v28, %v2734_v37  ;;  %v2436_v15 = vsel %vm7277_vm11, %v2372_v1, -1e+30  ;;  %v2812_v40 = vadd.f32 %v2737_v44, %v2736_v50  ;;  %vm7287_vm14 = vnez %v7286_v9  ;;  %v7307_v28 = vld [vmem:[#allocation128_spill] sm:$0xff]  ;;  %v7310_v50 = vld [vmem:[#allocation126_spill] sm:$0xff] }
 0x3bf   :  { %v2549_v32 = vmul.f32 1.442695, %v2436_v15  ;;  %v2314_v24 = vsel %vm7287_vm14, %v5742_v2, %v5744_v26  ;;  %v2815_v62 = vadd.f32 %v2739_v0, %v2738_v61  ;;  %v2553_v47 = vmul.f32 1.442695, %v2438_v33  ;;  %v7312_v44 = vld [vmem:[#allocation136_spill] sm:$0xff] }
 0x3c0   :  { %v2740_v6 = vsel %vm5437_vm15, %v6173_v3, 0.0  ;;  %v2378_v18 = vsub.f32 %v7293_v16, %v2314_v24  ;;  %vm7295_vm2 = vnez %v7294_v25  ;;  %v7296_v3 = vld [vmem:[#allocation50_spill] sm:$0xff]  ;;  %vm7303_vm15 = vnez %v7302_v51 }
 0x3c1   :  { %2634 = vadd.xlane.f32.xlu1 %v5924_v35  ;;  %2807 = vadd.xlane.f32.xlu0 %v2806_v43  ;;  %3418 = vpow2.f32 %v2549_v32  ;;  %v2316_v49 = vsel %vm7295_vm2, %v5742_v2, %v5744_v26  ;;  %v2818_v54 = vadd.f32 %v2741_v23, %v2740_v6  ;;  %v2318_v43 = vsel %vm7303_vm15, %v5742_v2, %v5744_v26 }
 0x3c2   :  { %3420 = vpow2.f32 %v2553_v47  ;;  %v2442_v46 = vsel %vm7300_vm10, %v2378_v18, -1e+30  ;;  %v2380_v34 = vsub.f32 %v7301_v57, %v2316_v49  ;;  %v2382_v5 = vsub.f32 %v7307_v28, %v2318_v43 }
 0x3c3   :  { %3422 = vpow2.f32 %v2557_v22  ;;  %v2561_v37 = vmul.f32 1.442695, %v2442_v46  ;;  %vm7311_vm7 = vcmp.gt.s32.totalorder %v7275_v19, %v7310_v50 }
 0x3c4   :  { %v2444_v45 = vsel %vm7306_vm6, %v2380_v34, -1e+30  ;;  %v2446_v11 = vsel %vm7311_vm7, %v2382_v5, -1e+30 }
 0x3c5   :  { %2637 = vadd.xlane.f32.xlu1 %v7272_v27  ;;  %2810 = vadd.xlane.f32.xlu0 %v2809_v21  ;;  %v2320_v21 = vsel %vm7309_vm1, %v5742_v2, %v5744_v26  ;;  %3424 = vpow2.f32 %v2561_v37  ;;  %v2565_v27 = vmul.f32 1.442695, %v2444_v45  ;;  %v2569_v48 = vmul.f32 1.442695, %v2446_v11  ;;  %v7318_v26 = vld [vmem:[#allocation138_spill] sm:$0xff] }
 0x3c6   :  { %v2384_v56 = vsub.f32 %v7312_v44, %v2320_v21 }
 0x3c7   :  { %3426 = vpow2.f32 %v2565_v27 }
 0x3c8   :  { %3428 = vpow2.f32 %v2569_v48 }
 0x3c9   :  { %2640 = vadd.xlane.f32.xlu1 %v7281_v52  ;;  %2813 = vadd.xlane.f32.xlu0 %v2812_v40  ;;  %v7315_v40 = vld [vmem:[#allocation132_spill] sm:$0xff] }
 0x3ca   :  { %vm7316_vm3 = vcmp.gt.s32.totalorder %v7275_v19, %v7315_v40  ;;  %v7317_v52 = vld [vmem:[#allocation140_spill] sm:$0xff] }
 0x3cb   :  { %v3419_v1 = vpop.eup %3418  ;;  %v2448_v32 = vsel %vm7316_vm3, %v2384_v56, -1e+30  ;;  %v2386_v60 = vsub.f32 %v7317_v52, %v2322_v13 }
 0x3cc   :  { %v2761_v35 = vsel %vm7265_vm5, %v3419_v1, 0.0  ;;  %v3421_v15 = vpop.eup %3420  ;;  %v2573_v0 = vmul.f32 1.442695, %v2448_v32  ;;  %vm7319_vm5 = vcmp.gt.s32.totalorder %v7275_v19, %v7318_v26 }
 0x3cd   :  { %2643 = vadd.xlane.f32.xlu1 %v7288_v31  ;;  %2816 = vadd.xlane.f32.xlu0 %v2815_v62  ;;  %v2763_v38 = vsel %vm7271_vm12, %v3421_v15, 0.0  ;;  %v3423_v61 = vpop.eup %3422  ;;  %v2450_v10 = vsel %vm7319_vm5, %v2386_v60, -1e+30  ;;  %vm7327_vm12 = vmmov %vm7326_vm9 }
 0x3ce   :  { %v2765_v2 = vsel %vm7280_vm0, %v3423_v61, 0.0  ;;  %3430 = vpow2.f32 %v2573_v0  ;;  %v2577_v33 = vmul.f32 1.442695, %v2450_v10  ;;  %vm7328_vm0 = vmmov %vm7326_vm9 }
 0x3cf   :  { %v3425_v55 = vpop.eup %3424 }
 0x3d0   :  { %v2767_v53 = vsel %vm7287_vm14, %v3425_v55, 0.0  ;;  %3432 = vpow2.f32 %v2577_v33 }
 0x3d1   :  { %2646 = vadd.xlane.f32.xlu1 %v7296_v3  ;;  %2819 = vadd.xlane.f32.xlu0 %v2818_v54  ;;  %v3427_v17 = vpop.eup %3426 }
 0x3d2   :  { %v2769_v39 = vsel %vm7295_vm2, %v3427_v17, 0.0  ;;  %v3429_v24 = vpop.eup %3428 }
 0x3d3   :  { %v2771_v19 = vsel %vm7303_vm15, %v3429_v24, 0.0 }
 0x3d5   :  { %2649 = vadd.xlane.f32.xlu1 %v7304_v12  ;;  %2822 = vadd.xlane.f32.xlu0 %v2821_v41 }
 0x3d8   :  { %v3431_v62 = vpop.eup %3430 }
 0x3d9   :  { %2652 = vadd.xlane.f32.xlu1 %v3419_v1  ;;  %2849 = vadd.xlane.f32.xlu0 %v2761_v35  ;;  %v2773_v9 = vsel %vm7309_vm1, %v3431_v62, 0.0 }
 0x3da   :  { %v3433_v47 = vpop.eup %3432 }
 0x3db   :  { %v2775_v31 = vsel %vm7314_vm8, %v3433_v47, 0.0 }
 0x3dd   :  { %2655 = vadd.xlane.f32.xlu1 %v3421_v15  ;;  %2852 = vadd.xlane.f32.xlu0 %v2763_v38 }
 0x3e1   :  { %2658 = vadd.xlane.f32.xlu1 %v3423_v61  ;;  %2855 = vadd.xlane.f32.xlu0 %v2765_v2 }
 0x3e5   :  { %2661 = vadd.xlane.f32.xlu1 %v3425_v55  ;;  %2858 = vadd.xlane.f32.xlu0 %v2767_v53 }
 0x3e9   :  { %2664 = vadd.xlane.f32.xlu1 %v3427_v17  ;;  %2861 = vadd.xlane.f32.xlu0 %v2769_v39 }
 0x3ed   :  { %2667 = vadd.xlane.f32.xlu1 %v3429_v24  ;;  %2864 = vadd.xlane.f32.xlu0 %v2771_v19 }
 0x3f1   :  { %2670 = vadd.xlane.f32.xlu1 %v3431_v62  ;;  %2867 = vadd.xlane.f32.xlu0 %v2773_v9 }
 0x3f5   :  { %2673 = vadd.xlane.f32.xlu1 %v3433_v47  ;;  %2870 = vadd.xlane.f32.xlu0 %v2775_v31 }
 0x3fd   :  { %v6334_v29 = vpop.xlane.xlu1 %2628 }
 0x401   :  { %v6336_v6 = vpop.xlane.xlu0 %2825 }
 0x404   :  { %v2581_v42 = vpop.xlane.xlu1 %2580 }
 0x406   :  { %v2584_v23 = vpop.xlane.xlu0 %2583 }
 0x407   :  { %v2675_v30 = vadd.f32 %v2584_v23, %v2581_v42 }
 0x40a   :  { %v2587_v4 = vpop.xlane.xlu1 %2586  ;;  %v6338_v63 = vpop.xlane.xlu0 %2828 }
 0x40b   :  { %v2676_v35 = vadd.f32 %v2675_v30, %v2587_v4 }
 0x40e   :  { %v2590_v16 = vpop.xlane.xlu1 %2589  ;;  %v6340_v18 = vpop.xlane.xlu0 %2831 }
 0x40f   :  { %v2677_v44 = vadd.f32 %v2676_v35, %v2590_v16 }
 0x412   :  { %v2593_v25 = vpop.xlane.xlu1 %2592 }
 0x413   :  { %v2678_v7 = vadd.f32 %v2677_v44, %v2593_v25 }
 0x414   :  { %v6342_v49 = vpop.xlane.xlu0 %2834 }
 0x418   :  { %v2596_v54 = vpop.xlane.xlu1 %2595 }
 0x419   :  { %v6344_v22 = vpop.xlane.xlu0 %2837  ;;  %v2679_v38 = vadd.f32 %v2678_v7, %v2596_v54 }
 0x41c   :  { %v2599_v3 = vpop.xlane.xlu1 %2598 }
 0x41d   :  { %v6346_v58 = vpop.xlane.xlu0 %2840  ;;  %v2680_v52 = vadd.f32 %v2679_v38, %v2599_v3 }
 0x420   :  { %v2602_v59 = vpop.xlane.xlu1 %2601 }
 0x421   :  { %v6348_v20 = vpop.xlane.xlu0 %2843  ;;  %v2681_v0 = vadd.f32 %v2680_v52, %v2602_v59 }
 0x424   :  { %v2605_v8 = vpop.xlane.xlu1 %2604 }
 0x425   :  { %v6350_v36 = vpop.xlane.xlu0 %2846  ;;  %v2682_v10 = vadd.f32 %v2681_v0, %v2605_v8 }
 0x428   :  { %v2608_v46 = vpop.xlane.xlu1 %2607 }
 0x429   :  { %v2781_v57 = vpop.xlane.xlu0 %2780  ;;  %v2683_v53 = vadd.f32 %v2682_v10, %v2608_v46 }
 0x42e   :  { %v2611_v34 = vpop.xlane.xlu1 %2610  ;;  %v2784_v51 = vpop.xlane.xlu0 %2783 }
 0x42f   :  { %v2684_v24 = vadd.f32 %v2683_v53, %v2611_v34  ;;  %v7321_v53 = vld [vmem:[#allocation141_spill] sm:$0xff] }
 0x432   :  { %v2614_v43 = vpop.xlane.xlu1 %2613  ;;  %v2787_v41 = vpop.xlane.xlu0 %2786 }
 0x433   :  { %v2685_v9 = vadd.f32 %v2684_v24, %v2614_v43 }
 0x436   :  { %v2617_v37 = vpop.xlane.xlu1 %2616  ;;  %v2790_v12 = vpop.xlane.xlu0 %2789 }
 0x437   :  { %v2686_v42 = vadd.f32 %v2685_v9, %v2617_v37  ;;  %v7324_v9 = vld [vmem:[#allocation15_spill] sm:$0xff] }
 0x43a   :  { %v2620_v14 = vpop.xlane.xlu1 %2619  ;;  %v2793_v45 = vpop.xlane.xlu0 %2792 }
 0x43b   :  { %v2687_v16 = vadd.f32 %v2686_v42, %v2620_v14 }
 0x43e   :  { %v2623_v28 = vpop.xlane.xlu1 %2622  ;;  %v2796_v5 = vpop.xlane.xlu0 %2795 }
 0x43f   :  { %v2688_v3 = vadd.f32 %v2687_v16, %v2623_v28 }
 0x442   :  { %v2626_v1 = vpop.xlane.xlu1 %2625  ;;  %v2799_v21 = vpop.xlane.xlu0 %2798 }
 0x446   :  { %v2778_v27 = vpop.xlane.xlu1 %2777  ;;  %v2802_v11 = vpop.xlane.xlu0 %2801 }
 0x447   :  { %v2872_v50 = vadd.f32 %v2781_v57, %v2778_v27  ;;  %v2689_v57 = vadd.f32 %v2688_v3, %v2626_v1 }
 0x449   :  { %v2873_v56 = vadd.f32 %v2872_v50, %v2784_v51  ;;  %v2690_v34 = vadd.f32 %v2689_v57, %v6334_v29 }
 0x44a   :  { %v2632_v15 = vpop.xlane.xlu1 %2631  ;;  %v2805_v48 = vpop.xlane.xlu0 %2804 }
 0x44b   :  { %v2874_v13 = vadd.f32 %v2873_v56, %v2787_v41 }
 0x44d   :  { %v2875_v40 = vadd.f32 %v2874_v13, %v2790_v12 }
 0x44e   :  { %v2635_v32 = vpop.xlane.xlu1 %2634  ;;  %v2808_v61 = vpop.xlane.xlu0 %2807 }
 0x44f   :  { %v2876_v60 = vadd.f32 %v2875_v40, %v2793_v45 }
 0x451   :  { %v2877_v2 = vadd.f32 %v2876_v60, %v2796_v5  ;;  %v2691_v5 = vadd.f32 %v2690_v34, %v2632_v15 }
 0x452   :  { %v2638_v26 = vpop.xlane.xlu1 %2637  ;;  %v2811_v33 = vpop.xlane.xlu0 %2810 }
 0x453   :  { %v2878_v55 = vadd.f32 %v2877_v2, %v2799_v21  ;;  %v2692_v14 = vadd.f32 %v2691_v5, %v2635_v32 }
 0x455   :  { %v2879_v17 = vadd.f32 %v2878_v55, %v2802_v11  ;;  %v2693_v27 = vadd.f32 %v2692_v14, %v2638_v26  ;;  %v2918_v14 = vld [vmem:[#allocation5] sm:$0x1] }
 0x456   :  { %v2641_v39 = vpop.xlane.xlu1 %2640  ;;  %v2814_v62 = vpop.xlane.xlu0 %2813 }
 0x457   :  { %v2880_v19 = vadd.f32 %v2879_v17, %v2805_v48  ;;  %v2694_v50 = vadd.f32 %v2693_v27, %v2641_v39 }
 0x459   :  { %v2881_v47 = vadd.f32 %v2880_v19, %v2808_v61 }
 0x45a   :  { %v2644_v31 = vpop.xlane.xlu1 %2643  ;;  %v2817_v4 = vpop.xlane.xlu0 %2816 }
 0x45b   :  { %v2882_v23 = vadd.f32 %v2881_v47, %v2811_v33  ;;  %v2695_v29 = vadd.f32 %v2694_v50, %v2644_v31  ;;  %v7320_v33 = vld [vmem:[#allocation142_spill] sm:$0xff] }
 0x45c   :  { %v7322_v17 = vsub.f32 %v7320_v33, %v7321_v53  ;;  %v2962_v53 = vstv %s6385_s0 }
 0x45d   :  { %v2883_v25 = vadd.f32 %v2882_v23, %v2814_v62  ;;  %v7323_v62 = vld [vmem:[#allocation143_spill] sm:$0xff] }
 0x45e   :  { %v2647_v54 = vpop.xlane.xlu1 %2646  ;;  %v2820_v8 = vpop.xlane.xlu0 %2819  ;;  %v2912_v39 = vmul.f32 1.442695, %v7322_v17  ;;  %v7325_v47 = vsub.f32 %v7323_v62, %v7324_v9 }
 0x45f   :  { %v2884_v59 = vadd.f32 %v2883_v25, %v2817_v4  ;;  %v2696_v15 = vadd.f32 %v2695_v29, %v2647_v54 }
 0x460   :  { %v2921_v31 = vmul.f32 1.442695, %v7325_v47  ;;  %3434 = vpow2.f32 %v2912_v39 }
 0x461   :  { %v2885_v51 = vadd.f32 %v2884_v59, %v2820_v8 }
 0x462   :  { %v2650_v46 = vpop.xlane.xlu1 %2649  ;;  %v2823_v41 = vpop.xlane.xlu0 %2822  ;;  %3436 = vpow2.f32 %v2921_v31 }
 0x463   :  { %v2886_v12 = vadd.f32 %v2885_v51, %v2823_v41  ;;  %v2697_v13 = vadd.f32 %v2696_v15, %v2650_v46 }
 0x465   :  { %v2887_v43 = vadd.f32 %v2886_v12, %v6336_v6 }
 0x466   :  { %v2653_v45 = vpop.xlane.xlu1 %2652  ;;  %v2850_v37 = vpop.xlane.xlu0 %2849 }
 0x467   :  { %v2888_v30 = vadd.f32 %v2887_v43, %v6338_v63  ;;  %v2698_v38 = vadd.f32 %v2697_v13, %v2653_v45  ;;  %v2910_v45 = vld [vmem:[#allocation3] sm:$0x1] }
 0x469   :  { %v2889_v21 = vadd.f32 %v2888_v30, %v6340_v18 }
 0x46a   :  { %v2656_v28 = vpop.xlane.xlu1 %2655  ;;  %v2853_v35 = vpop.xlane.xlu0 %2852 }
 0x46b   :  { %v2890_v1 = vadd.f32 %v2889_v21, %v6342_v49  ;;  %v2699_v49 = vadd.f32 %v2698_v38, %v2656_v28  ;;  %v3435_v34 = vpop.eup %3434 }
 0x46c   :  { %v2914_v21 = vmul.f32 %v3435_v34, %v2910_v45 }
 0x46d   :  { %v2891_v11 = vadd.f32 %v2890_v1, %v6344_v22 }
 0x46e   :  { %v2659_v44 = vpop.xlane.xlu1 %2658  ;;  %v2856_v56 = vpop.xlane.xlu0 %2855 }
 0x46f   :  { %v2892_v6 = vadd.f32 %v2891_v11, %v6346_v58  ;;  %v2700_v22 = vadd.f32 %v2699_v49, %v2659_v44 }
 0x471   :  { %v2893_v7 = vadd.f32 %v2892_v6, %v6348_v20 }
 0x472   :  { %v2662_v63 = vpop.xlane.xlu1 %2661  ;;  %v2859_v48 = vpop.xlane.xlu0 %2858 }
 0x473   :  { %v2894_v18 = vadd.f32 %v2893_v7, %v6350_v36  ;;  %v2701_v2 = vadd.f32 %v2700_v22, %v2662_v63  ;;  %v2930_v7 = vld [vmem:[#allocation2] sm:$0x1]  ;;  %v2935_v63 = vld [vmem:[#allocation4] sm:$0x1] }
 0x475   :  { %v2895_v40 = vadd.f32 %v2894_v18, %v2850_v37  ;;  %v3437_v37 = vpop.eup %3436 }
 0x476   :  { %v2665_v32 = vpop.xlane.xlu1 %2664  ;;  %v2862_v52 = vpop.xlane.xlu0 %2861  ;;  %v2923_v27 = vmul.f32 %v3437_v37, %v2918_v14 }
 0x477   :  { %v2896_v60 = vadd.f32 %v2895_v40, %v2853_v35  ;;  %v2702_v10 = vadd.f32 %v2701_v2, %v2665_v32 }
 0x479   :  { %v2897_v61 = vadd.f32 %v2896_v60, %v2856_v56 }
 0x47a   :  { %v2668_v0 = vpop.xlane.xlu1 %2667  ;;  %v2865_v26 = vpop.xlane.xlu0 %2864 }
 0x47b   :  { %v2898_v58 = vadd.f32 %v2897_v61, %v2859_v48  ;;  %v2703_v36 = vadd.f32 %v2702_v10, %v2668_v0 }
 0x47d   :  { %v2899_v55 = vadd.f32 %v2898_v58, %v2862_v52 }
 0x47e   :  { %v2671_v20 = vpop.xlane.xlu1 %2670  ;;  %v2868_v24 = vpop.xlane.xlu0 %2867 }
 0x47f   :  { %v2900_v19 = vadd.f32 %v2899_v55, %v2865_v26  ;;  %v2704_v42 = vadd.f32 %v2703_v36, %v2671_v20 }
 0x481   :  { %v2901_v23 = vadd.f32 %v2900_v19, %v2868_v24 }
 0x482   :  { %v2674_v4 = vpop.xlane.xlu1 %2673  ;;  %v2871_v25 = vpop.xlane.xlu0 %2870 }
 0x483   :  { %v2705_v16 = vadd.f32 %v2704_v42, %v2674_v4  ;;  %v2902_v54 = vadd.f32 %v2901_v23, %v2871_v25 }
 0x485   :  { %v2706_v3 = vrot.slane %v2705_v16, 4  ;;  %v2903_v59 = vrot.slane %v2902_v54, 4 }
 0x487   :  { %v2707_v8 = vadd.f32 %v2706_v3, %v2705_v16  ;;  %v2904_v57 = vadd.f32 %v2903_v59, %v2902_v54 }
 0x489   :  { %v2708_v51 = vrot.slane %v2707_v8, 2  ;;  %v2905_v46 = vrot.slane %v2904_v57, 2 }
 0x48b   :  { %v2709_v41 = vadd.f32 %v2708_v51, %v2707_v8  ;;  %v2906_v12 = vadd.f32 %v2905_v46, %v2904_v57 }
 0x48d   :  { %v2710_v43 = vrot.slane %v2709_v41, 1  ;;  %v2907_v5 = vrot.slane %v2906_v12, 1 }
 0x48f   :  { %v2711_v30 = vadd.f32 %v2710_v43, %v2709_v41  ;;  %v2908_v28 = vadd.f32 %v2907_v5, %v2906_v12 }
 0x491   :  { %v2909_v35 = vsub.f32 %v2711_v30, %v2908_v28  ;;  %v2915_v1 = vadd.f32 %v2914_v21, %v2908_v28 }
 0x493   :  { %2917 = vst.msk [vmem:[#allocation3] sm:$0x1] %vm7326_vm9, %v2915_v1  ;;  %v2924_v50 = vadd.f32 %v2923_v27, %v2909_v35 }
 0x495   :  { %2925 = vst.msk [vmem:[#allocation5] sm:$0x1] %vm7327_vm12, %v2924_v50 }
 0x49a   :  { %v2931_v11 = vld [vmem:[#allocation3] sm:$0x1] }
 0x49b   :  { %3438 = vlog2.f32 %v2931_v11 }
 0x49c   :  { %v2936_v44 = vld [vmem:[#allocation5] sm:$0x1] }
 0x49d   :  { %3440 = vlog2.f32 %v2936_v44 }
 0x4a5   :  { %v3439_v29 = vpop.eup %3438 }
 0x4a6   :  { %v2933_v56 = vmul.f32 0.6931472, %v3439_v29 }
 0x4a7   :  { %v3441_v6 = vpop.eup %3440 }
 0x4a8   :  { %v2938_v15 = vmul.f32 0.6931472, %v3441_v6  ;;  %v2934_v13 = vadd.f32 %v2933_v56, %v2930_v7 }
 0x4aa   :  { %v2939_v48 = vadd.f32 %v2938_v15, %v2935_v63 }
 0x4ac   :  { %v2940_v18 = vadd.f32 %v2939_v48, %v2934_v13 }
 0x4ae   :  { %v2942_v38 = vand.u32 2147483647, %v2940_v18  ;;  %v2941_v58 = vmax.f32 %v2940_v18, 0.0 }
 0x4b0   :  { %v2943_v40 = vsub.f32 0.0, %v2942_v38 }
 0x4b2   :  { %v2944_v32 = vmul.f32 1.442695, %v2943_v40 }
 0x4b4   :  { %3442 = vpow2.f32 %v2944_v32 }
 0x4be   :  { %v3443_v49 = vpop.eup %3442 }
 0x4bf   :  { %v2946_v52 = vadd.f32 1.0, %v3443_v49  ;;  %v2949_v60 = vmul.f32 -0.5, %v3443_v49  ;;  %v2952_v61 = vand.u32 2147483647, %v3443_v49 }
 0x4c1   :  { %3444 = vlog2.f32 %v2946_v52  ;;  %v2950_v22 = vadd.f32 1.0, %v2949_v60  ;;  %vm2953_vm11 = vcmp.lt.f32.partialorder %v2952_v61, 0.0004427343 }
 0x4c3   :  { %v2951_v26 = vmul.f32 %v3443_v49, %v2950_v22 }
 0x4cb   :  { %v3445_v0 = vpop.eup %3444 }
 0x4cc   :  { %v2948_v2 = vmul.f32 0.6931472, %v3445_v0 }
 0x4ce   :  { %v2954_v10 = vsel %vm2953_vm11, %v2951_v26, %v2948_v2 }
 0x4cf   :  { %v2955_v55 = vadd.f32 %v2954_v10, %v2941_v58 }
 0x4d1   :  { %v2957_v20 = vmul.f32 0.03125, %v2955_v55 }
 0x4d3   :  { %v2958_v33 = vmax.f32 %v2957_v20, 0.0 }
 0x4d5   :  { %v2960_v17 = vmul.f32 0.00390625, %v2958_v33 }
 0x4d7   :  { %v2963_v39 = vadd.f32 %v2962_v53, %v2960_v17 }
 0x4d9   :  { %2965 = vst.msk [vmem:[#allocation7] sm:$0x1] %vm7328_vm0, %v2963_v39 }
 0x4da   :  { %3457 = shalt.err (!%p3454_p4)
}
 0x4db   :  { %s3458_s20 = scalar_lea.hbm %s6389_s4, 16 }
 0x4dc   :  { %p3459_p5 = scmp.ne.s32.totalorder %s6389_s4, %s3458_s20  ;;  %p3462_p6 = scmp.lt.u32.totalorder %s3458_s20, %s6389_s4 }
 0x4de   :  { %p3464_p7 = pnand %p3462_p6, %p3459_p5 }
 0x4e0   :  { %3467 = shalt.err (!%p3464_p7)
}
 0x4e1   :  { %2975 = dma.vmem_to_hbm [thread:$0]  %s2973_s15, 16, %s6389_s4, [#allocation8]  }
 0x4e2   :  { %3468 = dma.done.wait [#allocation8], 16  }
 0x4e3   :  { %3469 = vsyncadd [#allocation8], 4294967280 }
 0x4e4   :  { %2979 = vsyncpa [#allocation8], 1 }

</bundles_post_ra>
